<compile_context>
chip_gen: v7x
topology: tpu7x:2x2x1
jax: 0.10.0
libtpu: 0.0.40
codegen_flags: <defaults>
</compile_context>

<pallas_src>
import functools

import jax
import jax.numpy as jnp
from jax import lax
from jax.experimental import pallas as pl
from jax.experimental.pallas import tpu as pltpu

# ---- small synthetic configuration (scaled-down VGG channels) -------------
C_IN = 3          # RGB input
C1 = 16           # features conv1
C_FEAT = 32       # features conv2 output (stand-in for VGG's 512)
C6 = 64           # conv6 output       (stand-in for 1024)
NUM_CLASSES = 10  # stand-in for 1000
CP = 128          # lane-padded channel width used everywhere inside the kernel


# ---------------------------------------------------------------------------
# Fused Pallas kernel: conv1+ReLU -> conv2+ReLU -> conv6+ReLU -> avgpool
#                      -> fc -> sigmoid.   One batch element per grid step.
# ---------------------------------------------------------------------------
def _vggcam_fused_kernel(x_ref, w1_ref, b1_ref, w2_ref, b2_ref, w3_ref, b3_ref,
                         wfc_ref, bfc_ref, logit_ref, feat_ref,
                         lft_ref, cen_ref, rgt_ref, acc_ref, *, H, W):
    # x_ref    : (1, H, W, CP)    f32  channel-padded input image
    # w*_ref   : (9, CP, CP)      bf16 per-tap conv weights, zero padded
    # b*_ref   : (1, CP)          f32  zero-padded conv biases
    # wfc_ref  : (CP, CP)         f32  zero-padded fc weight (in x out)
    # bfc_ref  : (1, CP)          f32  zero-padded fc bias
    # logit_ref: (1, 1, CP)       f32  sigmoid(logits), lane-padded
    # feat_ref : (1, H, W, CP)    bf16 conv6+ReLU feature map (CAM branch)
    # lft/cen/rgt_ref: (H+2,W,CP) bf16 activation copies shifted by w-1/w/w+1,
    #                                  with a 1-row zero halo in H only
    # acc_ref  : (H*W, CP)        f32  matmul accumulator
    HW = H * W

    # Border rows of the halo buffers stay zero for every layer; the zero
    # W-edge columns are baked into the shifted stores below, so only 6 tiny
    # row stores are needed per image (no full-buffer memset).
    zrow = jnp.zeros((1, W, CP), jnp.bfloat16)
    for buf in (lft_ref, cen_ref, rgt_ref):
        buf[0:1, :, :] = zrow
        buf[H + 1:H + 2, :, :] = zrow

    zcol = jnp.zeros((H, 1, CP), jnp.float32)   # hoisted, reused by all layers

    def write_act(a3):
        # a3: (H, W, CP) f32 activation.  Store three W-shift variants (w-1,
        # w, w+1) in bf16 with an H-halo so every conv tap below reads a fully
        # tile-aligned leading-dim slice (minor dims (16,128) exactly one
        # bf16 tile) -- no misaligned sublane reads in the hot tap loop.
        cen_ref[1:H + 1, :, :] = a3.astype(jnp.bfloat16)
        a_l = jnp.concatenate([zcol, a3[:, :W - 1, :]], axis=1)   # x[h, w-1]
        lft_ref[1:H + 1, :, :] = a_l.astype(jnp.bfloat16)
        a_r = jnp.concatenate([a3[:, 1:, :], zcol], axis=1)       # x[h, w+1]
        rgt_ref[1:H + 1, :, :] = a_r.astype(jnp.bfloat16)

    def conv3x3(w_ref, b_ref):
        # 9 accumulating per-tap MXU matmuls (no materialized im2col patch).
        for kh in range(3):
            for kw, buf in enumerate((lft_ref, cen_ref, rgt_ref)):
                win = buf[kh:kh + H, :, :].reshape(HW, CP)          # bf16
                d = jnp.dot(win, w_ref[kh * 3 + kw],
                            preferred_element_type=jnp.float32)
                if kh == 0 and kw == 0:
                    acc_ref[...] = d
                else:
                    acc_ref[...] += d
        return jnp.maximum(acc_ref[...] + b_ref[0, :], 0.0)        # bias+ReLU

    write_act(x_ref[0])                               # input image
    a = conv3x3(w1_ref, b1_ref)                       # features conv1 + ReLU
    write_act(a.reshape(H, W, CP))
    a = conv3x3(w2_ref, b2_ref)                       # features conv2 + ReLU
    write_act(a.reshape(H, W, CP))
    a = conv3x3(w3_ref, b3_ref)                       # conv6 + ReLU (f32)

    feat_ref[...] = a.astype(jnp.bfloat16).reshape(1, H, W, CP)   # CAM map

    # Global average pool + FC + numerically-stable sigmoid (fused head, f32).
    pooled = jnp.sum(a, axis=0, keepdims=True) * (1.0 / float(HW))  # (1, CP)
    logits = jnp.dot(pooled, wfc_ref[...],
                     preferred_element_type=jnp.float32) + bfc_ref[0, :]
    z = jnp.exp(-jnp.abs(logits))
    sig = jnp.where(logits >= 0, 1.0 / (1.0 + z), z / (1.0 + z))
    logit_ref[...] = sig.reshape(1, 1, CP)


# ---------------------------------------------------------------------------
# Wrapper: parameter padding + the single pallas_call.
# ---------------------------------------------------------------------------
def _pad_conv_weight(w):
    """(3, 3, cin, cout) f32 -> (9, CP, CP) bf16 per-tap weights, zero padded."""
    cin, cout = w.shape[2], w.shape[3]
    wp = jnp.zeros((3, 3, CP, CP), jnp.float32).at[:, :, :cin, :cout].set(w)
    return wp.reshape(9, CP, CP).astype(jnp.bfloat16)


def _pad_vec(b):
    return jnp.zeros((1, CP), jnp.float32).at[0, :b.shape[0]].set(b)


def vgg_cam_fused(x_nhwc, params):
    """Runs the fused kernel.  Returns (sigmoid logits, conv6 feature map)."""
    N, H, W, cin = x_nhwc.shape
    x_p = jnp.pad(x_nhwc, ((0, 0), (0, 0), (0, 0), (0, CP - cin)))

    w1 = _pad_conv_weight(params["feat_w1"]); b1 = _pad_vec(params["feat_b1"])
    w2 = _pad_conv_weight(params["feat_w2"]); b2 = _pad_vec(params["feat_b2"])
    w3 = _pad_conv_weight(params["conv6_w"]); b3 = _pad_vec(params["conv6_b"])
    wfc = jnp.zeros((CP, CP), jnp.float32).at[:C6, :NUM_CLASSES].set(
        params["fc_w"])
    bfc = _pad_vec(params["fc_b"])

    kernel = functools.partial(_vggcam_fused_kernel, H=H, W=W)
    const3 = lambda n: (0, 0, 0)   # weights: constant block -> stay resident
    const2 = lambda n: (0, 0)      # biases / fc: constant block
    logits_p, feat_p = pl.pallas_call(
        kernel,
        out_shape=(jax.ShapeDtypeStruct((N, 1, CP), jnp.float32),
                   jax.ShapeDtypeStruct((N, H, W, CP), jnp.bfloat16)),
        grid=(N,),
        in_specs=[
            pl.BlockSpec((1, H, W, CP), lambda n: (n, 0, 0, 0)),
            pl.BlockSpec((9, CP, CP), const3),
            pl.BlockSpec((1, CP), const2),
            pl.BlockSpec((9, CP, CP), const3),
            pl.BlockSpec((1, CP), const2),
            pl.BlockSpec((9, CP, CP), const3),
            pl.BlockSpec((1, CP), const2),
            pl.BlockSpec((CP, CP), const2),
            pl.BlockSpec((1, CP), const2),
        ],
        out_specs=[
            pl.BlockSpec((1, 1, CP), lambda n: (n, 0, 0)),
            pl.BlockSpec((1, H, W, CP), lambda n: (n, 0, 0, 0)),
        ],
        scratch_shapes=[
            pltpu.VMEM((H + 2, W, CP), jnp.bfloat16),   # w-1 shifted acts
            pltpu.VMEM((H + 2, W, CP), jnp.bfloat16),   # centered acts
            pltpu.VMEM((H + 2, W, CP), jnp.bfloat16),   # w+1 shifted acts
            pltpu.VMEM((H * W, CP), jnp.float32),       # conv accumulator
        ],
        compiler_params=pltpu.CompilerParams(
            dimension_semantics=("parallel",)),          # v7x: 1 image / TC
    )(x_p, w1, b1, w2, b2, w3, b3, wfc, bfc)
    return logits_p[:, 0, :NUM_CLASSES], feat_p[..., :C6]


# ---------------------------------------------------------------------------
# Parameter init (He / kaiming-normal, deterministic).
# ---------------------------------------------------------------------------
def _he_conv(key, cin, cout):
    fan_in = 3 * 3 * cin
    return jax.random.normal(key, (3, 3, cin, cout), jnp.float32) * jnp.sqrt(
        2.0 / fan_in)


def init_params(key):
    k1, k2, k3, k4 = jax.random.split(key, 4)
    return {
        "feat_w1": _he_conv(k1, C_IN, C1), "feat_b1": jnp.zeros((C1,), jnp.float32),
        "feat_w2": _he_conv(k2, C1, C_FEAT), "feat_b2": jnp.zeros((C_FEAT,), jnp.float32),
        "conv6_w": _he_conv(k3, C_FEAT, C6), "conv6_b": jnp.zeros((C6,), jnp.float32),
        # fc stored as (in, out) = (C6, NUM_CLASSES); PyTorch stores (out, in).
        "fc_w": jax.random.normal(k4, (C6, NUM_CLASSES), jnp.float32)
                * jnp.sqrt(2.0 / C6),
        "fc_b": jnp.zeros((NUM_CLASSES,), jnp.float32),
    }


# ---------------------------------------------------------------------------
# Forward passes.
# ---------------------------------------------------------------------------
def vgg_cam_forward(x_nchw, params, labels=None, return_cam=False):
    x = jnp.transpose(x_nchw, (0, 2, 3, 1))               # NCHW -> NHWC
    logits, feat = vgg_cam_fused(x, params)               # single fused kernel
    if return_cam:
        # CAM branch (non-default path) -- plain JAX glue on the feature map.
        feature_map = jnp.transpose(feat, (0, 3, 1, 2))    # (N, C6, H, W) bf16
        cam_weights = params["fc_w"].T[labels]             # (N, C6) f32
        cams = jnp.mean(cam_weights[:, :, None, None] * feature_map, axis=1)
        return feature_map, cam_weights, cams
    return logits


def reference_forward(x_nchw, params):
    """Pure-JAX reference (lax.conv) for correctness checking."""
    x = jnp.transpose(x_nchw, (0, 2, 3, 1))
    dn = ("NHWC", "HWIO", "NHWC")

    def conv(y, w, b):
        y = lax.conv_general_dilated(y, w, (1, 1), "SAME", dimension_numbers=dn)
        return jnp.maximum(y + b, 0.0)

    x = conv(x, params["feat_w1"], params["feat_b1"])
    x = conv(x, params["feat_w2"], params["feat_b2"])
    x = conv(x, params["conv6_w"], params["conv6_b"])
    pooled = jnp.mean(x, axis=(1, 2))
    logits = pooled @ params["fc_w"] + params["fc_b"]
    return jax.nn.sigmoid(logits)


if __name__ == "__main__":
    N, H, W = 2, 16, 16
    x = jax.random.normal(jax.random.PRNGKey(0), (N, C_IN, H, W), jnp.float32)
    params = init_params(jax.random.PRNGKey(1))

    logits = jax.block_until_ready(vgg_cam_forward(x, params))
    assert logits.shape == (N, NUM_CLASSES)

    # conv matmuls use bf16 inputs with f32 accumulation -> loosened tolerance.
    ref = reference_forward(x, params)
    assert jnp.allclose(logits, ref, atol=2e-2, rtol=2e-2), "mismatch vs reference"

    # CAM branch smoke test (plain JAX on the kernel's feature-map output).
    labels = jnp.array([1, 3], dtype=jnp.int32)
    fmap, cam_w, cams = vgg_cam_forward(x, params, labels=labels, return_cam=True)
    jax.block_until_ready(cams)
    assert fmap.shape == (N, C6, H, W) and cams.shape == (N, H, W)

    print("KERNEL_OK")
</pallas_src>

<mosaic_0001>
module attributes {stable_mosaic.version = 11 : i64} {
  func.func @_vggcam_fused_kernel(%arg0: i32, %arg1: memref<1x16x16x128xf32, #tpu.memory_space<vmem>>, %arg2: memref<9x128x128xbf16, #tpu.memory_space<vmem>>, %arg3: memref<1x128xf32, #tpu.memory_space<vmem>>, %arg4: memref<9x128x128xbf16, #tpu.memory_space<vmem>>, %arg5: memref<1x128xf32, #tpu.memory_space<vmem>>, %arg6: memref<9x128x128xbf16, #tpu.memory_space<vmem>>, %arg7: memref<1x128xf32, #tpu.memory_space<vmem>>, %arg8: memref<128x128xf32, #tpu.memory_space<vmem>>, %arg9: memref<1x128xf32, #tpu.memory_space<vmem>>, %arg10: memref<1x1x128xf32, #tpu.memory_space<vmem>>, %arg11: memref<1x16x16x128xbf16, #tpu.memory_space<vmem>>, %arg12: memref<18x16x128xbf16, #tpu.memory_space<vmem>>, %arg13: memref<18x16x128xbf16, #tpu.memory_space<vmem>>, %arg14: memref<18x16x128xbf16, #tpu.memory_space<vmem>>, %arg15: memref<256x128xf32, #tpu.memory_space<vmem>>) attributes {dimension_semantics = [#tpu.dimension_semantics<parallel>], iteration_bounds = array<i64: 2>, scalar_prefetch = 0 : i64, scratch_operands = 4 : i64, tpu.core_type = #tpu.core_type<tc>, window_params = [{transform_indices = @transform_0, window_bounds = array<i64: 1, 16, 16, 128>}, {pipeline_mode = #tpu.pipeline_mode<synchronous>, transform_indices = @transform_1, window_bounds = array<i64: 9, 128, 128>}, {pipeline_mode = #tpu.pipeline_mode<synchronous>, transform_indices = @transform_2, window_bounds = array<i64: 1, 128>}, {pipeline_mode = #tpu.pipeline_mode<synchronous>, transform_indices = @transform_3, window_bounds = array<i64: 9, 128, 128>}, {pipeline_mode = #tpu.pipeline_mode<synchronous>, transform_indices = @transform_4, window_bounds = array<i64: 1, 128>}, {pipeline_mode = #tpu.pipeline_mode<synchronous>, transform_indices = @transform_5, window_bounds = array<i64: 9, 128, 128>}, {pipeline_mode = #tpu.pipeline_mode<synchronous>, transform_indices = @transform_6, window_bounds = array<i64: 1, 128>}, {pipeline_mode = #tpu.pipeline_mode<synchronous>, transform_indices = @transform_7, window_bounds = array<i64: 128, 128>}, {pipeline_mode = #tpu.pipeline_mode<synchronous>, transform_indices = @transform_8, window_bounds = array<i64: 1, 128>}, {transform_indices = @transform_9, window_bounds = array<i64: 1, 1, 128>}, {transform_indices = @transform_10, window_bounds = array<i64: 1, 16, 16, 128>}]} {
    %cst = arith.constant 0.000000e+00 : bf16
    %0 = vector.broadcast %cst : bf16 to vector<1x16x128xbf16>
    %c0 = arith.constant 0 : index
    %c0_0 = arith.constant 0 : index
    %c0_1 = arith.constant 0 : index
    %1 = vector.load %arg12[%c0, %c0_0, %c0_1] : memref<18x16x128xbf16, #tpu.memory_space<vmem>>, vector<1x16x128xbf16>
    tpu.vector_store %arg12[%c0, %c0_0, %c0_1], %0 {strides = array<i32>} : memref<18x16x128xbf16, #tpu.memory_space<vmem>>, vector<1x16x128xbf16>,
    %c17 = arith.constant 17 : index
    %c0_2 = arith.constant 0 : index
    %c0_3 = arith.constant 0 : index
    %2 = vector.load %arg12[%c17, %c0_2, %c0_3] : memref<18x16x128xbf16, #tpu.memory_space<vmem>>, vector<1x16x128xbf16>
    tpu.vector_store %arg12[%c17, %c0_2, %c0_3], %0 {strides = array<i32>} : memref<18x16x128xbf16, #tpu.memory_space<vmem>>, vector<1x16x128xbf16>,
    %c0_4 = arith.constant 0 : index
    %c0_5 = arith.constant 0 : index
    %c0_6 = arith.constant 0 : index
    %3 = vector.load %arg13[%c0_4, %c0_5, %c0_6] : memref<18x16x128xbf16, #tpu.memory_space<vmem>>, vector<1x16x128xbf16>
    tpu.vector_store %arg13[%c0_4, %c0_5, %c0_6], %0 {strides = array<i32>} : memref<18x16x128xbf16, #tpu.memory_space<vmem>>, vector<1x16x128xbf16>,
    %c17_7 = arith.constant 17 : index
    %c0_8 = arith.constant 0 : index
    %c0_9 = arith.constant 0 : index
    %4 = vector.load %arg13[%c17_7, %c0_8, %c0_9] : memref<18x16x128xbf16, #tpu.memory_space<vmem>>, vector<1x16x128xbf16>
    tpu.vector_store %arg13[%c17_7, %c0_8, %c0_9], %0 {strides = array<i32>} : memref<18x16x128xbf16, #tpu.memory_space<vmem>>, vector<1x16x128xbf16>,
    %c0_10 = arith.constant 0 : index
    %c0_11 = arith.constant 0 : index
    %c0_12 = arith.constant 0 : index
    %5 = vector.load %arg14[%c0_10, %c0_11, %c0_12] : memref<18x16x128xbf16, #tpu.memory_space<vmem>>, vector<1x16x128xbf16>
    tpu.vector_store %arg14[%c0_10, %c0_11, %c0_12], %0 {strides = array<i32>} : memref<18x16x128xbf16, #tpu.memory_space<vmem>>, vector<1x16x128xbf16>,
    %c17_13 = arith.constant 17 : index
    %c0_14 = arith.constant 0 : index
    %c0_15 = arith.constant 0 : index
    %6 = vector.load %arg14[%c17_13, %c0_14, %c0_15] : memref<18x16x128xbf16, #tpu.memory_space<vmem>>, vector<1x16x128xbf16>
    tpu.vector_store %arg14[%c17_13, %c0_14, %c0_15], %0 {strides = array<i32>} : memref<18x16x128xbf16, #tpu.memory_space<vmem>>, vector<1x16x128xbf16>,
    %cst_16 = arith.constant 0.000000e+00 : f32
    %7 = vector.broadcast %cst_16 : f32 to vector<16x1x128xf32>
    %c0_17 = arith.constant 0 : index
    %c0_18 = arith.constant 0 : index
    %c0_19 = arith.constant 0 : index
    %c0_20 = arith.constant 0 : index
    %8 = vector.load %arg1[%c0_17, %c0_18, %c0_19, %c0_20] : memref<1x16x16x128xf32, #tpu.memory_space<vmem>>, vector<1x16x16x128xf32>
    %9 = vector.shape_cast %8 : vector<1x16x16x128xf32> to vector<16x16x128xf32>
    %10 = arith.truncf %9 : vector<16x16x128xf32> to vector<16x16x128xbf16>
    %c1 = arith.constant 1 : index
    %c0_21 = arith.constant 0 : index
    %c0_22 = arith.constant 0 : index
    %11 = vector.load %arg13[%c1, %c0_21, %c0_22] : memref<18x16x128xbf16, #tpu.memory_space<vmem>>, vector<16x16x128xbf16>
    tpu.vector_store %arg13[%c1, %c0_21, %c0_22], %10 {strides = array<i32>} : memref<18x16x128xbf16, #tpu.memory_space<vmem>>, vector<16x16x128xbf16>,
    %12 = vector.extract_strided_slice %9 {offsets = [0, 0, 0], sizes = [16, 15, 128], strides = [1, 1, 1]} : vector<16x16x128xf32> to vector<16x15x128xf32>
    %13 = tpu.concatenate %7, %12 in 1 : vector<16x1x128xf32>, vector<16x15x128xf32> -> vector<16x16x128xf32>
    %14 = arith.truncf %13 : vector<16x16x128xf32> to vector<16x16x128xbf16>
    %c1_23 = arith.constant 1 : index
    %c0_24 = arith.constant 0 : index
    %c0_25 = arith.constant 0 : index
    %15 = vector.load %arg12[%c1_23, %c0_24, %c0_25] : memref<18x16x128xbf16, #tpu.memory_space<vmem>>, vector<16x16x128xbf16>
    tpu.vector_store %arg12[%c1_23, %c0_24, %c0_25], %14 {strides = array<i32>} : memref<18x16x128xbf16, #tpu.memory_space<vmem>>, vector<16x16x128xbf16>,
    %16 = vector.extract_strided_slice %9 {offsets = [0, 1, 0], sizes = [16, 15, 128], strides = [1, 1, 1]} : vector<16x16x128xf32> to vector<16x15x128xf32>
    %17 = tpu.concatenate %16, %7 in 1 : vector<16x15x128xf32>, vector<16x1x128xf32> -> vector<16x16x128xf32>
    %18 = arith.truncf %17 : vector<16x16x128xf32> to vector<16x16x128xbf16>
    %c1_26 = arith.constant 1 : index
    %c0_27 = arith.constant 0 : index
    %c0_28 = arith.constant 0 : index
    %19 = vector.load %arg14[%c1_26, %c0_27, %c0_28] : memref<18x16x128xbf16, #tpu.memory_space<vmem>>, vector<16x16x128xbf16>
    tpu.vector_store %arg14[%c1_26, %c0_27, %c0_28], %18 {strides = array<i32>} : memref<18x16x128xbf16, #tpu.memory_space<vmem>>, vector<16x16x128xbf16>,
    %c0_29 = arith.constant 0 : index
    %c0_30 = arith.constant 0 : index
    %c0_31 = arith.constant 0 : index
    %20 = vector.load %arg12[%c0_29, %c0_30, %c0_31] : memref<18x16x128xbf16, #tpu.memory_space<vmem>>, vector<16x16x128xbf16>
    %21 = vector.shape_cast %20 : vector<16x16x128xbf16> to vector<256x128xbf16>
    %c0_32 = arith.constant 0 : index
    %c0_33 = arith.constant 0 : index
    %c0_34 = arith.constant 0 : index
    %22 = vector.load %arg2[%c0_32, %c0_33, %c0_34] : memref<9x128x128xbf16, #tpu.memory_space<vmem>>, vector<1x128x128xbf16>
    %23 = vector.shape_cast %22 : vector<1x128x128xbf16> to vector<128x128xbf16>
    %cst_35 = arith.constant dense<0.000000e+00> : vector<256x128xf32>
    %24 = tpu.matmul %21, %23, %cst_35 {dimension_numbers = #tpu.dot_dimension_numbers<[1], [0], [0], [1], [0, 0, 1, 1], [], []>} : vector<256x128xbf16>, vector<128x128xbf16>, vector<256x128xf32> -> vector<256x128xf32>
    %c0_36 = arith.constant 0 : index
    %c0_37 = arith.constant 0 : index
    %25 = vector.load %arg15[%c0_36, %c0_37] : memref<256x128xf32, #tpu.memory_space<vmem>>, vector<256x128xf32>
    tpu.vector_store %arg15[%c0_36, %c0_37], %24 {strides = array<i32>} : memref<256x128xf32, #tpu.memory_space<vmem>>, vector<256x128xf32>,
    %c0_38 = arith.constant 0 : index
    %c0_39 = arith.constant 0 : index
    %c0_40 = arith.constant 0 : index
    %26 = vector.load %arg13[%c0_38, %c0_39, %c0_40] : memref<18x16x128xbf16, #tpu.memory_space<vmem>>, vector<16x16x128xbf16>
    %27 = vector.shape_cast %26 : vector<16x16x128xbf16> to vector<256x128xbf16>
    %c1_41 = arith.constant 1 : index
    %c0_42 = arith.constant 0 : index
    %c0_43 = arith.constant 0 : index
    %28 = vector.load %arg2[%c1_41, %c0_42, %c0_43] : memref<9x128x128xbf16, #tpu.memory_space<vmem>>, vector<1x128x128xbf16>
    %29 = vector.shape_cast %28 : vector<1x128x128xbf16> to vector<128x128xbf16>
    %cst_44 = arith.constant dense<0.000000e+00> : vector<256x128xf32>
    %30 = tpu.matmul %27, %29, %cst_44 {dimension_numbers = #tpu.dot_dimension_numbers<[1], [0], [0], [1], [0, 0, 1, 1], [], []>} : vector<256x128xbf16>, vector<128x128xbf16>, vector<256x128xf32> -> vector<256x128xf32>
    %c0_45 = arith.constant 0 : index
    %c0_46 = arith.constant 0 : index
    %31 = vector.load %arg15[%c0_45, %c0_46] : memref<256x128xf32, #tpu.memory_space<vmem>>, vector<256x128xf32>
    %32 = arith.addf %31, %30 : vector<256x128xf32>
    %c0_47 = arith.constant 0 : index
    %c0_48 = arith.constant 0 : index
    %33 = vector.load %arg15[%c0_47, %c0_48] : memref<256x128xf32, #tpu.memory_space<vmem>>, vector<256x128xf32>
    tpu.vector_store %arg15[%c0_47, %c0_48], %32 {strides = array<i32>} : memref<256x128xf32, #tpu.memory_space<vmem>>, vector<256x128xf32>,
    %c0_49 = arith.constant 0 : index
    %c0_50 = arith.constant 0 : index
    %c0_51 = arith.constant 0 : index
    %34 = vector.load %arg14[%c0_49, %c0_50, %c0_51] : memref<18x16x128xbf16, #tpu.memory_space<vmem>>, vector<16x16x128xbf16>
    %35 = vector.shape_cast %34 : vector<16x16x128xbf16> to vector<256x128xbf16>
    %c2 = arith.constant 2 : index
    %c0_52 = arith.constant 0 : index
    %c0_53 = arith.constant 0 : index
    %36 = vector.load %arg2[%c2, %c0_52, %c0_53] : memref<9x128x128xbf16, #tpu.memory_space<vmem>>, vector<1x128x128xbf16>
    %37 = vector.shape_cast %36 : vector<1x128x128xbf16> to vector<128x128xbf16>
    %cst_54 = arith.constant dense<0.000000e+00> : vector<256x128xf32>
    %38 = tpu.matmul %35, %37, %cst_54 {dimension_numbers = #tpu.dot_dimension_numbers<[1], [0], [0], [1], [0, 0, 1, 1], [], []>} : vector<256x128xbf16>, vector<128x128xbf16>, vector<256x128xf32> -> vector<256x128xf32>
    %c0_55 = arith.constant 0 : index
    %c0_56 = arith.constant 0 : index
    %39 = vector.load %arg15[%c0_55, %c0_56] : memref<256x128xf32, #tpu.memory_space<vmem>>, vector<256x128xf32>
    %40 = arith.addf %39, %38 : vector<256x128xf32>
    %c0_57 = arith.constant 0 : index
    %c0_58 = arith.constant 0 : index
    %41 = vector.load %arg15[%c0_57, %c0_58] : memref<256x128xf32, #tpu.memory_space<vmem>>, vector<256x128xf32>
    tpu.vector_store %arg15[%c0_57, %c0_58], %40 {strides = array<i32>} : memref<256x128xf32, #tpu.memory_space<vmem>>, vector<256x128xf32>,
    %c1_59 = arith.constant 1 : index
    %c0_60 = arith.constant 0 : index
    %c0_61 = arith.constant 0 : index
    %42 = vector.load %arg12[%c1_59, %c0_60, %c0_61] : memref<18x16x128xbf16, #tpu.memory_space<vmem>>, vector<16x16x128xbf16>
    %43 = vector.shape_cast %42 : vector<16x16x128xbf16> to vector<256x128xbf16>
    %c3 = arith.constant 3 : index
    %c0_62 = arith.constant 0 : index
    %c0_63 = arith.constant 0 : index
    %44 = vector.load %arg2[%c3, %c0_62, %c0_63] : memref<9x128x128xbf16, #tpu.memory_space<vmem>>, vector<1x128x128xbf16>
    %45 = vector.shape_cast %44 : vector<1x128x128xbf16> to vector<128x128xbf16>
    %cst_64 = arith.constant dense<0.000000e+00> : vector<256x128xf32>
    %46 = tpu.matmul %43, %45, %cst_64 {dimension_numbers = #tpu.dot_dimension_numbers<[1], [0], [0], [1], [0, 0, 1, 1], [], []>} : vector<256x128xbf16>, vector<128x128xbf16>, vector<256x128xf32> -> vector<256x128xf32>
    %c0_65 = arith.constant 0 : index
    %c0_66 = arith.constant 0 : index
    %47 = vector.load %arg15[%c0_65, %c0_66] : memref<256x128xf32, #tpu.memory_space<vmem>>, vector<256x128xf32>
    %48 = arith.addf %47, %46 : vector<256x128xf32>
    %c0_67 = arith.constant 0 : index
    %c0_68 = arith.constant 0 : index
    %49 = vector.load %arg15[%c0_67, %c0_68] : memref<256x128xf32, #tpu.memory_space<vmem>>, vector<256x128xf32>
    tpu.vector_store %arg15[%c0_67, %c0_68], %48 {strides = array<i32>} : memref<256x128xf32, #tpu.memory_space<vmem>>, vector<256x128xf32>,
    %c1_69 = arith.constant 1 : index
    %c0_70 = arith.constant 0 : index
    %c0_71 = arith.constant 0 : index
    %50 = vector.load %arg13[%c1_69, %c0_70, %c0_71] : memref<18x16x128xbf16, #tpu.memory_space<vmem>>, vector<16x16x128xbf16>
    %51 = vector.shape_cast %50 : vector<16x16x128xbf16> to vector<256x128xbf16>
    %c4 = arith.constant 4 : index
    %c0_72 = arith.constant 0 : index
    %c0_73 = arith.constant 0 : index
    %52 = vector.load %arg2[%c4, %c0_72, %c0_73] : memref<9x128x128xbf16, #tpu.memory_space<vmem>>, vector<1x128x128xbf16>
    %53 = vector.shape_cast %52 : vector<1x128x128xbf16> to vector<128x128xbf16>
    %cst_74 = arith.constant dense<0.000000e+00> : vector<256x128xf32>
    %54 = tpu.matmul %51, %53, %cst_74 {dimension_numbers = #tpu.dot_dimension_numbers<[1], [0], [0], [1], [0, 0, 1, 1], [], []>} : vector<256x128xbf16>, vector<128x128xbf16>, vector<256x128xf32> -> vector<256x128xf32>
    %c0_75 = arith.constant 0 : index
    %c0_76 = arith.constant 0 : index
    %55 = vector.load %arg15[%c0_75, %c0_76] : memref<256x128xf32, #tpu.memory_space<vmem>>, vector<256x128xf32>
    %56 = arith.addf %55, %54 : vector<256x128xf32>
    %c0_77 = arith.constant 0 : index
    %c0_78 = arith.constant 0 : index
    %57 = vector.load %arg15[%c0_77, %c0_78] : memref<256x128xf32, #tpu.memory_space<vmem>>, vector<256x128xf32>
    tpu.vector_store %arg15[%c0_77, %c0_78], %56 {strides = array<i32>} : memref<256x128xf32, #tpu.memory_space<vmem>>, vector<256x128xf32>,
    %c1_79 = arith.constant 1 : index
    %c0_80 = arith.constant 0 : index
    %c0_81 = arith.constant 0 : index
    %58 = vector.load %arg14[%c1_79, %c0_80, %c0_81] : memref<18x16x128xbf16, #tpu.memory_space<vmem>>, vector<16x16x128xbf16>
    %59 = vector.shape_cast %58 : vector<16x16x128xbf16> to vector<256x128xbf16>
    %c5 = arith.constant 5 : index
    %c0_82 = arith.constant 0 : index
    %c0_83 = arith.constant 0 : index
    %60 = vector.load %arg2[%c5, %c0_82, %c0_83] : memref<9x128x128xbf16, #tpu.memory_space<vmem>>, vector<1x128x128xbf16>
    %61 = vector.shape_cast %60 : vector<1x128x128xbf16> to vector<128x128xbf16>
    %cst_84 = arith.constant dense<0.000000e+00> : vector<256x128xf32>
    %62 = tpu.matmul %59, %61, %cst_84 {dimension_numbers = #tpu.dot_dimension_numbers<[1], [0], [0], [1], [0, 0, 1, 1], [], []>} : vector<256x128xbf16>, vector<128x128xbf16>, vector<256x128xf32> -> vector<256x128xf32>
    %c0_85 = arith.constant 0 : index
    %c0_86 = arith.constant 0 : index
    %63 = vector.load %arg15[%c0_85, %c0_86] : memref<256x128xf32, #tpu.memory_space<vmem>>, vector<256x128xf32>
    %64 = arith.addf %63, %62 : vector<256x128xf32>
    %c0_87 = arith.constant 0 : index
    %c0_88 = arith.constant 0 : index
    %65 = vector.load %arg15[%c0_87, %c0_88] : memref<256x128xf32, #tpu.memory_space<vmem>>, vector<256x128xf32>
    tpu.vector_store %arg15[%c0_87, %c0_88], %64 {strides = array<i32>} : memref<256x128xf32, #tpu.memory_space<vmem>>, vector<256x128xf32>,
    %c2_89 = arith.constant 2 : index
    %c0_90 = arith.constant 0 : index
    %c0_91 = arith.constant 0 : index
    %66 = vector.load %arg12[%c2_89, %c0_90, %c0_91] : memref<18x16x128xbf16, #tpu.memory_space<vmem>>, vector<16x16x128xbf16>
    %67 = vector.shape_cast %66 : vector<16x16x128xbf16> to vector<256x128xbf16>
    %c6 = arith.constant 6 : index
    %c0_92 = arith.constant 0 : index
    %c0_93 = arith.constant 0 : index
    %68 = vector.load %arg2[%c6, %c0_92, %c0_93] : memref<9x128x128xbf16, #tpu.memory_space<vmem>>, vector<1x128x128xbf16>
    %69 = vector.shape_cast %68 : vector<1x128x128xbf16> to vector<128x128xbf16>
    %cst_94 = arith.constant dense<0.000000e+00> : vector<256x128xf32>
    %70 = tpu.matmul %67, %69, %cst_94 {dimension_numbers = #tpu.dot_dimension_numbers<[1], [0], [0], [1], [0, 0, 1, 1], [], []>} : vector<256x128xbf16>, vector<128x128xbf16>, vector<256x128xf32> -> vector<256x128xf32>
    %c0_95 = arith.constant 0 : index
    %c0_96 = arith.constant 0 : index
    %71 = vector.load %arg15[%c0_95, %c0_96] : memref<256x128xf32, #tpu.memory_space<vmem>>, vector<256x128xf32>
    %72 = arith.addf %71, %70 : vector<256x128xf32>
    %c0_97 = arith.constant 0 : index
    %c0_98 = arith.constant 0 : index
    %73 = vector.load %arg15[%c0_97, %c0_98] : memref<256x128xf32, #tpu.memory_space<vmem>>, vector<256x128xf32>
    tpu.vector_store %arg15[%c0_97, %c0_98], %72 {strides = array<i32>} : memref<256x128xf32, #tpu.memory_space<vmem>>, vector<256x128xf32>,
    %c2_99 = arith.constant 2 : index
    %c0_100 = arith.constant 0 : index
    %c0_101 = arith.constant 0 : index
    %74 = vector.load %arg13[%c2_99, %c0_100, %c0_101] : memref<18x16x128xbf16, #tpu.memory_space<vmem>>, vector<16x16x128xbf16>
    %75 = vector.shape_cast %74 : vector<16x16x128xbf16> to vector<256x128xbf16>
    %c7 = arith.constant 7 : index
    %c0_102 = arith.constant 0 : index
    %c0_103 = arith.constant 0 : index
    %76 = vector.load %arg2[%c7, %c0_102, %c0_103] : memref<9x128x128xbf16, #tpu.memory_space<vmem>>, vector<1x128x128xbf16>
    %77 = vector.shape_cast %76 : vector<1x128x128xbf16> to vector<128x128xbf16>
    %cst_104 = arith.constant dense<0.000000e+00> : vector<256x128xf32>
    %78 = tpu.matmul %75, %77, %cst_104 {dimension_numbers = #tpu.dot_dimension_numbers<[1], [0], [0], [1], [0, 0, 1, 1], [], []>} : vector<256x128xbf16>, vector<128x128xbf16>, vector<256x128xf32> -> vector<256x128xf32>
    %c0_105 = arith.constant 0 : index
    %c0_106 = arith.constant 0 : index
    %79 = vector.load %arg15[%c0_105, %c0_106] : memref<256x128xf32, #tpu.memory_space<vmem>>, vector<256x128xf32>
    %80 = arith.addf %79, %78 : vector<256x128xf32>
    %c0_107 = arith.constant 0 : index
    %c0_108 = arith.constant 0 : index
    %81 = vector.load %arg15[%c0_107, %c0_108] : memref<256x128xf32, #tpu.memory_space<vmem>>, vector<256x128xf32>
    tpu.vector_store %arg15[%c0_107, %c0_108], %80 {strides = array<i32>} : memref<256x128xf32, #tpu.memory_space<vmem>>, vector<256x128xf32>,
    %c2_109 = arith.constant 2 : index
    %c0_110 = arith.constant 0 : index
    %c0_111 = arith.constant 0 : index
    %82 = vector.load %arg14[%c2_109, %c0_110, %c0_111] : memref<18x16x128xbf16, #tpu.memory_space<vmem>>, vector<16x16x128xbf16>
    %83 = vector.shape_cast %82 : vector<16x16x128xbf16> to vector<256x128xbf16>
    %c8 = arith.constant 8 : index
    %c0_112 = arith.constant 0 : index
    %c0_113 = arith.constant 0 : index
    %84 = vector.load %arg2[%c8, %c0_112, %c0_113] : memref<9x128x128xbf16, #tpu.memory_space<vmem>>, vector<1x128x128xbf16>
    %85 = vector.shape_cast %84 : vector<1x128x128xbf16> to vector<128x128xbf16>
    %cst_114 = arith.constant dense<0.000000e+00> : vector<256x128xf32>
    %86 = tpu.matmul %83, %85, %cst_114 {dimension_numbers = #tpu.dot_dimension_numbers<[1], [0], [0], [1], [0, 0, 1, 1], [], []>} : vector<256x128xbf16>, vector<128x128xbf16>, vector<256x128xf32> -> vector<256x128xf32>
    %c0_115 = arith.constant 0 : index
    %c0_116 = arith.constant 0 : index
    %87 = vector.load %arg15[%c0_115, %c0_116] : memref<256x128xf32, #tpu.memory_space<vmem>>, vector<256x128xf32>
    %88 = arith.addf %87, %86 : vector<256x128xf32>
    %c0_117 = arith.constant 0 : index
    %c0_118 = arith.constant 0 : index
    %89 = vector.load %arg15[%c0_117, %c0_118] : memref<256x128xf32, #tpu.memory_space<vmem>>, vector<256x128xf32>
    tpu.vector_store %arg15[%c0_117, %c0_118], %88 {strides = array<i32>} : memref<256x128xf32, #tpu.memory_space<vmem>>, vector<256x128xf32>,
    %c0_119 = arith.constant 0 : index
    %c0_120 = arith.constant 0 : index
    %90 = vector.load %arg15[%c0_119, %c0_120] : memref<256x128xf32, #tpu.memory_space<vmem>>, vector<256x128xf32>
    %c0_121 = arith.constant 0 : index
    %c0_122 = arith.constant 0 : index
    %91 = vector.load %arg3[%c0_121, %c0_122] : memref<1x128xf32, #tpu.memory_space<vmem>>, vector<1x128xf32>
    %92 = vector.shape_cast %91 : vector<1x128xf32> to vector<128xf32>
    %93 = vector.shape_cast %92 : vector<128xf32> to vector<1x128xf32>
    %94 = vector.broadcast %93 : vector<1x128xf32> to vector<256x128xf32>
    %95 = arith.addf %90, %94 : vector<256x128xf32>
    %cst_123 = arith.constant 0.000000e+00 : f32
    %96 = vector.broadcast %cst_123 : f32 to vector<256x128xf32>
    %97 = arith.maximumf %95, %96 : vector<256x128xf32>
    %98 = vector.shape_cast %97 : vector<256x128xf32> to vector<16x16x128xf32>
    %99 = arith.truncf %98 : vector<16x16x128xf32> to vector<16x16x128xbf16>
    %c1_124 = arith.constant 1 : index
    %c0_125 = arith.constant 0 : index
    %c0_126 = arith.constant 0 : index
    %100 = vector.load %arg13[%c1_124, %c0_125, %c0_126] : memref<18x16x128xbf16, #tpu.memory_space<vmem>>, vector<16x16x128xbf16>
    tpu.vector_store %arg13[%c1_124, %c0_125, %c0_126], %99 {strides = array<i32>} : memref<18x16x128xbf16, #tpu.memory_space<vmem>>, vector<16x16x128xbf16>,
    %101 = vector.extract_strided_slice %98 {offsets = [0, 0, 0], sizes = [16, 15, 128], strides = [1, 1, 1]} : vector<16x16x128xf32> to vector<16x15x128xf32>
    %102 = tpu.concatenate %7, %101 in 1 : vector<16x1x128xf32>, vector<16x15x128xf32> -> vector<16x16x128xf32>
    %103 = arith.truncf %102 : vector<16x16x128xf32> to vector<16x16x128xbf16>
    %c1_127 = arith.constant 1 : index
    %c0_128 = arith.constant 0 : index
    %c0_129 = arith.constant 0 : index
    %104 = vector.load %arg12[%c1_127, %c0_128, %c0_129] : memref<18x16x128xbf16, #tpu.memory_space<vmem>>, vector<16x16x128xbf16>
    tpu.vector_store %arg12[%c1_127, %c0_128, %c0_129], %103 {strides = array<i32>} : memref<18x16x128xbf16, #tpu.memory_space<vmem>>, vector<16x16x128xbf16>,
    %105 = vector.extract_strided_slice %98 {offsets = [0, 1, 0], sizes = [16, 15, 128], strides = [1, 1, 1]} : vector<16x16x128xf32> to vector<16x15x128xf32>
    %106 = tpu.concatenate %105, %7 in 1 : vector<16x15x128xf32>, vector<16x1x128xf32> -> vector<16x16x128xf32>
    %107 = arith.truncf %106 : vector<16x16x128xf32> to vector<16x16x128xbf16>
    %c1_130 = arith.constant 1 : index
    %c0_131 = arith.constant 0 : index
    %c0_132 = arith.constant 0 : index
    %108 = vector.load %arg14[%c1_130, %c0_131, %c0_132] : memref<18x16x128xbf16, #tpu.memory_space<vmem>>, vector<16x16x128xbf16>
    tpu.vector_store %arg14[%c1_130, %c0_131, %c0_132], %107 {strides = array<i32>} : memref<18x16x128xbf16, #tpu.memory_space<vmem>>, vector<16x16x128xbf16>,
    %c0_133 = arith.constant 0 : index
    %c0_134 = arith.constant 0 : index
    %c0_135 = arith.constant 0 : index
    %109 = vector.load %arg12[%c0_133, %c0_134, %c0_135] : memref<18x16x128xbf16, #tpu.memory_space<vmem>>, vector<16x16x128xbf16>
    %110 = vector.shape_cast %109 : vector<16x16x128xbf16> to vector<256x128xbf16>
    %c0_136 = arith.constant 0 : index
    %c0_137 = arith.constant 0 : index
    %c0_138 = arith.constant 0 : index
    %111 = vector.load %arg4[%c0_136, %c0_137, %c0_138] : memref<9x128x128xbf16, #tpu.memory_space<vmem>>, vector<1x128x128xbf16>
    %112 = vector.shape_cast %111 : vector<1x128x128xbf16> to vector<128x128xbf16>
    %cst_139 = arith.constant dense<0.000000e+00> : vector<256x128xf32>
    %113 = tpu.matmul %110, %112, %cst_139 {dimension_numbers = #tpu.dot_dimension_numbers<[1], [0], [0], [1], [0, 0, 1, 1], [], []>} : vector<256x128xbf16>, vector<128x128xbf16>, vector<256x128xf32> -> vector<256x128xf32>
    %c0_140 = arith.constant 0 : index
    %c0_141 = arith.constant 0 : index
    %114 = vector.load %arg15[%c0_140, %c0_141] : memref<256x128xf32, #tpu.memory_space<vmem>>, vector<256x128xf32>
    tpu.vector_store %arg15[%c0_140, %c0_141], %113 {strides = array<i32>} : memref<256x128xf32, #tpu.memory_space<vmem>>, vector<256x128xf32>,
    %c0_142 = arith.constant 0 : index
    %c0_143 = arith.constant 0 : index
    %c0_144 = arith.constant 0 : index
    %115 = vector.load %arg13[%c0_142, %c0_143, %c0_144] : memref<18x16x128xbf16, #tpu.memory_space<vmem>>, vector<16x16x128xbf16>
    %116 = vector.shape_cast %115 : vector<16x16x128xbf16> to vector<256x128xbf16>
    %c1_145 = arith.constant 1 : index
    %c0_146 = arith.constant 0 : index
    %c0_147 = arith.constant 0 : index
    %117 = vector.load %arg4[%c1_145, %c0_146, %c0_147] : memref<9x128x128xbf16, #tpu.memory_space<vmem>>, vector<1x128x128xbf16>
    %118 = vector.shape_cast %117 : vector<1x128x128xbf16> to vector<128x128xbf16>
    %cst_148 = arith.constant dense<0.000000e+00> : vector<256x128xf32>
    %119 = tpu.matmul %116, %118, %cst_148 {dimension_numbers = #tpu.dot_dimension_numbers<[1], [0], [0], [1], [0, 0, 1, 1], [], []>} : vector<256x128xbf16>, vector<128x128xbf16>, vector<256x128xf32> -> vector<256x128xf32>
    %c0_149 = arith.constant 0 : index
    %c0_150 = arith.constant 0 : index
    %120 = vector.load %arg15[%c0_149, %c0_150] : memref<256x128xf32, #tpu.memory_space<vmem>>, vector<256x128xf32>
    %121 = arith.addf %120, %119 : vector<256x128xf32>
    %c0_151 = arith.constant 0 : index
    %c0_152 = arith.constant 0 : index
    %122 = vector.load %arg15[%c0_151, %c0_152] : memref<256x128xf32, #tpu.memory_space<vmem>>, vector<256x128xf32>
    tpu.vector_store %arg15[%c0_151, %c0_152], %121 {strides = array<i32>} : memref<256x128xf32, #tpu.memory_space<vmem>>, vector<256x128xf32>,
    %c0_153 = arith.constant 0 : index
    %c0_154 = arith.constant 0 : index
    %c0_155 = arith.constant 0 : index
    %123 = vector.load %arg14[%c0_153, %c0_154, %c0_155] : memref<18x16x128xbf16, #tpu.memory_space<vmem>>, vector<16x16x128xbf16>
    %124 = vector.shape_cast %123 : vector<16x16x128xbf16> to vector<256x128xbf16>
    %c2_156 = arith.constant 2 : index
    %c0_157 = arith.constant 0 : index
    %c0_158 = arith.constant 0 : index
    %125 = vector.load %arg4[%c2_156, %c0_157, %c0_158] : memref<9x128x128xbf16, #tpu.memory_space<vmem>>, vector<1x128x128xbf16>
    %126 = vector.shape_cast %125 : vector<1x128x128xbf16> to vector<128x128xbf16>
    %cst_159 = arith.constant dense<0.000000e+00> : vector<256x128xf32>
    %127 = tpu.matmul %124, %126, %cst_159 {dimension_numbers = #tpu.dot_dimension_numbers<[1], [0], [0], [1], [0, 0, 1, 1], [], []>} : vector<256x128xbf16>, vector<128x128xbf16>, vector<256x128xf32> -> vector<256x128xf32>
    %c0_160 = arith.constant 0 : index
    %c0_161 = arith.constant 0 : index
    %128 = vector.load %arg15[%c0_160, %c0_161] : memref<256x128xf32, #tpu.memory_space<vmem>>, vector<256x128xf32>
    %129 = arith.addf %128, %127 : vector<256x128xf32>
    %c0_162 = arith.constant 0 : index
    %c0_163 = arith.constant 0 : index
    %130 = vector.load %arg15[%c0_162, %c0_163] : memref<256x128xf32, #tpu.memory_space<vmem>>, vector<256x128xf32>
    tpu.vector_store %arg15[%c0_162, %c0_163], %129 {strides = array<i32>} : memref<256x128xf32, #tpu.memory_space<vmem>>, vector<256x128xf32>,
    %c1_164 = arith.constant 1 : index
    %c0_165 = arith.constant 0 : index
    %c0_166 = arith.constant 0 : index
    %131 = vector.load %arg12[%c1_164, %c0_165, %c0_166] : memref<18x16x128xbf16, #tpu.memory_space<vmem>>, vector<16x16x128xbf16>
    %132 = vector.shape_cast %131 : vector<16x16x128xbf16> to vector<256x128xbf16>
    %c3_167 = arith.constant 3 : index
    %c0_168 = arith.constant 0 : index
    %c0_169 = arith.constant 0 : index
    %133 = vector.load %arg4[%c3_167, %c0_168, %c0_169] : memref<9x128x128xbf16, #tpu.memory_space<vmem>>, vector<1x128x128xbf16>
    %134 = vector.shape_cast %133 : vector<1x128x128xbf16> to vector<128x128xbf16>
    %cst_170 = arith.constant dense<0.000000e+00> : vector<256x128xf32>
    %135 = tpu.matmul %132, %134, %cst_170 {dimension_numbers = #tpu.dot_dimension_numbers<[1], [0], [0], [1], [0, 0, 1, 1], [], []>} : vector<256x128xbf16>, vector<128x128xbf16>, vector<256x128xf32> -> vector<256x128xf32>
    %c0_171 = arith.constant 0 : index
    %c0_172 = arith.constant 0 : index
    %136 = vector.load %arg15[%c0_171, %c0_172] : memref<256x128xf32, #tpu.memory_space<vmem>>, vector<256x128xf32>
    %137 = arith.addf %136, %135 : vector<256x128xf32>
    %c0_173 = arith.constant 0 : index
    %c0_174 = arith.constant 0 : index
    %138 = vector.load %arg15[%c0_173, %c0_174] : memref<256x128xf32, #tpu.memory_space<vmem>>, vector<256x128xf32>
    tpu.vector_store %arg15[%c0_173, %c0_174], %137 {strides = array<i32>} : memref<256x128xf32, #tpu.memory_space<vmem>>, vector<256x128xf32>,
    %c1_175 = arith.constant 1 : index
    %c0_176 = arith.constant 0 : index
    %c0_177 = arith.constant 0 : index
    %139 = vector.load %arg13[%c1_175, %c0_176, %c0_177] : memref<18x16x128xbf16, #tpu.memory_space<vmem>>, vector<16x16x128xbf16>
    %140 = vector.shape_cast %139 : vector<16x16x128xbf16> to vector<256x128xbf16>
    %c4_178 = arith.constant 4 : index
    %c0_179 = arith.constant 0 : index
    %c0_180 = arith.constant 0 : index
    %141 = vector.load %arg4[%c4_178, %c0_179, %c0_180] : memref<9x128x128xbf16, #tpu.memory_space<vmem>>, vector<1x128x128xbf16>
    %142 = vector.shape_cast %141 : vector<1x128x128xbf16> to vector<128x128xbf16>
    %cst_181 = arith.constant dense<0.000000e+00> : vector<256x128xf32>
    %143 = tpu.matmul %140, %142, %cst_181 {dimension_numbers = #tpu.dot_dimension_numbers<[1], [0], [0], [1], [0, 0, 1, 1], [], []>} : vector<256x128xbf16>, vector<128x128xbf16>, vector<256x128xf32> -> vector<256x128xf32>
    %c0_182 = arith.constant 0 : index
    %c0_183 = arith.constant 0 : index
    %144 = vector.load %arg15[%c0_182, %c0_183] : memref<256x128xf32, #tpu.memory_space<vmem>>, vector<256x128xf32>
    %145 = arith.addf %144, %143 : vector<256x128xf32>
    %c0_184 = arith.constant 0 : index
    %c0_185 = arith.constant 0 : index
    %146 = vector.load %arg15[%c0_184, %c0_185] : memref<256x128xf32, #tpu.memory_space<vmem>>, vector<256x128xf32>
    tpu.vector_store %arg15[%c0_184, %c0_185], %145 {strides = array<i32>} : memref<256x128xf32, #tpu.memory_space<vmem>>, vector<256x128xf32>,
    %c1_186 = arith.constant 1 : index
    %c0_187 = arith.constant 0 : index
    %c0_188 = arith.constant 0 : index
    %147 = vector.load %arg14[%c1_186, %c0_187, %c0_188] : memref<18x16x128xbf16, #tpu.memory_space<vmem>>, vector<16x16x128xbf16>
    %148 = vector.shape_cast %147 : vector<16x16x128xbf16> to vector<256x128xbf16>
    %c5_189 = arith.constant 5 : index
    %c0_190 = arith.constant 0 : index
    %c0_191 = arith.constant 0 : index
    %149 = vector.load %arg4[%c5_189, %c0_190, %c0_191] : memref<9x128x128xbf16, #tpu.memory_space<vmem>>, vector<1x128x128xbf16>
    %150 = vector.shape_cast %149 : vector<1x128x128xbf16> to vector<128x128xbf16>
    %cst_192 = arith.constant dense<0.000000e+00> : vector<256x128xf32>
    %151 = tpu.matmul %148, %150, %cst_192 {dimension_numbers = #tpu.dot_dimension_numbers<[1], [0], [0], [1], [0, 0, 1, 1], [], []>} : vector<256x128xbf16>, vector<128x128xbf16>, vector<256x128xf32> -> vector<256x128xf32>
    %c0_193 = arith.constant 0 : index
    %c0_194 = arith.constant 0 : index
    %152 = vector.load %arg15[%c0_193, %c0_194] : memref<256x128xf32, #tpu.memory_space<vmem>>, vector<256x128xf32>
    %153 = arith.addf %152, %151 : vector<256x128xf32>
    %c0_195 = arith.constant 0 : index
    %c0_196 = arith.constant 0 : index
    %154 = vector.load %arg15[%c0_195, %c0_196] : memref<256x128xf32, #tpu.memory_space<vmem>>, vector<256x128xf32>
    tpu.vector_store %arg15[%c0_195, %c0_196], %153 {strides = array<i32>} : memref<256x128xf32, #tpu.memory_space<vmem>>, vector<256x128xf32>,
    %c2_197 = arith.constant 2 : index
    %c0_198 = arith.constant 0 : index
    %c0_199 = arith.constant 0 : index
    %155 = vector.load %arg12[%c2_197, %c0_198, %c0_199] : memref<18x16x128xbf16, #tpu.memory_space<vmem>>, vector<16x16x128xbf16>
    %156 = vector.shape_cast %155 : vector<16x16x128xbf16> to vector<256x128xbf16>
    %c6_200 = arith.constant 6 : index
    %c0_201 = arith.constant 0 : index
    %c0_202 = arith.constant 0 : index
    %157 = vector.load %arg4[%c6_200, %c0_201, %c0_202] : memref<9x128x128xbf16, #tpu.memory_space<vmem>>, vector<1x128x128xbf16>
    %158 = vector.shape_cast %157 : vector<1x128x128xbf16> to vector<128x128xbf16>
    %cst_203 = arith.constant dense<0.000000e+00> : vector<256x128xf32>
    %159 = tpu.matmul %156, %158, %cst_203 {dimension_numbers = #tpu.dot_dimension_numbers<[1], [0], [0], [1], [0, 0, 1, 1], [], []>} : vector<256x128xbf16>, vector<128x128xbf16>, vector<256x128xf32> -> vector<256x128xf32>
    %c0_204 = arith.constant 0 : index
    %c0_205 = arith.constant 0 : index
    %160 = vector.load %arg15[%c0_204, %c0_205] : memref<256x128xf32, #tpu.memory_space<vmem>>, vector<256x128xf32>
    %161 = arith.addf %160, %159 : vector<256x128xf32>
    %c0_206 = arith.constant 0 : index
    %c0_207 = arith.constant 0 : index
    %162 = vector.load %arg15[%c0_206, %c0_207] : memref<256x128xf32, #tpu.memory_space<vmem>>, vector<256x128xf32>
    tpu.vector_store %arg15[%c0_206, %c0_207], %161 {strides = array<i32>} : memref<256x128xf32, #tpu.memory_space<vmem>>, vector<256x128xf32>,
    %c2_208 = arith.constant 2 : index
    %c0_209 = arith.constant 0 : index
    %c0_210 = arith.constant 0 : index
    %163 = vector.load %arg13[%c2_208, %c0_209, %c0_210] : memref<18x16x128xbf16, #tpu.memory_space<vmem>>, vector<16x16x128xbf16>
    %164 = vector.shape_cast %163 : vector<16x16x128xbf16> to vector<256x128xbf16>
    %c7_211 = arith.constant 7 : index
    %c0_212 = arith.constant 0 : index
    %c0_213 = arith.constant 0 : index
    %165 = vector.load %arg4[%c7_211, %c0_212, %c0_213] : memref<9x128x128xbf16, #tpu.memory_space<vmem>>, vector<1x128x128xbf16>
    %166 = vector.shape_cast %165 : vector<1x128x128xbf16> to vector<128x128xbf16>
    %cst_214 = arith.constant dense<0.000000e+00> : vector<256x128xf32>
    %167 = tpu.matmul %164, %166, %cst_214 {dimension_numbers = #tpu.dot_dimension_numbers<[1], [0], [0], [1], [0, 0, 1, 1], [], []>} : vector<256x128xbf16>, vector<128x128xbf16>, vector<256x128xf32> -> vector<256x128xf32>
    %c0_215 = arith.constant 0 : index
    %c0_216 = arith.constant 0 : index
    %168 = vector.load %arg15[%c0_215, %c0_216] : memref<256x128xf32, #tpu.memory_space<vmem>>, vector<256x128xf32>
    %169 = arith.addf %168, %167 : vector<256x128xf32>
    %c0_217 = arith.constant 0 : index
    %c0_218 = arith.constant 0 : index
    %170 = vector.load %arg15[%c0_217, %c0_218] : memref<256x128xf32, #tpu.memory_space<vmem>>, vector<256x128xf32>
    tpu.vector_store %arg15[%c0_217, %c0_218], %169 {strides = array<i32>} : memref<256x128xf32, #tpu.memory_space<vmem>>, vector<256x128xf32>,
    %c2_219 = arith.constant 2 : index
    %c0_220 = arith.constant 0 : index
    %c0_221 = arith.constant 0 : index
    %171 = vector.load %arg14[%c2_219, %c0_220, %c0_221] : memref<18x16x128xbf16, #tpu.memory_space<vmem>>, vector<16x16x128xbf16>
    %172 = vector.shape_cast %171 : vector<16x16x128xbf16> to vector<256x128xbf16>
    %c8_222 = arith.constant 8 : index
    %c0_223 = arith.constant 0 : index
    %c0_224 = arith.constant 0 : index
    %173 = vector.load %arg4[%c8_222, %c0_223, %c0_224] : memref<9x128x128xbf16, #tpu.memory_space<vmem>>, vector<1x128x128xbf16>
    %174 = vector.shape_cast %173 : vector<1x128x128xbf16> to vector<128x128xbf16>
    %cst_225 = arith.constant dense<0.000000e+00> : vector<256x128xf32>
    %175 = tpu.matmul %172, %174, %cst_225 {dimension_numbers = #tpu.dot_dimension_numbers<[1], [0], [0], [1], [0, 0, 1, 1], [], []>} : vector<256x128xbf16>, vector<128x128xbf16>, vector<256x128xf32> -> vector<256x128xf32>
    %c0_226 = arith.constant 0 : index
    %c0_227 = arith.constant 0 : index
    %176 = vector.load %arg15[%c0_226, %c0_227] : memref<256x128xf32, #tpu.memory_space<vmem>>, vector<256x128xf32>
    %177 = arith.addf %176, %175 : vector<256x128xf32>
    %c0_228 = arith.constant 0 : index
    %c0_229 = arith.constant 0 : index
    %178 = vector.load %arg15[%c0_228, %c0_229] : memref<256x128xf32, #tpu.memory_space<vmem>>, vector<256x128xf32>
    tpu.vector_store %arg15[%c0_228, %c0_229], %177 {strides = array<i32>} : memref<256x128xf32, #tpu.memory_space<vmem>>, vector<256x128xf32>,
    %c0_230 = arith.constant 0 : index
    %c0_231 = arith.constant 0 : index
    %179 = vector.load %arg15[%c0_230, %c0_231] : memref<256x128xf32, #tpu.memory_space<vmem>>, vector<256x128xf32>
    %c0_232 = arith.constant 0 : index
    %c0_233 = arith.constant 0 : index
    %180 = vector.load %arg5[%c0_232, %c0_233] : memref<1x128xf32, #tpu.memory_space<vmem>>, vector<1x128xf32>
    %181 = vector.shape_cast %180 : vector<1x128xf32> to vector<128xf32>
    %182 = vector.shape_cast %181 : vector<128xf32> to vector<1x128xf32>
    %183 = vector.broadcast %182 : vector<1x128xf32> to vector<256x128xf32>
    %184 = arith.addf %179, %183 : vector<256x128xf32>
    %cst_234 = arith.constant 0.000000e+00 : f32
    %185 = vector.broadcast %cst_234 : f32 to vector<256x128xf32>
    %186 = arith.maximumf %184, %185 : vector<256x128xf32>
    %187 = vector.shape_cast %186 : vector<256x128xf32> to vector<16x16x128xf32>
    %188 = arith.truncf %187 : vector<16x16x128xf32> to vector<16x16x128xbf16>
    %c1_235 = arith.constant 1 : index
    %c0_236 = arith.constant 0 : index
    %c0_237 = arith.constant 0 : index
    %189 = vector.load %arg13[%c1_235, %c0_236, %c0_237] : memref<18x16x128xbf16, #tpu.memory_space<vmem>>, vector<16x16x128xbf16>
    tpu.vector_store %arg13[%c1_235, %c0_236, %c0_237], %188 {strides = array<i32>} : memref<18x16x128xbf16, #tpu.memory_space<vmem>>, vector<16x16x128xbf16>,
    %190 = vector.extract_strided_slice %187 {offsets = [0, 0, 0], sizes = [16, 15, 128], strides = [1, 1, 1]} : vector<16x16x128xf32> to vector<16x15x128xf32>
    %191 = tpu.concatenate %7, %190 in 1 : vector<16x1x128xf32>, vector<16x15x128xf32> -> vector<16x16x128xf32>
    %192 = arith.truncf %191 : vector<16x16x128xf32> to vector<16x16x128xbf16>
    %c1_238 = arith.constant 1 : index
    %c0_239 = arith.constant 0 : index
    %c0_240 = arith.constant 0 : index
    %193 = vector.load %arg12[%c1_238, %c0_239, %c0_240] : memref<18x16x128xbf16, #tpu.memory_space<vmem>>, vector<16x16x128xbf16>
    tpu.vector_store %arg12[%c1_238, %c0_239, %c0_240], %192 {strides = array<i32>} : memref<18x16x128xbf16, #tpu.memory_space<vmem>>, vector<16x16x128xbf16>,
    %194 = vector.extract_strided_slice %187 {offsets = [0, 1, 0], sizes = [16, 15, 128], strides = [1, 1, 1]} : vector<16x16x128xf32> to vector<16x15x128xf32>
    %195 = tpu.concatenate %194, %7 in 1 : vector<16x15x128xf32>, vector<16x1x128xf32> -> vector<16x16x128xf32>
    %196 = arith.truncf %195 : vector<16x16x128xf32> to vector<16x16x128xbf16>
    %c1_241 = arith.constant 1 : index
    %c0_242 = arith.constant 0 : index
    %c0_243 = arith.constant 0 : index
    %197 = vector.load %arg14[%c1_241, %c0_242, %c0_243] : memref<18x16x128xbf16, #tpu.memory_space<vmem>>, vector<16x16x128xbf16>
    tpu.vector_store %arg14[%c1_241, %c0_242, %c0_243], %196 {strides = array<i32>} : memref<18x16x128xbf16, #tpu.memory_space<vmem>>, vector<16x16x128xbf16>,
    %c0_244 = arith.constant 0 : index
    %c0_245 = arith.constant 0 : index
    %c0_246 = arith.constant 0 : index
    %198 = vector.load %arg12[%c0_244, %c0_245, %c0_246] : memref<18x16x128xbf16, #tpu.memory_space<vmem>>, vector<16x16x128xbf16>
    %199 = vector.shape_cast %198 : vector<16x16x128xbf16> to vector<256x128xbf16>
    %c0_247 = arith.constant 0 : index
    %c0_248 = arith.constant 0 : index
    %c0_249 = arith.constant 0 : index
    %200 = vector.load %arg6[%c0_247, %c0_248, %c0_249] : memref<9x128x128xbf16, #tpu.memory_space<vmem>>, vector<1x128x128xbf16>
    %201 = vector.shape_cast %200 : vector<1x128x128xbf16> to vector<128x128xbf16>
    %cst_250 = arith.constant dense<0.000000e+00> : vector<256x128xf32>
    %202 = tpu.matmul %199, %201, %cst_250 {dimension_numbers = #tpu.dot_dimension_numbers<[1], [0], [0], [1], [0, 0, 1, 1], [], []>} : vector<256x128xbf16>, vector<128x128xbf16>, vector<256x128xf32> -> vector<256x128xf32>
    %c0_251 = arith.constant 0 : index
    %c0_252 = arith.constant 0 : index
    %203 = vector.load %arg15[%c0_251, %c0_252] : memref<256x128xf32, #tpu.memory_space<vmem>>, vector<256x128xf32>
    tpu.vector_store %arg15[%c0_251, %c0_252], %202 {strides = array<i32>} : memref<256x128xf32, #tpu.memory_space<vmem>>, vector<256x128xf32>,
    %c0_253 = arith.constant 0 : index
    %c0_254 = arith.constant 0 : index
    %c0_255 = arith.constant 0 : index
    %204 = vector.load %arg13[%c0_253, %c0_254, %c0_255] : memref<18x16x128xbf16, #tpu.memory_space<vmem>>, vector<16x16x128xbf16>
    %205 = vector.shape_cast %204 : vector<16x16x128xbf16> to vector<256x128xbf16>
    %c1_256 = arith.constant 1 : index
    %c0_257 = arith.constant 0 : index
    %c0_258 = arith.constant 0 : index
    %206 = vector.load %arg6[%c1_256, %c0_257, %c0_258] : memref<9x128x128xbf16, #tpu.memory_space<vmem>>, vector<1x128x128xbf16>
    %207 = vector.shape_cast %206 : vector<1x128x128xbf16> to vector<128x128xbf16>
    %cst_259 = arith.constant dense<0.000000e+00> : vector<256x128xf32>
    %208 = tpu.matmul %205, %207, %cst_259 {dimension_numbers = #tpu.dot_dimension_numbers<[1], [0], [0], [1], [0, 0, 1, 1], [], []>} : vector<256x128xbf16>, vector<128x128xbf16>, vector<256x128xf32> -> vector<256x128xf32>
    %c0_260 = arith.constant 0 : index
    %c0_261 = arith.constant 0 : index
    %209 = vector.load %arg15[%c0_260, %c0_261] : memref<256x128xf32, #tpu.memory_space<vmem>>, vector<256x128xf32>
    %210 = arith.addf %209, %208 : vector<256x128xf32>
    %c0_262 = arith.constant 0 : index
    %c0_263 = arith.constant 0 : index
    %211 = vector.load %arg15[%c0_262, %c0_263] : memref<256x128xf32, #tpu.memory_space<vmem>>, vector<256x128xf32>
    tpu.vector_store %arg15[%c0_262, %c0_263], %210 {strides = array<i32>} : memref<256x128xf32, #tpu.memory_space<vmem>>, vector<256x128xf32>,
    %c0_264 = arith.constant 0 : index
    %c0_265 = arith.constant 0 : index
    %c0_266 = arith.constant 0 : index
    %212 = vector.load %arg14[%c0_264, %c0_265, %c0_266] : memref<18x16x128xbf16, #tpu.memory_space<vmem>>, vector<16x16x128xbf16>
    %213 = vector.shape_cast %212 : vector<16x16x128xbf16> to vector<256x128xbf16>
    %c2_267 = arith.constant 2 : index
    %c0_268 = arith.constant 0 : index
    %c0_269 = arith.constant 0 : index
    %214 = vector.load %arg6[%c2_267, %c0_268, %c0_269] : memref<9x128x128xbf16, #tpu.memory_space<vmem>>, vector<1x128x128xbf16>
    %215 = vector.shape_cast %214 : vector<1x128x128xbf16> to vector<128x128xbf16>
    %cst_270 = arith.constant dense<0.000000e+00> : vector<256x128xf32>
    %216 = tpu.matmul %213, %215, %cst_270 {dimension_numbers = #tpu.dot_dimension_numbers<[1], [0], [0], [1], [0, 0, 1, 1], [], []>} : vector<256x128xbf16>, vector<128x128xbf16>, vector<256x128xf32> -> vector<256x128xf32>
    %c0_271 = arith.constant 0 : index
    %c0_272 = arith.constant 0 : index
    %217 = vector.load %arg15[%c0_271, %c0_272] : memref<256x128xf32, #tpu.memory_space<vmem>>, vector<256x128xf32>
    %218 = arith.addf %217, %216 : vector<256x128xf32>
    %c0_273 = arith.constant 0 : index
    %c0_274 = arith.constant 0 : index
    %219 = vector.load %arg15[%c0_273, %c0_274] : memref<256x128xf32, #tpu.memory_space<vmem>>, vector<256x128xf32>
    tpu.vector_store %arg15[%c0_273, %c0_274], %218 {strides = array<i32>} : memref<256x128xf32, #tpu.memory_space<vmem>>, vector<256x128xf32>,
    %c1_275 = arith.constant 1 : index
    %c0_276 = arith.constant 0 : index
    %c0_277 = arith.constant 0 : index
    %220 = vector.load %arg12[%c1_275, %c0_276, %c0_277] : memref<18x16x128xbf16, #tpu.memory_space<vmem>>, vector<16x16x128xbf16>
    %221 = vector.shape_cast %220 : vector<16x16x128xbf16> to vector<256x128xbf16>
    %c3_278 = arith.constant 3 : index
    %c0_279 = arith.constant 0 : index
    %c0_280 = arith.constant 0 : index
    %222 = vector.load %arg6[%c3_278, %c0_279, %c0_280] : memref<9x128x128xbf16, #tpu.memory_space<vmem>>, vector<1x128x128xbf16>
    %223 = vector.shape_cast %222 : vector<1x128x128xbf16> to vector<128x128xbf16>
    %cst_281 = arith.constant dense<0.000000e+00> : vector<256x128xf32>
    %224 = tpu.matmul %221, %223, %cst_281 {dimension_numbers = #tpu.dot_dimension_numbers<[1], [0], [0], [1], [0, 0, 1, 1], [], []>} : vector<256x128xbf16>, vector<128x128xbf16>, vector<256x128xf32> -> vector<256x128xf32>
    %c0_282 = arith.constant 0 : index
    %c0_283 = arith.constant 0 : index
    %225 = vector.load %arg15[%c0_282, %c0_283] : memref<256x128xf32, #tpu.memory_space<vmem>>, vector<256x128xf32>
    %226 = arith.addf %225, %224 : vector<256x128xf32>
    %c0_284 = arith.constant 0 : index
    %c0_285 = arith.constant 0 : index
    %227 = vector.load %arg15[%c0_284, %c0_285] : memref<256x128xf32, #tpu.memory_space<vmem>>, vector<256x128xf32>
    tpu.vector_store %arg15[%c0_284, %c0_285], %226 {strides = array<i32>} : memref<256x128xf32, #tpu.memory_space<vmem>>, vector<256x128xf32>,
    %c1_286 = arith.constant 1 : index
    %c0_287 = arith.constant 0 : index
    %c0_288 = arith.constant 0 : index
    %228 = vector.load %arg13[%c1_286, %c0_287, %c0_288] : memref<18x16x128xbf16, #tpu.memory_space<vmem>>, vector<16x16x128xbf16>
    %229 = vector.shape_cast %228 : vector<16x16x128xbf16> to vector<256x128xbf16>
    %c4_289 = arith.constant 4 : index
    %c0_290 = arith.constant 0 : index
    %c0_291 = arith.constant 0 : index
    %230 = vector.load %arg6[%c4_289, %c0_290, %c0_291] : memref<9x128x128xbf16, #tpu.memory_space<vmem>>, vector<1x128x128xbf16>
    %231 = vector.shape_cast %230 : vector<1x128x128xbf16> to vector<128x128xbf16>
    %cst_292 = arith.constant dense<0.000000e+00> : vector<256x128xf32>
    %232 = tpu.matmul %229, %231, %cst_292 {dimension_numbers = #tpu.dot_dimension_numbers<[1], [0], [0], [1], [0, 0, 1, 1], [], []>} : vector<256x128xbf16>, vector<128x128xbf16>, vector<256x128xf32> -> vector<256x128xf32>
    %c0_293 = arith.constant 0 : index
    %c0_294 = arith.constant 0 : index
    %233 = vector.load %arg15[%c0_293, %c0_294] : memref<256x128xf32, #tpu.memory_space<vmem>>, vector<256x128xf32>
    %234 = arith.addf %233, %232 : vector<256x128xf32>
    %c0_295 = arith.constant 0 : index
    %c0_296 = arith.constant 0 : index
    %235 = vector.load %arg15[%c0_295, %c0_296] : memref<256x128xf32, #tpu.memory_space<vmem>>, vector<256x128xf32>
    tpu.vector_store %arg15[%c0_295, %c0_296], %234 {strides = array<i32>} : memref<256x128xf32, #tpu.memory_space<vmem>>, vector<256x128xf32>,
    %c1_297 = arith.constant 1 : index
    %c0_298 = arith.constant 0 : index
    %c0_299 = arith.constant 0 : index
    %236 = vector.load %arg14[%c1_297, %c0_298, %c0_299] : memref<18x16x128xbf16, #tpu.memory_space<vmem>>, vector<16x16x128xbf16>
    %237 = vector.shape_cast %236 : vector<16x16x128xbf16> to vector<256x128xbf16>
    %c5_300 = arith.constant 5 : index
    %c0_301 = arith.constant 0 : index
    %c0_302 = arith.constant 0 : index
    %238 = vector.load %arg6[%c5_300, %c0_301, %c0_302] : memref<9x128x128xbf16, #tpu.memory_space<vmem>>, vector<1x128x128xbf16>
    %239 = vector.shape_cast %238 : vector<1x128x128xbf16> to vector<128x128xbf16>
    %cst_303 = arith.constant dense<0.000000e+00> : vector<256x128xf32>
    %240 = tpu.matmul %237, %239, %cst_303 {dimension_numbers = #tpu.dot_dimension_numbers<[1], [0], [0], [1], [0, 0, 1, 1], [], []>} : vector<256x128xbf16>, vector<128x128xbf16>, vector<256x128xf32> -> vector<256x128xf32>
    %c0_304 = arith.constant 0 : index
    %c0_305 = arith.constant 0 : index
    %241 = vector.load %arg15[%c0_304, %c0_305] : memref<256x128xf32, #tpu.memory_space<vmem>>, vector<256x128xf32>
    %242 = arith.addf %241, %240 : vector<256x128xf32>
    %c0_306 = arith.constant 0 : index
    %c0_307 = arith.constant 0 : index
    %243 = vector.load %arg15[%c0_306, %c0_307] : memref<256x128xf32, #tpu.memory_space<vmem>>, vector<256x128xf32>
    tpu.vector_store %arg15[%c0_306, %c0_307], %242 {strides = array<i32>} : memref<256x128xf32, #tpu.memory_space<vmem>>, vector<256x128xf32>,
    %c2_308 = arith.constant 2 : index
    %c0_309 = arith.constant 0 : index
    %c0_310 = arith.constant 0 : index
    %244 = vector.load %arg12[%c2_308, %c0_309, %c0_310] : memref<18x16x128xbf16, #tpu.memory_space<vmem>>, vector<16x16x128xbf16>
    %245 = vector.shape_cast %244 : vector<16x16x128xbf16> to vector<256x128xbf16>
    %c6_311 = arith.constant 6 : index
    %c0_312 = arith.constant 0 : index
    %c0_313 = arith.constant 0 : index
    %246 = vector.load %arg6[%c6_311, %c0_312, %c0_313] : memref<9x128x128xbf16, #tpu.memory_space<vmem>>, vector<1x128x128xbf16>
    %247 = vector.shape_cast %246 : vector<1x128x128xbf16> to vector<128x128xbf16>
    %cst_314 = arith.constant dense<0.000000e+00> : vector<256x128xf32>
    %248 = tpu.matmul %245, %247, %cst_314 {dimension_numbers = #tpu.dot_dimension_numbers<[1], [0], [0], [1], [0, 0, 1, 1], [], []>} : vector<256x128xbf16>, vector<128x128xbf16>, vector<256x128xf32> -> vector<256x128xf32>
    %c0_315 = arith.constant 0 : index
    %c0_316 = arith.constant 0 : index
    %249 = vector.load %arg15[%c0_315, %c0_316] : memref<256x128xf32, #tpu.memory_space<vmem>>, vector<256x128xf32>
    %250 = arith.addf %249, %248 : vector<256x128xf32>
    %c0_317 = arith.constant 0 : index
    %c0_318 = arith.constant 0 : index
    %251 = vector.load %arg15[%c0_317, %c0_318] : memref<256x128xf32, #tpu.memory_space<vmem>>, vector<256x128xf32>
    tpu.vector_store %arg15[%c0_317, %c0_318], %250 {strides = array<i32>} : memref<256x128xf32, #tpu.memory_space<vmem>>, vector<256x128xf32>,
    %c2_319 = arith.constant 2 : index
    %c0_320 = arith.constant 0 : index
    %c0_321 = arith.constant 0 : index
    %252 = vector.load %arg13[%c2_319, %c0_320, %c0_321] : memref<18x16x128xbf16, #tpu.memory_space<vmem>>, vector<16x16x128xbf16>
    %253 = vector.shape_cast %252 : vector<16x16x128xbf16> to vector<256x128xbf16>
    %c7_322 = arith.constant 7 : index
    %c0_323 = arith.constant 0 : index
    %c0_324 = arith.constant 0 : index
    %254 = vector.load %arg6[%c7_322, %c0_323, %c0_324] : memref<9x128x128xbf16, #tpu.memory_space<vmem>>, vector<1x128x128xbf16>
    %255 = vector.shape_cast %254 : vector<1x128x128xbf16> to vector<128x128xbf16>
    %cst_325 = arith.constant dense<0.000000e+00> : vector<256x128xf32>
    %256 = tpu.matmul %253, %255, %cst_325 {dimension_numbers = #tpu.dot_dimension_numbers<[1], [0], [0], [1], [0, 0, 1, 1], [], []>} : vector<256x128xbf16>, vector<128x128xbf16>, vector<256x128xf32> -> vector<256x128xf32>
    %c0_326 = arith.constant 0 : index
    %c0_327 = arith.constant 0 : index
    %257 = vector.load %arg15[%c0_326, %c0_327] : memref<256x128xf32, #tpu.memory_space<vmem>>, vector<256x128xf32>
    %258 = arith.addf %257, %256 : vector<256x128xf32>
    %c0_328 = arith.constant 0 : index
    %c0_329 = arith.constant 0 : index
    %259 = vector.load %arg15[%c0_328, %c0_329] : memref<256x128xf32, #tpu.memory_space<vmem>>, vector<256x128xf32>
    tpu.vector_store %arg15[%c0_328, %c0_329], %258 {strides = array<i32>} : memref<256x128xf32, #tpu.memory_space<vmem>>, vector<256x128xf32>,
    %c2_330 = arith.constant 2 : index
    %c0_331 = arith.constant 0 : index
    %c0_332 = arith.constant 0 : index
    %260 = vector.load %arg14[%c2_330, %c0_331, %c0_332] : memref<18x16x128xbf16, #tpu.memory_space<vmem>>, vector<16x16x128xbf16>
    %261 = vector.shape_cast %260 : vector<16x16x128xbf16> to vector<256x128xbf16>
    %c8_333 = arith.constant 8 : index
    %c0_334 = arith.constant 0 : index
    %c0_335 = arith.constant 0 : index
    %262 = vector.load %arg6[%c8_333, %c0_334, %c0_335] : memref<9x128x128xbf16, #tpu.memory_space<vmem>>, vector<1x128x128xbf16>
    %263 = vector.shape_cast %262 : vector<1x128x128xbf16> to vector<128x128xbf16>
    %cst_336 = arith.constant dense<0.000000e+00> : vector<256x128xf32>
    %264 = tpu.matmul %261, %263, %cst_336 {dimension_numbers = #tpu.dot_dimension_numbers<[1], [0], [0], [1], [0, 0, 1, 1], [], []>} : vector<256x128xbf16>, vector<128x128xbf16>, vector<256x128xf32> -> vector<256x128xf32>
    %c0_337 = arith.constant 0 : index
    %c0_338 = arith.constant 0 : index
    %265 = vector.load %arg15[%c0_337, %c0_338] : memref<256x128xf32, #tpu.memory_space<vmem>>, vector<256x128xf32>
    %266 = arith.addf %265, %264 : vector<256x128xf32>
    %c0_339 = arith.constant 0 : index
    %c0_340 = arith.constant 0 : index
    %267 = vector.load %arg15[%c0_339, %c0_340] : memref<256x128xf32, #tpu.memory_space<vmem>>, vector<256x128xf32>
    tpu.vector_store %arg15[%c0_339, %c0_340], %266 {strides = array<i32>} : memref<256x128xf32, #tpu.memory_space<vmem>>, vector<256x128xf32>,
    %c0_341 = arith.constant 0 : index
    %c0_342 = arith.constant 0 : index
    %268 = vector.load %arg15[%c0_341, %c0_342] : memref<256x128xf32, #tpu.memory_space<vmem>>, vector<256x128xf32>
    %c0_343 = arith.constant 0 : index
    %c0_344 = arith.constant 0 : index
    %269 = vector.load %arg7[%c0_343, %c0_344] : memref<1x128xf32, #tpu.memory_space<vmem>>, vector<1x128xf32>
    %270 = vector.shape_cast %269 : vector<1x128xf32> to vector<128xf32>
    %271 = vector.shape_cast %270 : vector<128xf32> to vector<1x128xf32>
    %272 = vector.broadcast %271 : vector<1x128xf32> to vector<256x128xf32>
    %273 = arith.addf %268, %272 : vector<256x128xf32>
    %cst_345 = arith.constant 0.000000e+00 : f32
    %274 = vector.broadcast %cst_345 : f32 to vector<256x128xf32>
    %275 = arith.maximumf %273, %274 : vector<256x128xf32>
    %276 = arith.truncf %275 : vector<256x128xf32> to vector<256x128xbf16>
    %277 = vector.shape_cast %276 : vector<256x128xbf16> to vector<1x16x16x128xbf16>
    %c0_346 = arith.constant 0 : index
    %c0_347 = arith.constant 0 : index
    %c0_348 = arith.constant 0 : index
    %c0_349 = arith.constant 0 : index
    %278 = vector.load %arg11[%c0_346, %c0_347, %c0_348, %c0_349] : memref<1x16x16x128xbf16, #tpu.memory_space<vmem>>, vector<1x16x16x128xbf16>
    tpu.vector_store %arg11[%c0_346, %c0_347, %c0_348, %c0_349], %277 {strides = array<i32>} : memref<1x16x16x128xbf16, #tpu.memory_space<vmem>>, vector<1x16x16x128xbf16>,
    %cst_350 = arith.constant dense<0.000000e+00> : vector<128xf32>
    %279 = vector.multi_reduction <add>, %275, %cst_350 [0] : vector<256x128xf32> to vector<128xf32>
    %280 = vector.shape_cast %279 : vector<128xf32> to vector<1x128xf32>
    %cst_351 = arith.constant 3.906250e-03 : f32
    %281 = vector.broadcast %cst_351 : f32 to vector<1x128xf32>
    %282 = arith.mulf %280, %281 : vector<1x128xf32>
    %c0_352 = arith.constant 0 : index
    %c0_353 = arith.constant 0 : index
    %283 = vector.load %arg8[%c0_352, %c0_353] : memref<128x128xf32, #tpu.memory_space<vmem>>, vector<128x128xf32>
    %cst_354 = arith.constant dense<0.000000e+00> : vector<1x128xf32>
    %284 = tpu.matmul %282, %283, %cst_354 {dimension_numbers = #tpu.dot_dimension_numbers<[1], [0], [0], [1], [0, 0, 1, 1], [], []>} : vector<1x128xf32>, vector<128x128xf32>, vector<1x128xf32> -> vector<1x128xf32>
    %c0_355 = arith.constant 0 : index
    %c0_356 = arith.constant 0 : index
    %285 = vector.load %arg9[%c0_355, %c0_356] : memref<1x128xf32, #tpu.memory_space<vmem>>, vector<1x128xf32>
    %286 = vector.shape_cast %285 : vector<1x128xf32> to vector<128xf32>
    %287 = vector.shape_cast %286 : vector<128xf32> to vector<1x128xf32>
    %288 = arith.addf %284, %287 : vector<1x128xf32>
    %289 = math.absf %288 : vector<1x128xf32>
    %cst_357 = arith.constant 0.000000e+00 : f32
    %290 = vector.broadcast %cst_357 : f32 to vector<1x128xf32>
    %291 = arith.subf %290, %289 : vector<1x128xf32>
    %292 = math.exp %291 : vector<1x128xf32>
    %cst_358 = arith.constant 0.000000e+00 : f32
    %293 = vector.broadcast %cst_358 : f32 to vector<1x128xf32>
    %294 = arith.cmpf oge, %288, %293 : vector<1x128xf32>
    %cst_359 = arith.constant 1.000000e+00 : f32
    %295 = vector.broadcast %cst_359 : f32 to vector<1x128xf32>
    %296 = arith.addf %295, %292 : vector<1x128xf32>
    %cst_360 = arith.constant 1.000000e+00 : f32
    %297 = vector.broadcast %cst_360 : f32 to vector<1x128xf32>
    %298 = arith.divf %297, %296 : vector<1x128xf32>
    %cst_361 = arith.constant 1.000000e+00 : f32
    %299 = vector.broadcast %cst_361 : f32 to vector<1x128xf32>
    %300 = arith.addf %299, %292 : vector<1x128xf32>
    %301 = arith.divf %292, %300 : vector<1x128xf32>
    %302 = arith.select %294, %298, %301 : vector<1x128xi1>, vector<1x128xf32>
    %303 = vector.shape_cast %302 : vector<1x128xf32> to vector<1x1x128xf32>
    %c0_362 = arith.constant 0 : index
    %c0_363 = arith.constant 0 : index
    %c0_364 = arith.constant 0 : index
    %304 = vector.load %arg10[%c0_362, %c0_363, %c0_364] : memref<1x1x128xf32, #tpu.memory_space<vmem>>, vector<1x1x128xf32>
    tpu.vector_store %arg10[%c0_362, %c0_363, %c0_364], %303 {strides = array<i32>} : memref<1x1x128xf32, #tpu.memory_space<vmem>>, vector<1x1x128xf32>,
    return
  }
  func.func @transform_0(%arg0: i32) -> (i32, i32, i32, i32) {
    %c0_i32 = arith.constant 0 : i32
    %c0_i32_0 = arith.constant 0 : i32
    %c0_i32_1 = arith.constant 0 : i32
    %c0_i32_2 = arith.constant 0 : i32
    return %arg0, %c0_i32, %c0_i32_0, %c0_i32_1 : i32, i32, i32, i32
  }
  func.func @transform_1(%arg0: i32) -> (i32, i32, i32) {
    %c0_i32 = arith.constant 0 : i32
    %c0_i32_0 = arith.constant 0 : i32
    %c0_i32_1 = arith.constant 0 : i32
    %c0_i32_2 = arith.constant 0 : i32
    return %c0_i32, %c0_i32_0, %c0_i32_1 : i32, i32, i32
  }
  func.func @transform_2(%arg0: i32) -> (i32, i32) {
    %c0_i32 = arith.constant 0 : i32
    %c0_i32_0 = arith.constant 0 : i32
    %c0_i32_1 = arith.constant 0 : i32
    return %c0_i32, %c0_i32_0 : i32, i32
  }
  func.func @transform_3(%arg0: i32) -> (i32, i32, i32) {
    %c0_i32 = arith.constant 0 : i32
    %c0_i32_0 = arith.constant 0 : i32
    %c0_i32_1 = arith.constant 0 : i32
    %c0_i32_2 = arith.constant 0 : i32
    return %c0_i32, %c0_i32_0, %c0_i32_1 : i32, i32, i32
  }
  func.func @transform_4(%arg0: i32) -> (i32, i32) {
    %c0_i32 = arith.constant 0 : i32
    %c0_i32_0 = arith.constant 0 : i32
    %c0_i32_1 = arith.constant 0 : i32
    return %c0_i32, %c0_i32_0 : i32, i32
  }
  func.func @transform_5(%arg0: i32) -> (i32, i32, i32) {
    %c0_i32 = arith.constant 0 : i32
    %c0_i32_0 = arith.constant 0 : i32
    %c0_i32_1 = arith.constant 0 : i32
    %c0_i32_2 = arith.constant 0 : i32
    return %c0_i32, %c0_i32_0, %c0_i32_1 : i32, i32, i32
  }
  func.func @transform_6(%arg0: i32) -> (i32, i32) {
    %c0_i32 = arith.constant 0 : i32
    %c0_i32_0 = arith.constant 0 : i32
    %c0_i32_1 = arith.constant 0 : i32
    return %c0_i32, %c0_i32_0 : i32, i32
  }
  func.func @transform_7(%arg0: i32) -> (i32, i32) {
    %c0_i32 = arith.constant 0 : i32
    %c0_i32_0 = arith.constant 0 : i32
    %c0_i32_1 = arith.constant 0 : i32
    return %c0_i32, %c0_i32_0 : i32, i32
  }
  func.func @transform_8(%arg0: i32) -> (i32, i32) {
    %c0_i32 = arith.constant 0 : i32
    %c0_i32_0 = arith.constant 0 : i32
    %c0_i32_1 = arith.constant 0 : i32
    return %c0_i32, %c0_i32_0 : i32, i32
  }
  func.func @transform_9(%arg0: i32) -> (i32, i32, i32) {
    %c0_i32 = arith.constant 0 : i32
    %c0_i32_0 = arith.constant 0 : i32
    %c0_i32_1 = arith.constant 0 : i32
    return %arg0, %c0_i32, %c0_i32_0 : i32, i32, i32
  }
  func.func @transform_10(%arg0: i32) -> (i32, i32, i32, i32) {
    %c0_i32 = arith.constant 0 : i32
    %c0_i32_0 = arith.constant 0 : i32
    %c0_i32_1 = arith.constant 0 : i32
    %c0_i32_2 = arith.constant 0 : i32
    return %arg0, %c0_i32, %c0_i32_0, %c0_i32_1 : i32, i32, i32, i32
  }
}

</mosaic_0001>

<bundles_post_ra>
// kernel: tpu_custom_call.1
= control target key start
LH: loop header
LB: loop body
LE: loop exit
PB: predicated region body
PF: predicated region fallthrough
CT: control target
= control target key end

     0   :  { %s18070_s0 = inlined_call_operand.hbm [shape: f32[2,16,16,128], index: 0, kind: input, shape index: {}]   ;;  %s18071_s1 = inlined_call_operand.hbm [shape: bf16[9,128,128], index: 1, kind: input, shape index: {}]   ;;  %s18072_s2 = inlined_call_operand.vmem [shape: f32[1,128], index: 2, kind: input, shape index: {}]   ;;  %s18073_s3 = inlined_call_operand.hbm [shape: bf16[9,128,128], index: 3, kind: input, shape index: {}]   ;;  %s18074_s4 = inlined_call_operand.vmem [shape: f32[1,128], index: 4, kind: input, shape index: {}]   ;;  %s18075_s5 = inlined_call_operand.hbm [shape: bf16[9,128,128], index: 5, kind: input, shape index: {}]   ;;  %s18076_s6 = inlined_call_operand.vmem [shape: f32[1,128], index: 6, kind: input, shape index: {}]   ;;  %s18077_s7 = inlined_call_operand.hbm [shape: f32[128,128], index: 7, kind: input, shape index: {}]   ;;  %s18078_s8 = inlined_call_operand.vmem [shape: f32[1,128], index: 8, kind: input, shape index: {}]   ;;  %s18079_s9 = inlined_call_operand.hbm [shape: f32[2,1,128], index: 9, kind: output, shape index: {0}]   ;;  %s18080_s10 = inlined_call_operand.hbm [shape: bf16[2,16,16,128], index: 10, kind: output, shape index: {1}]  }
   0x1   :  { %18114 = sst [smem:[#allocation32_spill]] %s18078_s8 }
   0x2   :  { %18115 = sst [smem:[#allocation33_spill]] %s18079_s9 }
   0x3   :  { %16 = vsyncpa [#allocation7], 0 }
   0x4   :  { %18 = vsyncpa [#allocation7 + $0x1], 0 }
   0x5   :  { %19 = vsyncpa [#allocation10], 0 }
   0x6   :  { %20 = vsyncpa [#allocation13], 0 }
   0x7   :  { %21 = vsyncpa [#allocation8], 0 }
   0x8   :  { %23 = vsyncpa [#allocation8 + $0x1], 0 }
   0x9   :  { %24 = vsyncpa [#allocation17], 0 }
   0xa   :  { %26 = vsyncpa [#allocation17 + $0x1], 0  ;;  %s15989_s13 = smov 0   ;;  %s15991_s14 = smov 0  }
   0xb   :  { %s15993_s15 = smov 0   ;;  %s15995_s16 = smov 0  }
   0xc LB: > { %18116 = sst [smem:[#allocation23_spill]] %s15902_s13  ;;  %s16010_s17 = sadd.s32 4294967295, %s15914_s16   ;;  %s15914_s16 = sphi %s15995_s16, %s18176_s16   ;;  %s15910_s15 = sphi %s15993_s15, %s18175_s15   ;;  %s15906_s14 = sphi %s15991_s14, %s18174_s14   ;;  %s15902_s13 = sphi %s15989_s13, %s18173_s13  }
   0xd   : > { %s11162_s18 = sadd.s32 4294967294, %s15914_s16   ;;  %p52_p0 = scmp.ne.s32.totalorder %s15906_s14, %s15902_s13 }
   0xe   : > { %p18081_p1 = scmp.eq.s32.totalorder %s16010_s17, 0  ;;  %p250_p3 = scmp.eq.s32.totalorder %s11162_s18, 1 }
   0xf   : > { %p11163_p5 = scmp.ge.s32.totalorder %s15914_s16, 1  ;;  %p283_p7 = scmp.lt.s32.totalorder %s15914_s16, 3 }
  0x10   : > { %p16019_p4 = por %p18081_p1, %p52_p0  ;;  %p16024_p6 = por %p250_p3, %p52_p0 }
  0x11   : > { %p16029_p8 = pnand %p11163_p5, %p283_p7  ;;  %s15916_s22 = smov [#allocation9]  }
  0x12   : > { %s18117_s19 = scalar_select %p16019_p4, 1, 0 }
  0x13   : > { %s18118_s20 = scalar_select %p16024_p6, 1, 0 }
  0x14   : > { %s18120_s21 = scalar_select %p16029_p8, 1, 0 }
  0x15   : > { %18119 = sst [smem:[#allocation24_spill]] %s18118_s20  ;;  %s295_s23 = sshll.u32 %s15916_s22, 4  ;;  %s16033_s23 = int_to_ptr.vmem [resolvable:$true] %s295_s23 }
  0x16   : > { %p15357_p9 = pneg %p16029_p8  ;;  %s15917_s25 = smov [#allocation12]  }
  0x17   : > { %s327_s26 = sshll.u32 %s15917_s25, 4  ;;  %s15918_s27 = smov [#allocation11]   ;;  %s16044_s26 = int_to_ptr.vmem [resolvable:$true] %s327_s26 }
  0x18   : > { %p16040_p11 = pnand %p15357_p9, %p18081_p1  ;;  %s16046_s28 = sshll.u32 %s15918_s27, 4  ;;  %s312_s28 = int_to_ptr.vmem [resolvable:$true] %s16046_s28 }
  0x19   : > { %s15666_s11 = scalar_lea.hbm %s18071_s1, 9216 }
  0x1a   : > { %p15667_p12 = scmp.ne.s32.totalorder %s18071_s1, %s15666_s11  ;;  %p16056_p13 = pneg %p16040_p11 }
  0x1b   : > { %p15673_p5 = scmp.lt.u32.totalorder %s15666_s11, %s18071_s1 }
  0x1c   : > { %p15669_p0 = pnand %p16056_p13, %p15667_p12 }
  0x1e   : > { %p15670_p3 = pneg %p15669_p0 }
  0x20   : > { %p15675_p7 = pnand %p15673_p5, %p15670_p3 }
  0x22   : > { %15678 = shalt.err (!%p15675_p7)
}
  0x23   : > { %s15679_s29 = scalar_lea.vmem %s16033_s23, 9216  ;;  %p15687_p2 = scmp.lt.s32.totalorder %s16033_s23, %s16033_s23 }
  0x24   : > { %p15680_p9 = scmp.ne.s32.totalorder %s16033_s23, %s15679_s29  ;;  %p15688_p6 = scmp.lt.s32.totalorder %s15679_s29, %s15679_s29 }
  0x26   : > { %p15682_p10 = pnand %p15680_p9, %p16056_p13  ;;  %p15689_p12 = por %p15688_p6, %p15687_p2 }
  0x28   : > { %p15683_p1 = pneg %p15682_p10 }
  0x2a   : > { %p15690_p0 = pnand %p15689_p12, %p15683_p1 }
  0x2c   : > { %15693 = shalt.err (!%p15690_p0)
}
  0x2d   : > { %s15919_s30 = smov 64   ;;  %s15920_s11 = smov 4  }
  0x2e   : > { %15360 = dma.hbm_to_vmem [thread:$0]  (!%p16040_p11), %s18071_s1, 9216, %s16033_s23, [#allocation10], %s15919_s30, %s15919_s30, %s15920_s11  }
  0x2f   : > { %s15694_s29 = scalar_lea.hbm %s18075_s5, 9216 }
  0x30   : > { %p15695_p1 = scmp.ne.s32.totalorder %s18075_s5, %s15694_s29  ;;  %p15701_p10 = scmp.lt.u32.totalorder %s15694_s29, %s18075_s5 }
  0x32   : > { %p15697_p2 = pnand %p15695_p1, %p16056_p13 }
  0x34   : > { %p15698_p6 = pneg %p15697_p2 }
  0x36   : > { %p15703_p3 = pnand %p15701_p10, %p15698_p6 }
  0x38   : > { %15706 = shalt.err (!%p15703_p3)
}
  0x39   : > { %s15707_s23 = scalar_lea.vmem %s16044_s26, 9216  ;;  %p15715_p12 = scmp.lt.s32.totalorder %s16044_s26, %s16044_s26 }
  0x3a   : > { %p15708_p5 = scmp.ne.s32.totalorder %s16044_s26, %s15707_s23  ;;  %p15716_p0 = scmp.lt.s32.totalorder %s15707_s23, %s15707_s23 }
  0x3c   : > { %p15710_p7 = pnand %p15708_p5, %p16056_p13  ;;  %p15717_p1 = por %p15716_p0, %p15715_p12 }
  0x3e   : > { %p15711_p9 = pneg %p15710_p7 }
  0x40   : > { %p15718_p2 = pnand %p15717_p1, %p15711_p9 }
  0x42   : > { %15721 = shalt.err (!%p15718_p2)
}
  0x43   : > { %15366 = dma.hbm_to_vmem [thread:$0]  (!%p16040_p11), %s18075_s5, 9216, %s16044_s26, [#allocation13], %s15919_s30, %s15919_s30, %s15920_s11  }
  0x44   : > { %s15722_s12 = scalar_lea.hbm %s18073_s3, 9216 }
  0x45   : > { %p15723_p6 = scmp.ne.s32.totalorder %s18073_s3, %s15722_s12  ;;  %p15729_p5 = scmp.lt.u32.totalorder %s15722_s12, %s18073_s3 }
  0x47   : > { %p15725_p10 = pnand %p15723_p6, %p16056_p13 }
  0x49   : > { %p15726_p3 = pneg %p15725_p10 }
  0x4b   : > { %p15731_p7 = pnand %p15729_p5, %p15726_p3 }
  0x4d   : > { %15734 = shalt.err (!%p15731_p7)
}
  0x4e   : > { %s15735_s23 = scalar_lea.vmem %s312_s28, 9216  ;;  %p15743_p1 = scmp.lt.s32.totalorder %s312_s28, %s312_s28 }
  0x4f   : > { %p15736_p9 = scmp.ne.s32.totalorder %s312_s28, %s15735_s23  ;;  %p15744_p2 = scmp.lt.s32.totalorder %s15735_s23, %s15735_s23 }
  0x51   : > { %p15738_p12 = pnand %p15736_p9, %p16056_p13  ;;  %p15745_p4 = por %p15744_p2, %p15743_p1 }
  0x53   : > { %p15739_p0 = pneg %p15738_p12 }
  0x55   : > { %p15746_p8 = pnand %p15745_p4, %p15739_p0 }
  0x57   : > { %15749 = shalt.err (!%p15746_p8)
}
  0x58   : > { %15363 = dma.hbm_to_vmem [thread:$0]  (!%p16040_p11), %s18073_s3, 9216, %s312_s28, [#allocation10], %s15919_s30, %s15919_s30, %s15920_s11  }
  0x59   : > { %s15921_s9 = smov [#allocation14]   ;;  %s15750_s18 = scalar_lea.hbm %s18077_s7, 2048 }
  0x5a   : > { %s343_s13 = sshll.u32 %s15921_s9, 4  ;;  %p15751_p4 = scmp.ne.s32.totalorder %s18077_s7, %s15750_s18  ;;  %s344_s13 = int_to_ptr.vmem [resolvable:$true] %s343_s13 }
  0x5b   : > { %p15757_p10 = scmp.lt.u32.totalorder %s15750_s18, %s18077_s7 }
  0x5c   : > { %p15753_p8 = pnand %p15751_p4, %p16056_p13 }
  0x5e   : > { %p15754_p6 = pneg %p15753_p8 }
  0x60   : > { %p15759_p3 = pnand %p15757_p10, %p15754_p6 }
  0x62   : > { %15762 = shalt.err (!%p15759_p3)
}
  0x63   : > { %s15763_s28 = scalar_lea.vmem %s344_s13, 2048  ;;  %p15771_p12 = scmp.lt.s32.totalorder %s344_s13, %s344_s13 }
  0x64   : > { %p15764_p5 = scmp.ne.s32.totalorder %s344_s13, %s15763_s28  ;;  %p15772_p0 = scmp.lt.s32.totalorder %s15763_s28, %s15763_s28 }
  0x66   : > { %p15766_p7 = pnand %p15764_p5, %p16056_p13  ;;  %p15773_p1 = por %p15772_p0, %p15771_p12 }
  0x68   : > { %p15767_p9 = pneg %p15766_p7 }
  0x6a   : > { %p15774_p2 = pnand %p15773_p1, %p15767_p9 }
  0x6c   : > { %15777 = shalt.err (!%p15774_p2)
}
  0x6d   : > { %s15922_s30 = smov 128   ;;  %s15923_s22 = smov 8  }
  0x6e   : > { %15369 = dma.hbm_to_vmem [thread:$0]  (!%p16040_p11), %s18077_s7, 2048, %s344_s13, [#allocation13], %s15922_s30, %s15922_s30, %s15923_s22  }
  0x6f   : > { %s16150_s8 = sadd.s32 1, %s15914_s16   ;;  %s39_s20 = sadd.s32 1, %s15910_s15 }
  0x70   : > { %s36_s9 = ssub.s32 %s15914_s16, %s16150_s8  ;;  %p46_p4 = scmp.ne.s32.totalorder %s15910_s15, %s15906_s14 }
  0x71   : > { %p37_p13 = scmp.eq.s32.totalorder %s36_s9, 0  ;;  %p47_p8 = scmp.eq.s32.totalorder %s15914_s16, 0 }
  0x72   : > { %p18123_p10 = scmp.eq.s32.totalorder %s16010_s17, 1  ;;  %p15385_p5 = scmp.lt.s32.totalorder %s15914_s16, 2 }
  0x73   : > { %s16159_s12 = scalar_select %p37_p13, %s15910_s15, %s39_s20  }
  0x74   : > { %p48_p6 = por %p47_p8, %p46_p4  ;;  %p16163_p3 = por %p18123_p10, %p46_p4 }
  0x75   : > { %s360_s18 = sand.u32 1, %s15910_s15   ;;  %s11436_s13 = sshll.u32 %s15914_s16, 12 }
  0x76   : > { %s11169_s25 = sshll.u32 %s360_s18, 8  ;;  %s16173_s23 = scalar_lea.hbm %s18070_s0, %s11436_s13 }
  0x77   : > { %s364_s28 = scalar_lea.vmem [#allocation6], %s11169_s25  ;;  %p16177_p11 = pnand %p15385_p5, %p48_p6 }
  0x78   : > { %s371_s11 = sshll.u32 %s364_s28, 4  ;;  %s16181_s9 = scalar_lea.sflag [#allocation7], %s360_s18  ;;  %s16175_s11 = int_to_ptr.vmem [resolvable:$true] %s371_s11 }
  0x79   : > { %s15778_s20 = scalar_lea.hbm %s16173_s23, 4096  ;;  %p15780_p9 = pneg %p16177_p11 }
  0x7a   : > { %p15779_p7 = scmp.ne.s32.totalorder %s16173_s23, %s15778_s20  ;;  %s15783_s27 = scalar_lea.hbm %s18070_s0, 8192 }
  0x7b   : > { %p15784_p1 = scmp.lt.u32.totalorder %s16173_s23, %s18070_s0  ;;  %p15785_p2 = scmp.lt.u32.totalorder %s15783_s27, %s15778_s20 }
  0x7c   : > { %p15781_p12 = pnand %p15780_p9, %p15779_p7  ;;  %p15787_p4 = scmp.lt.u32.totalorder %s15778_s20, %s16173_s23 }
  0x7d   : > { %p15786_p13 = por %p15785_p2, %p15784_p1 }
  0x7e   : > { %p15782_p0 = pneg %p15781_p12 }
  0x7f   : > { %p15788_p8 = por %p15787_p4, %p15786_p13 }
  0x81   : > { %p15789_p6 = pnand %p15788_p8, %p15782_p0 }
  0x83   : > { %15792 = shalt.err (!%p15789_p6)
}
  0x84   : > { %s15793_s18 = scalar_lea.vmem %s16175_s11, 4096  ;;  %s15924_s25 = smov [#allocation6]  }
  0x85   : > { %p15794_p10 = scmp.ne.s32.totalorder %s16175_s11, %s15793_s18  ;;  %s15798_s13 = sshll.u32 %s15924_s25, 4  ;;  %s15799_s13 = int_to_ptr.vmem [resolvable:$false] %s15798_s13 }
  0x86   : > { %s15800_s29 = scalar_lea.vmem %s15799_s13, 8192  ;;  %p15801_p12 = scmp.lt.s32.totalorder %s16175_s11, %s15799_s13 }
  0x87   : > { %p15796_p5 = pnand %p15794_p10, %p15780_p9  ;;  %p15802_p1 = scmp.lt.s32.totalorder %s15800_s29, %s15793_s18 }
  0x89   : > { %p15797_p7 = pneg %p15796_p5  ;;  %p15803_p2 = por %p15802_p1, %p15801_p12 }
  0x8b   : > { %p15804_p13 = pnand %p15803_p2, %p15797_p7 }
  0x8d   : > { %15807 = shalt.err (!%p15804_p13)
}
  0x8e   : > { %15373 = dma.hbm_to_vmem [thread:$0]  (!%p16177_p11), %s16173_s23, 4096, %s16175_s11, %s16181_s9, %s15922_s30, %s15922_s30, %s15923_s22  }
  0x8f   : > { %p18126_p9 = scmp.ne.s32.totalorder %s18120_s21, 0 }
  0x91   : > { %383 = sbr.rel (%p18126_p9) target bundleno = 2451 (0x993), region = 56 }
  0x98   : > { %s16215_s20 = sand.u32 1, %s15906_s14   ;;  %p18127_p0 = scmp.ne.s32.totalorder %s18117_s19, 0 }
  0x99   : > { %s11173_s27 = sshll.u32 %s16215_s20, 8  ;;  %s386_s28 = scalar_lea.sflag [#allocation7], %s16215_s20 }
  0x9a   : > { %s16219_s18 = scalar_lea.vmem [#allocation6], %s11173_s27 }
  0x9b   : > { %15881 = dma.done.wait (%p18127_p0), %s386_s28, 4096  }
  0x9c   : > { %15883 = vsyncadd (%p18127_p0), %s386_s28, 4294963200  ;;  %p18128_p11 = scmp.eq.s32.totalorder %s16010_s17, 0 }
  0x9e   : > { %15885 = dma.done.wait (%p18128_p11), [#allocation10], 18432   ;;  %p18129_p4 = pmov %p18128_p11 }
  0xa0   : > { %15887 = vsyncadd (%p18129_p4), [#allocation10], 4294948864  ;;  %p18130_p8 = pmov %p18129_p4 }
  0xa1   : > { %p18131_p6 = pmov %p18129_p4 }
  0xa2   : > { %15889 = dma.done.wait (%p18130_p8), [#allocation13], 11264  }
  0xa3   : > { %15891 = vsyncadd (%p18131_p6), [#allocation13], 4294956032  ;;  %v18087_v0 = vmov 0   ;;  %v15438_v1 = vld [vmem:[#allocation9] sm:$0xff]   ;;  %v15440_v3 = vld [vmem:[#allocation9 + $0x8] sm:$0xff]   ;;  %vm553_vm0 = vcmask 1040384  }
  0xa4   : > { %13212 = vmatprep.mubr.bf16.mxu1 %v18087_v0  ;;  %v15439_v2 = vld [vmem:[#allocation9 + $0x100] sm:$0xff]   ;;  %13196 = vmatprep.subr.bf16.mxu1 %v15438_v1  ;;  %v15441_v4 = vld [vmem:[#allocation9 + $0x108] sm:$0xff]   ;;  %v15442_v5 = vld [vmem:[#allocation9 + $0x10] sm:$0xff]   ;;  %vm15926_vm2 = vmmov 1   ;;  %vm683_vm4 = vcmask 1046528   ;;  %vm15928_vm6 = vmmov 0  }
  0xa5   : > { %13388 = vmatprep.subr.bf16.mxu0 %v15439_v2  ;;  %13197 = vmatpush3.bf16.msra.mxu1 %v15438_v1  ;;  %v15443_v6 = vld [vmem:[#allocation9 + $0x110] sm:$0xff]   ;;  %v15444_v7 = vld [vmem:[#allocation9 + $0x18] sm:$0xff]   ;;  %v15446_v9 = vld [vmem:[#allocation9 + $0x20] sm:$0xff]   ;;  %s11178_s26 = sshll.u32 %s16215_s20, 7  ;;  %s11469_s25 = sshll.u32 %s16010_s17, 11 }
  0xa6   : > { %13389 = vmatpush3.bf16.msra.mxu0 %v15439_v2  ;;  %13198 = vmatprep.subr.bf16.mxu1 %v15440_v3  ;;  %v15445_v8 = vld [vmem:[#allocation9 + $0x118] sm:$0xff]   ;;  %v15447_v10 = vld [vmem:[#allocation9 + $0x120] sm:$0xff]   ;;  %v15448_v11 = vld [vmem:[#allocation9 + $0x28] sm:$0xff]   ;;  %s17939_s9 = scalar_lea.vmem [#allocation16], %s11178_s26  ;;  %s17990_s28 = scalar_lea.hbm %s18080_s10, %s11469_s25 }
  0xa7   : > { %13390 = vmatprep.subr.bf16.mxu0 %v15441_v4  ;;  %v16235_v12 = vld [vmem:[%s16219_s18] sm:$0xff]  ;;  %v16238_v13 = vld [vmem:[%s16219_s18 + $0x8] sm:$0xff]  ;;  %v15450_v16 = vld [vmem:[#allocation9 + $0x30] sm:$0xff]   ;;  %s11023_s13 = sshll.u32 %s17939_s9, 4  ;;  %s15930_s21 = smov [#allocation16]   ;;  %s17992_s13 = int_to_ptr.vmem [resolvable:$true] %s11023_s13 }
  0xa8   : > { %v15449_v14 = vld [vmem:[#allocation9 + $0x128] sm:$0xff]   ;;  %v16242_v15 = vpack.c.bf16 %v16238_v13, %v16235_v12  ;;  %v15451_v17 = vld [vmem:[#allocation9 + $0x130] sm:$0xff]   ;;  %v15452_v18 = vld [vmem:[#allocation9 + $0x38] sm:$0xff]   ;;  %v554_v20 = vrot.slane %v16235_v12, 7  ;;  %v555_v21 = vrot.slane %v16238_v13, 7  ;;  %s15808_s19 = scalar_lea.vmem %s17992_s13, 2048 }
  0xa9   : > { %13199 = vmatpush3.bf16.msra.mxu1 %v15440_v3  ;;  %v15453_v19 = vld [vmem:[#allocation9 + $0x138] sm:$0xff]   ;;  %v16248_v22 = vld [vmem:[%s16219_s18 + $0x10] sm:$0xff]  ;;  %vm11565_vm1 = vmneg %vm553_vm0  ;;  %p15809_p10 = scmp.ne.s32.totalorder %s17992_s13, %s15808_s19  ;;  %s15812_s30 = sshll.u32 %s15930_s21, 4  ;;  %s15813_s30 = int_to_ptr.vmem [resolvable:$false] %s15812_s30 }
  0xaa   : > { %13391 = vmatpush3.bf16.msra.mxu0 %v15441_v4  ;;  %13200 = vmatprep.subr.bf16.mxu1 %v15442_v5  ;;  %v16251_v23 = vld [vmem:[%s16219_s18 + $0x18] sm:$0xff]  ;;  %v557_v24 = vrot.slane %v16248_v22, 7  ;;  %v556_v26 = vsel %vm553_vm0, %v554_v20, %v555_v21  ;;  %v15454_v27 = vld [vmem:[#allocation9 + $0x40] sm:$0xff]   ;;  %v16261_v29 = vld [vmem:[%s16219_s18 + $0x28] sm:$0xff]  ;;  %s15814_s22 = scalar_lea.vmem %s15813_s30, 4096  ;;  %p15815_p12 = scmp.lt.s32.totalorder %s17992_s13, %s15813_s30 }
  0xab   : > { %13392 = vmatprep.subr.bf16.mxu0 %v15443_v6  ;;  %13404 = vmatprep.mubr.bf16.mxu0 %v16242_v15  ;;  %v558_v25 = vrot.slane %v16251_v23, 7  ;;  %v16258_v28 = vld [vmem:[%s16219_s18 + $0x20] sm:$0xff]  ;;  %vm16265_vm3 = vmpackc.low %vm15926_vm2, %vm11565_vm1  ;;  %v16269_v33 = vpack.c.bf16 %v556_v26, %v554_v20  ;;  %v16273_v34 = vpack.c.bf16 %v16251_v23, %v16248_v22  ;;  %v561_v36 = vrot.slane %v16261_v29, 7  ;;  %v16278_v37 = vld [vmem:[%s16219_s18 + $0x30] sm:$0xff]  ;;  %p15810_p5 = pnand %p15809_p10, %p16163_p3  ;;  %p15816_p1 = scmp.lt.s32.totalorder %s15814_s22, %s15808_s19 }
  0xac   : > { %v15455_v30 = vld [vmem:[#allocation9 + $0x140] sm:$0xff]   ;;  %v560_v35 = vrot.slane %v16258_v28, 7  ;;  %v16281_v38 = vld [vmem:[%s16219_s18 + $0x38] sm:$0xff]  ;;  %v563_v40 = vrot.slane %v16278_v37, 7  ;;  %v15456_v42 = vld [vmem:[#allocation9 + $0x148] sm:$0xff]   ;;  %v16289_v43 = vpack.c.bf16 %v16261_v29, %v16258_v28 }
  0xad   : > { %13201 = vmatpush3.bf16.msra.mxu1 %v15442_v5  ;;  %v559_v31 = vsel %vm553_vm0, %v557_v24, %v558_v25  ;;  %18134 = vst [vmem:[#allocation25_spill] sm:$0xff] %v16269_v33  ;;  %v564_v41 = vrot.slane %v16281_v38, 7  ;;  %v15457_v44 = vld [vmem:[#allocation9 + $0x48] sm:$0xff]   ;;  %v15458_v46 = vld [vmem:[#allocation9 + $0x150] sm:$0xff]   ;;  %v16297_v47 = vld [vmem:[%s16219_s18 + $0x40] sm:$0xff]  ;;  %v16324_v56 = vpack.c.bf16 %v16281_v38, %v16278_v37  ;;  %p15811_p7 = pneg %p15810_p5  ;;  %p15817_p2 = por %p15816_p1, %p15815_p12 }
  0xae   : > { %13393 = vmatpush3.bf16.msra.mxu0 %v15443_v6  ;;  %13202 = vmatprep.subr.bf16.mxu1 %v15444_v7  ;;  %v16283_v39 = vpack.c.bf16 %v559_v31, %v557_v24  ;;  %v562_v45 = vsel %vm553_vm0, %v560_v35, %v561_v36  ;;  %v16304_v49 = vld [vmem:[%s16219_s18 + $0x48] sm:$0xff]  ;;  %v15460_v50 = vld [vmem:[#allocation9 + $0x50] sm:$0xff]   ;;  %v16308_v51 = vld [vmem:[%s16219_s18 + $0x80] sm:$0xff]  ;;  %v566_v59 = vrot.slane %v16297_v47, 7 }
  0xaf   : > { %13394 = vmatprep.subr.bf16.mxu0 %v15445_v8  ;;  %v565_v48 = vsel %vm553_vm0, %v563_v40, %v564_v41  ;;  %v16311_v52 = vld [vmem:[%s16219_s18 + $0x88] sm:$0xff]  ;;  %v16313_v53 = vpack.c.bf16 %v562_v45, %v560_v35  ;;  %v16316_v54 = vld [vmem:[%s16219_s18 + $0x50] sm:$0xff]  ;;  %v15459_v57 = vld [vmem:[#allocation9 + $0x158] sm:$0xff]   ;;  %v567_v60 = vrot.slane %v16304_v49, 7  ;;  %v16341_v1 = vpack.c.bf16 %v16304_v49, %v16297_v47  ;;  %p15818_p13 = pnand %p15817_p2, %p15811_p7 }
  0xb0   : > { %v16320_v55 = vpack.c.bf16 %v16311_v52, %v16308_v51  ;;  %v16326_v58 = vpack.c.bf16 %v565_v48, %v563_v40  ;;  %v16331_v61 = vld [vmem:[%s16219_s18 + $0x58] sm:$0xff]  ;;  %v16334_v62 = vld [vmem:[%s16219_s18 + $0x90] sm:$0xff]  ;;  %v569_v2 = vrot.slane %v16316_v54, 7  ;;  %v16346_v4 = vld [vmem:[%s16219_s18 + $0xa0] sm:$0xff] }
  0xb1   : > { %13203 = vmatpush3.bf16.msra.mxu1 %v15444_v7  ;;  %v16337_v63 = vld [vmem:[%s16219_s18 + $0x98] sm:$0xff]  ;;  %v570_v3 = vrot.slane %v16331_v61, 7  ;;  %v16349_v5 = vld [vmem:[%s16219_s18 + $0xa8] sm:$0xff]  ;;  %v16385_v20 = vld [vmem:[%s16219_s18 + $0xc0] sm:$0xff] }
  0xb2   : > { %13395 = vmatpush3.bf16.msra.mxu0 %v15445_v8  ;;  %13204 = vmatprep.subr.bf16.mxu1 %v15446_v9  ;;  %v16353_v6 = vpack.c.bf16 %v16337_v63, %v16334_v62  ;;  %v16357_v7 = vpack.c.bf16 %v16349_v5, %v16346_v4  ;;  %v16363_v8 = vld [vmem:[%s16219_s18 + $0x60] sm:$0xff]  ;;  %v16388_v21 = vld [vmem:[%s16219_s18 + $0xc8] sm:$0xff]  ;;  %v16395_v25 = vld [vmem:[%s16219_s18 + $0x78] sm:$0xff] }
  0xb3   : > { %13396 = vmatprep.subr.bf16.mxu0 %v15447_v10  ;;  %v16399_v26 = vpack.c.bf16 %v16388_v21, %v16385_v20  ;;  %v572_v31 = vrot.slane %v16363_v8, 7  ;;  %v15466_v36 = vld [vmem:[#allocation9 + $0x60] sm:$0xff]   ;;  %v16407_v40 = vld [vmem:[%s16219_s18 + $0xd0] sm:$0xff]  ;;  %v16410_v41 = vld [vmem:[%s16219_s18 + $0xd8] sm:$0xff]  ;;  %v576_v45 = vrot.slane %v16395_v25, 7 }
  0xb4   : > { %v16424_v48 = vld [vmem:[%s16219_s18 + $0xe8] sm:$0xff]  ;;  %vm16465_vm5 = vmpackc.low %vm683_vm4, %vm15926_vm2  ;;  %v15650_v32 = vld [vmem:[#allocation12 + $0x220] sm:$0xff]  }
  0xb5   : > { %13205 = vmatpush3.bf16.msra.mxu1 %v15446_v9  ;;  %v16366_v9 = vld [vmem:[%s16219_s18 + $0x68] sm:$0xff]  ;;  %18135 = vst [vmem:[#allocation26_spill] sm:$0xff] %v16399_v26  ;;  %v690_v26 = vrot.slane %v16258_v28, 1  ;;  %v15472_v28 = vld [vmem:[#allocation9 + $0x78] sm:$0xff]  }
  0xb6   : > { %13397 = vmatpush3.bf16.msra.mxu0 %v15447_v10  ;;  %13206 = vmatprep.subr.bf16.mxu1 %v15448_v11  ;;  %v15463_v10 = vld [vmem:[#allocation9 + $0x58] sm:$0xff]   ;;  %v573_v35 = vrot.slane %v16366_v9, 7 }
  0xb7   : > { %13398 = vmatprep.subr.bf16.mxu0 %v15449_v14 }
  0xb9   : > { %13207 = vmatpush3.bf16.msra.mxu1 %v15448_v11  ;;  %v568_v11 = vsel %vm553_vm0, %v566_v59, %v567_v60 }
  0xba   : > { %13399 = vmatpush3.bf16.msra.mxu0 %v15449_v14  ;;  %13208 = vmatprep.subr.bf16.mxu1 %v15450_v16  ;;  %v15461_v14 = vld [vmem:[#allocation9 + $0x160] sm:$0xff]  }
  0xbb   : > { %13400 = vmatprep.subr.bf16.mxu0 %v15451_v17 }
  0xbd   : > { %13209 = vmatpush3.bf16.msra.mxu1 %v15450_v16  ;;  %v16374_v16 = vld [vmem:[%s16219_s18 + $0xb0] sm:$0xff] }
  0xbe   : > { %13401 = vmatpush3.bf16.msra.mxu0 %v15451_v17  ;;  %13210 = vmatprep.subr.bf16.mxu1 %v15452_v18  ;;  %v16377_v17 = vld [vmem:[%s16219_s18 + $0xb8] sm:$0xff] }
  0xbf   : > { %13402 = vmatprep.subr.bf16.mxu0 %v15453_v19  ;;  %v16392_v24 = vpack.c.bf16 %v16377_v17, %v16374_v16 }
  0xc1   : > { %13211 = vmatpush3.bf16.msra.mxu1 %v15452_v18  ;;  %v571_v18 = vsel %vm553_vm0, %v569_v2, %v570_v3  ;;  %v15462_v3 = vld [vmem:[#allocation9 + $0x168] sm:$0xff]  }
  0xc2   : > { %13403 = vmatpush3.bf16.msra.mxu0 %v15453_v19  ;;  %13244 = vmatprep.subr.bf16.mxu1 %v15454_v27  ;;  %v16382_v19 = vld [vmem:[%s16219_s18 + $0x70] sm:$0xff] }
  0xc3   : > { %13436 = vmatprep.subr.bf16.mxu0 %v15455_v30 }
  0xc4   : > { %13213 = vmatmul.mubr.msk.bf16.vlgmr.msra.gmra.mrb[0].mxu1 %vm16265_vm3, %v16269_v33  ;;  %v688_v33 = vrot.slane %v16251_v23, 1  ;;  %v10900_v23 = vld [vmem:[#allocation14 + $0x30] sm:$0xff] }
  0xc5   : > { %13405 = vmatmul.mubr.bf16.vlgmr.msra.gmra.mrb[0].mxu0 %v16273_v34  ;;  %13245 = vmatpush3.bf16.msra.mxu1 %v15454_v27  ;;  %v684_v27 = vrot.slane %v16235_v12, 1  ;;  %v575_v12 = vrot.slane %v16382_v19, 7 }
  0xc6   : > { %13437 = vmatpush3.bf16.msra.mxu0 %v15455_v30  ;;  %13216 = vmatprep.mubr.msk.bf16.mxu1 %vm16265_vm3, %v16283_v39  ;;  %v16402_v30 = vpack.c.bf16 %v568_v11, %v566_v59  ;;  %v16432_v59 = vpack.c.bf16 %v16410_v41, %v16407_v40  ;;  %v574_v11 = vsel %vm553_vm0, %v572_v31, %v573_v35 }
  0xc7   : > { %13438 = vmatprep.subr.bf16.mxu0 %v15456_v42  ;;  %13408 = vmatprep.mubr.bf16.mxu0 %v16289_v43 }
  0xc8   : > { %13246 = vmatprep.subr.bf16.mxu1 %v15457_v44  ;;  %18136 = vst [vmem:[#allocation27_spill] sm:$0xff] %v16432_v59  ;;  %v15470_v59 = vld [vmem:[#allocation9 + $0x70] sm:$0xff]  }
  0xc9   : > { %13247 = vmatpush3.bf16.msra.mxu1 %v15457_v44  ;;  %v16416_v44 = vpack.c.bf16 %v571_v18, %v569_v2  ;;  %v685_v2 = vrot.slane %v16238_v13, 1  ;;  %v577_v13 = vsel %vm553_vm0, %v575_v12, %v576_v45  ;;  %v15464_v18 = vld [vmem:[#allocation9 + $0x170] sm:$0xff]   ;;  %v578_v45 = vrot.slane %v16308_v51, 7 }
  0xca   : > { %13439 = vmatpush3.bf16.msra.mxu0 %v15456_v42  ;;  %13248 = vmatprep.subr.bf16.mxu1 %v15460_v50  ;;  %v16414_v42 = vpack.c.bf16 %v16331_v61, %v16316_v54  ;;  %v16458_v35 = vpack.c.bf16 %v577_v13, %v575_v12  ;;  %v691_v12 = vrot.slane %v16261_v29, 1  ;;  %v693_v29 = vrot.slane %v16278_v37, 1  ;;  %v15467_v13 = vld [vmem:[#allocation9 + $0x180] sm:$0xff]  }
  0xcb   : > { %13440 = vmatprep.subr.bf16.mxu0 %v15458_v46  ;;  %v686_v0 = vsel %vm683_vm4, %v684_v27, %v685_v2  ;;  %v16493_v37 = vld [vmem:[#allocation9 + $0x80] sm:$0xff]  }
  0xcc   : > { %13217 = vmatmul.mubr.msk.bf16.gmra.mrb[4].mxu1 %vm16265_vm3, %v16313_v53  ;;  %18139 = vst [vmem:[#allocation30_spill] sm:$0xff] %v16458_v35  ;;  %v16469_v27 = vpack.c.bf16 %v685_v2, %v686_v0 }
  0xcd   : > { %13409 = vmatmul.mubr.bf16.gmra.mrb[4].mxu0 %v16324_v56  ;;  %13220 = vmatprep.mubr.msk.bf16.mxu1 %vm16265_vm3, %v16326_v58 }
  0xce   : > { %13441 = vmatpush3.bf16.msra.mxu0 %v15458_v46  ;;  %13412 = vmatprep.mubr.bf16.mxu0 %v16341_v1  ;;  %v16421_v46 = vld [vmem:[%s16219_s18 + $0xe0] sm:$0xff]  ;;  %18142 = vst [vmem:[#allocation31_spill] sm:$0xff] %v16469_v27 }
  0xcf   : > { %13442 = vmatprep.subr.bf16.mxu0 %v15459_v57  ;;  %13249 = vmatpush3.bf16.msra.mxu1 %v15460_v50  ;;  %v16428_v50 = vpack.c.bf16 %v16366_v9, %v16363_v8  ;;  %v16436_v60 = vpack.c.bf16 %v16424_v48, %v16421_v46 }
  0xd0   : > { %13250 = vmatprep.subr.bf16.mxu1 %v15463_v10 }
  0xd1   : > { %18137 = vst [vmem:[#allocation28_spill] sm:$0xff] %v16436_v60  ;;  %v16452_v60 = vpack.c.bf16 %v574_v11, %v572_v31  ;;  %v581_v31 = vrot.slane %v16334_v62, 7  ;;  %v15465_v11 = vld [vmem:[#allocation9 + $0x178] sm:$0xff]  }
  0xd2   : > { %13443 = vmatpush3.bf16.msra.mxu0 %v15459_v57  ;;  %v15468_v57 = vld [vmem:[#allocation9 + $0x68] sm:$0xff]  }
  0xd3   : > { %13444 = vmatprep.subr.bf16.mxu0 %v15461_v14  ;;  %13251 = vmatpush3.bf16.msra.mxu1 %v15463_v10  ;;  %v687_v10 = vrot.slane %v16248_v22, 1  ;;  %18138 = vst [vmem:[#allocation29_spill] sm:$0xff] %v16452_v60  ;;  %v579_v22 = vrot.slane %v16311_v52, 7 }
  0xd4   : > { %13221 = vmatmul.mubr.msk.bf16.gmra.mrb[8].mxu1 %vm16265_vm3, %v16402_v30  ;;  %13252 = vmatprep.subr.bf16.mxu1 %v15466_v36 }
  0xd5   : > { %13413 = vmatmul.mubr.bf16.gmra.mrb[8].mxu0 %v16414_v42  ;;  %13224 = vmatprep.mubr.msk.bf16.mxu1 %vm16265_vm3, %v16416_v44  ;;  %v580_v0 = vsel %vm553_vm0, %v578_v45, %v579_v22  ;;  %v689_v2 = vsel %vm683_vm4, %v687_v10, %v688_v33  ;;  %v696_v22 = vrot.slane %v16297_v47, 1  ;;  %v588_v47 = vrot.slane %v16377_v17, 7 }
  0xd6   : > { %13445 = vmatpush3.bf16.msra.mxu0 %v15461_v14  ;;  %13416 = vmatprep.mubr.bf16.mxu0 %v16428_v50  ;;  %v16456_v14 = vpack.c.bf16 %v16395_v25, %v16382_v19  ;;  %v16495_v10 = vpack.c.bf16 %v688_v33, %v689_v2  ;;  %v703_v2 = vrot.slane %v16366_v9, 1  ;;  %v706_v9 = vrot.slane %v16395_v25, 1 }
  0xd7   : > { %13446 = vmatprep.subr.bf16.mxu0 %v15462_v3  ;;  %13253 = vmatpush3.bf16.msra.mxu1 %v15466_v36  ;;  %v582_v36 = vrot.slane %v16337_v63, 7 }
  0xd8   : > { %13254 = vmatprep.subr.bf16.mxu1 %v15468_v57 }
  0xda   : > { %13447 = vmatpush3.bf16.msra.mxu0 %v15462_v3  ;;  %v583_v3 = vsel %vm553_vm0, %v581_v31, %v582_v36  ;;  %v584_v36 = vrot.slane %v16346_v4, 7 }
  0xdb   : > { %13448 = vmatprep.subr.bf16.mxu0 %v15464_v18  ;;  %13255 = vmatpush3.bf16.msra.mxu1 %v15468_v57  ;;  %v694_v57 = vrot.slane %v16281_v38, 1  ;;  %v585_v38 = vrot.slane %v16349_v5, 7 }
  0xdc   : > { %13225 = vmatmul.mubr.msk.bf16.gmra.mrb[12].mxu1 %vm16265_vm3, %v16452_v60  ;;  %13256 = vmatprep.subr.bf16.mxu1 %v15470_v59  ;;  %v692_v60 = vsel %vm683_vm4, %v690_v26, %v691_v12  ;;  %v587_v26 = vrot.slane %v16374_v16, 7 }
  0xdd   : > { %13417 = vmatmul.mubr.bf16.gmra.mrb[12].mxu0 %v16456_v14  ;;  %13228 = vmatprep.mubr.msk.bf16.mxu1 %vm16265_vm3, %v16458_v35  ;;  %v16491_v35 = vpack.c.bf16 %v580_v0, %v578_v45  ;;  %v15469_v45 = vld [vmem:[#allocation9 + $0x188] sm:$0xff]   ;;  %v586_v33 = vsel %vm553_vm0, %v584_v36, %v585_v38  ;;  %v15471_v0 = vld [vmem:[#allocation9 + $0x190] sm:$0xff]   ;;  %v591_v38 = vrot.slane %v16388_v21, 7 }
  0xde   : > { %13449 = vmatpush3.bf16.msra.mxu0 %v15464_v18  ;;  %13452 = vmatprep.mubr.msk.bf16.mxu0 %vm16465_vm5, %v16469_v27  ;;  %v16497_v18 = vpack.c.bf16 %v583_v3, %v581_v31  ;;  %v16501_v27 = vpack.c.bf16 %v691_v12, %v692_v60  ;;  %v700_v60 = vrot.slane %v16331_v61, 1  ;;  %v695_v31 = vsel %vm683_vm4, %v693_v29, %v694_v57 }
  0xdf   : > { %13450 = vmatprep.subr.bf16.mxu0 %v15465_v11  ;;  %13257 = vmatpush3.bf16.msra.mxu1 %v15470_v59  ;;  %v697_v59 = vrot.slane %v16304_v49, 1  ;;  %v699_v49 = vrot.slane %v16316_v54, 1  ;;  %v589_v12 = vsel %vm553_vm0, %v587_v26, %v588_v47  ;;  %v705_v54 = vrot.slane %v16382_v19, 1  ;;  %v15473_v19 = vld [vmem:[#allocation9 + $0x198] sm:$0xff]  }
  0xe0   : > { %13258 = vmatprep.subr.bf16.mxu1 %v15472_v28  ;;  %v16528_v61 = vpack.c.bf16 %v586_v33, %v584_v36  ;;  %v16530_v3 = vpack.c.bf16 %v694_v57, %v695_v31  ;;  %v590_v29 = vrot.slane %v16385_v20, 7  ;;  %v594_v47 = vrot.slane %v16410_v41, 7 }
  0xe1   : > { %v708_v57 = vrot.slane %v16308_v51, 1  ;;  %v709_v36 = vrot.slane %v16311_v52, 1  ;;  %v701_v51 = vsel %vm683_vm4, %v699_v49, %v700_v60  ;;  %v715_v33 = vrot.slane %v16349_v5, 1 }
  0xe2   : > { %13451 = vmatpush3.bf16.msra.mxu0 %v15465_v11  ;;  %v702_v11 = vrot.slane %v16363_v8, 1  ;;  %v592_v25 = vsel %vm553_vm0, %v590_v29, %v591_v38  ;;  %v717_v38 = vrot.slane %v16374_v16, 1  ;;  %v16568_v49 = vpack.c.bf16 %v700_v60, %v701_v51 }
  0xe3   : > { %13484 = vmatprep.subr.bf16.mxu0 %v15467_v13  ;;  %13259 = vmatpush3.bf16.msra.mxu1 %v15472_v28  ;;  %v698_v28 = vsel %vm683_vm4, %v696_v22, %v697_v59  ;;  %v593_v22 = vrot.slane %v16407_v40, 7  ;;  %v718_v5 = vrot.slane %v16377_v17, 1  ;;  %v721_v60 = vrot.slane %v16388_v21, 1 }
  0xe4   : > { %13229 = vmatmul.mubr.msk.bf16.gmra.mrb[16].mxu1 %vm16265_vm3, %v16491_v35  ;;  %13292 = vmatprep.subr.bf16.mxu1 %v16493_v37  ;;  %v16536_v8 = vpack.c.bf16 %v697_v59, %v698_v28  ;;  %v712_v59 = vrot.slane %v16337_v63, 1  ;;  %v704_v31 = vsel %vm683_vm4, %v702_v11, %v703_v2  ;;  %v16564_v63 = vpack.c.bf16 %v592_v25, %v590_v29 }
  0xe5   : > { %13453 = vmatmul.mubr.msk.bf16.vlgmr.msra.gmra.mrb[0].mxu0 %vm16465_vm5, %v16495_v10  ;;  %13232 = vmatprep.mubr.msk.bf16.mxu1 %vm16265_vm3, %v16497_v18  ;;  %v595_v52 = vsel %vm553_vm0, %v593_v22, %v594_v47  ;;  %v597_v28 = vrot.slane %v16424_v48, 7  ;;  %v15477_v47 = vld [vmem:[#allocation9 + $0x1a8] sm:$0xff]   ;;  %v720_v11 = vrot.slane %v16385_v20, 1  ;;  %v707_v17 = vsel %vm683_vm4, %v705_v54, %v706_v9 }
  0xe6   : > { %13485 = vmatpush3.bf16.msra.mxu0 %v15467_v13  ;;  %13456 = vmatprep.mubr.msk.bf16.mxu0 %vm16465_vm5, %v16501_v27  ;;  %v16532_v13 = vpack.c.bf16 %v589_v12, %v587_v26  ;;  %v711_v26 = vrot.slane %v16334_v62, 1  ;;  %v596_v12 = vrot.slane %v16421_v46, 7  ;;  %v15475_v62 = vld [vmem:[#allocation9 + $0x1a0] sm:$0xff]   ;;  %v710_v20 = vsel %vm683_vm4, %v708_v57, %v709_v36 }
  0xe7   : > { %13486 = vmatprep.subr.bf16.mxu0 %v15469_v45  ;;  %v16596_v25 = vpack.c.bf16 %v709_v36, %v710_v20  ;;  %v723_v21 = vrot.slane %v16407_v40, 1  ;;  %v724_v54 = vrot.slane %v16410_v41, 1  ;;  %v726_v57 = vrot.slane %v16421_v46, 1  ;;  %v16608_v36 = vld [vmem:[#allocation9 + $0x1c0] sm:$0xff]   ;;  %v16616_v41 = vld [vmem:[%s16219_s18 + $0xf0] sm:$0xff] }
  0xe8   : > { %v598_v16 = vsel %vm553_vm0, %v596_v12, %v597_v28  ;;  %v713_v51 = vsel %vm683_vm4, %v711_v26, %v712_v59  ;;  %v15478_v46 = vld [vmem:[#allocation9 + $0x90] sm:$0xff]   ;;  %v727_v26 = vrot.slane %v16424_v48, 1 }
  0xe9   : > { %v16592_v29 = vpack.c.bf16 %v598_v16, %v596_v12  ;;  %v15484_v16 = vld [vmem:[#allocation9 + $0xa8] sm:$0xff]  }
  0xea   : > { %13487 = vmatpush3.bf16.msra.mxu0 %v15469_v45  ;;  %v714_v45 = vrot.slane %v16346_v4, 1  ;;  %v16572_v4 = vpack.c.bf16 %v703_v2, %v704_v31  ;;  %v15479_v2 = vld [vmem:[#allocation9 + $0x1b0] sm:$0xff]   ;;  %v15476_v31 = vld [vmem:[#allocation9 + $0x88] sm:$0xff]  }
  0xeb   : > { %13488 = vmatprep.subr.bf16.mxu0 %v15471_v0 }
  0xec   : > { %13233 = vmatmul.mubr.msk.bf16.gmra.mrb[20].mxu1 %vm16265_vm3, %v16528_v61  ;;  %v716_v40 = vsel %vm683_vm4, %v714_v45, %v715_v33  ;;  %v719_v45 = vsel %vm683_vm4, %v717_v38, %v718_v5  ;;  %v15482_v38 = vld [vmem:[#allocation9 + $0xa0] sm:$0xff]  }
  0xed   : > { %13457 = vmatmul.mubr.msk.bf16.gmra.mrb[4].mxu0 %vm16465_vm5, %v16530_v3  ;;  %13236 = vmatprep.mubr.msk.bf16.mxu1 %vm16265_vm3, %v16532_v13  ;;  %v16620_v12 = vpack.c.bf16 %v715_v33, %v716_v40  ;;  %v16637_v33 = vld [vmem:[%s16219_s18 + $0xf8] sm:$0xff]  ;;  %v15485_v40 = vld [vmem:[#allocation9 + $0x1c8] sm:$0xff]   ;;  %s10997_s18 = scalar_lea.sflag [#allocation17], %s16215_s20 }
  0xee   : > { %13460 = vmatprep.mubr.msk.bf16.mxu0 %vm16465_vm5, %v16536_v8  ;;  %13489 = vmatpush3.bf16.msra.mxu0 %v15471_v0  ;;  %v16570_v0 = vpack.c.bf16 %v595_v52, %v593_v22  ;;  %v16594_v22 = vpack.c.bf16 %v706_v9, %v707_v17  ;;  %v18143_v9 = vmov 0   ;;  %v16618_v52 = vpack.c.bf16 %v712_v59, %v713_v51 }
  0xef   : > { %13490 = vmatprep.subr.bf16.mxu0 %v15473_v19  ;;  %v729_v59 = vrot.slane %v16616_v41, 1  ;;  %v730_v28 = vrot.slane %v16637_v33, 1  ;;  %v599_v17 = vrot.slane %v16616_v41, 7  ;;  %v16666_v20 = vpack.c.bf16 %v16637_v33, %v16616_v41  ;;  %v15504_v41 = vld [vmem:[#allocation9 + $0xf8] sm:$0xff]  }
  0xf0   : > { %v600_v51 = vrot.slane %v16637_v33, 7  ;;  %v15502_v33 = vld [vmem:[#allocation9 + $0xf0] sm:$0xff]  }
  0xf2   : > { %13491 = vmatpush3.bf16.msra.mxu0 %v15473_v19  ;;  %v15481_v19 = vld [vmem:[#allocation9 + $0x1b8] sm:$0xff]  }
  0xf3   : > { %13492 = vmatprep.subr.bf16.mxu0 %v15475_v62 }
  0xf4   : > { %13237 = vmatmul.mubr.msk.bf16.gmra.mrb[24].mxu1 %vm16265_vm3, %v16564_v63 }
  0xf5   : > { %13461 = vmatmul.mubr.msk.bf16.gmra.mrb[8].mxu0 %vm16465_vm5, %v16568_v49  ;;  %13240 = vmatprep.mubr.msk.bf16.mxu1 %vm16265_vm3, %v16570_v0 }
  0xf6   : > { %13464 = vmatprep.mubr.msk.bf16.mxu0 %vm16465_vm5, %v16572_v4  ;;  %13493 = vmatpush3.bf16.msra.mxu0 %v15475_v62  ;;  %v16639_v62 = vpack.c.bf16 %v718_v5, %v719_v45  ;;  %v728_v5 = vsel %vm683_vm4, %v726_v57, %v727_v26  ;;  %v15490_v57 = vld [vmem:[#allocation9 + $0xc0] sm:$0xff]  }
  0xf7   : > { %13494 = vmatprep.subr.bf16.mxu0 %v15477_v47  ;;  %v18145_v45 = vld [vmem:[#allocation29_spill] sm:$0xff] }
  0xfa   : > { %13495 = vmatpush3.bf16.msra.mxu0 %v15477_v47  ;;  %v725_v47 = vsel %vm683_vm4, %v723_v21, %v724_v54 }
  0xfb   : > { %13496 = vmatprep.subr.bf16.mxu0 %v15479_v2 }
  0xfc   : > { %13241 = vmatmul.mubr.msk.bf16.gmra.mrb[28].mxu1 %vm16265_vm3, %v16592_v29 }
  0xfd   : > { %13465 = vmatmul.mubr.msk.bf16.gmra.mrb[12].mxu0 %vm16465_vm5, %v16594_v22  ;;  %13260 = vmatprep.mubr.bf16.mxu1 %v18143_v9 }
  0xfe   : > { %13468 = vmatprep.mubr.msk.bf16.mxu0 %vm16465_vm5, %v16596_v25  ;;  %13497 = vmatpush3.bf16.msra.mxu0 %v15479_v2  ;;  %v15486_v2 = vld [vmem:[#allocation9 + $0xb0] sm:$0xff]  }
  0xff   : > { %13498 = vmatprep.subr.bf16.mxu0 %v15481_v19 }
 0x102   : > { %13499 = vmatpush3.bf16.msra.mxu0 %v15481_v19  ;;  %v731_v19 = vsel %vm683_vm4, %v729_v59, %v730_v28  ;;  %v18144_v59 = vld [vmem:[#allocation26_spill] sm:$0xff] }
 0x103   : > { %13532 = vmatprep.subr.bf16.mxu0 %v16608_v36  ;;  %v16672_v21 = vpack.c.bf16 %v730_v28, %v731_v19  ;;  %v18147_v28 = vld [vmem:[#allocation30_spill] sm:$0xff] }
 0x104   : > { %13261 = vmatmul.mubr.bf16.vlgmr.msra.gmra.mrb[0].mxu1 %v16242_v15  ;;  %v722_v15 = vsel %vm683_vm4, %v720_v11, %v721_v60  ;;  %v16654_v11 = vpack.c.bf16 %v724_v54, %v725_v47  ;;  %v15488_v54 = vld [vmem:[#allocation9 + $0xb8] sm:$0xff]   ;;  %v15494_v19 = vld [vmem:[#allocation9 + $0xd0] sm:$0xff]  }
 0x105   : > { %13469 = vmatmul.mubr.msk.bf16.gmra.mrb[16].mxu0 %vm16465_vm5, %v16618_v52  ;;  %13293 = vmatpush3.bf16.msra.mxu1 %v16493_v37  ;;  %v15480_v37 = vld [vmem:[#allocation9 + $0x98] sm:$0xff]   ;;  %v16641_v48 = vpack.c.bf16 %v721_v60, %v722_v15  ;;  %v16656_v60 = vpack.c.bf16 %v727_v26, %v728_v5  ;;  %v15491_v26 = vld [vmem:[#allocation9 + $0x1e0] sm:$0xff]  }
 0x106   : > { %13264 = vmatprep.mubr.bf16.mxu1 %v16273_v34  ;;  %13472 = vmatprep.mubr.msk.bf16.mxu0 %vm16465_vm5, %v16620_v12  ;;  %v18146_v15 = vld [vmem:[#allocation27_spill] sm:$0xff]  ;;  %v18148_v47 = vld [vmem:[#allocation28_spill] sm:$0xff] }
 0x107   : > { %13294 = vmatprep.subr.bf16.mxu1 %v15476_v31  ;;  %v15499_v5 = vld [vmem:[#allocation9 + $0x200] sm:$0xff]  }
 0x109   : > { %13295 = vmatpush3.bf16.msra.mxu1 %v15476_v31  ;;  %v15487_v31 = vld [vmem:[#allocation9 + $0x1d0] sm:$0xff]  }
 0x10a   : > { %13296 = vmatprep.subr.bf16.mxu1 %v15478_v46 }
 0x10c   : > { %13265 = vmatmul.mubr.bf16.gmra.mrb[4].mxu1 %v16289_v43 }
 0x10d   : > { %13473 = vmatmul.mubr.msk.bf16.gmra.mrb[20].mxu0 %vm16465_vm5, %v16639_v62  ;;  %13268 = vmatprep.mubr.bf16.mxu1 %v16324_v56 }
 0x10e   : > { %13476 = vmatprep.mubr.msk.bf16.mxu0 %vm16465_vm5, %v16641_v48  ;;  %13297 = vmatpush3.bf16.msra.mxu1 %v15478_v46  ;;  %v15489_v46 = vld [vmem:[#allocation9 + $0x1d8] sm:$0xff]  }
 0x10f   : > { %13298 = vmatprep.subr.bf16.mxu1 %v15480_v37 }
 0x112   : > { %13299 = vmatpush3.bf16.msra.mxu1 %v15480_v37  ;;  %v15495_v37 = vld [vmem:[#allocation9 + $0x1f0] sm:$0xff]  }
 0x113   : > { %13300 = vmatprep.subr.bf16.mxu1 %v15482_v38 }
 0x114   : > { %13269 = vmatmul.mubr.bf16.gmra.mrb[8].mxu1 %v16341_v1 }
 0x115   : > { %13477 = vmatmul.mubr.msk.bf16.gmra.mrb[24].mxu0 %vm16465_vm5, %v16654_v11  ;;  %13272 = vmatprep.mubr.bf16.mxu1 %v16414_v42 }
 0x116   : > { %13480 = vmatprep.mubr.msk.bf16.mxu0 %vm16465_vm5, %v16656_v60  ;;  %13301 = vmatpush3.bf16.msra.mxu1 %v15482_v38  ;;  %v15497_v38 = vld [vmem:[#allocation9 + $0x1f8] sm:$0xff]  }
 0x117   : > { %13302 = vmatprep.subr.bf16.mxu1 %v15484_v16 }
 0x11a   : > { %13303 = vmatpush3.bf16.msra.mxu1 %v15484_v16  ;;  %v15492_v16 = vld [vmem:[#allocation9 + $0xc8] sm:$0xff]  }
 0x11b   : > { %13304 = vmatprep.subr.bf16.mxu1 %v15486_v2 }
 0x11c   : > { %13273 = vmatmul.mubr.bf16.gmra.mrb[12].mxu1 %v16428_v50 }
 0x11d   : > { %13481 = vmatmul.mubr.msk.bf16.gmra.mrb[28].mxu0 %vm16465_vm5, %v16672_v21  ;;  %13276 = vmatprep.mubr.bf16.mxu1 %v16456_v14 }
 0x11e   : > { %13500 = vmatprep.mubr.msk.bf16.mxu0 %vm16265_vm3, %v16283_v39  ;;  %13305 = vmatpush3.bf16.msra.mxu1 %v15486_v2  ;;  %v18149_v2 = vld [vmem:[#allocation31_spill] sm:$0xff] }
 0x11f   : > { %13306 = vmatprep.subr.bf16.mxu1 %v15488_v54 }
 0x122   : > { %13307 = vmatpush3.bf16.msra.mxu1 %v15488_v54  ;;  %v15496_v54 = vld [vmem:[#allocation9 + $0xd8] sm:$0xff]  }
 0x123   : > { %13340 = vmatprep.subr.bf16.mxu1 %v15490_v57 }
 0x124   : > { %13277 = vmatmul.mubr.bf16.gmra.mrb[16].mxu1 %v16320_v55 }
 0x125   : > { %13501 = vmatmul.mubr.msk.bf16.vlgmr.msra.gmra.mrb[0].mxu0 %vm16265_vm3, %v16313_v53  ;;  %13280 = vmatprep.mubr.bf16.mxu1 %v16353_v6 }
 0x126   : > { %13533 = vmatpush3.bf16.msra.mxu0 %v16608_v36  ;;  %13504 = vmatprep.mubr.msk.bf16.mxu0 %vm16265_vm3, %v16326_v58  ;;  %v15493_v36 = vld [vmem:[#allocation9 + $0x1e8] sm:$0xff]  }
 0x127   : > { %13534 = vmatprep.subr.bf16.mxu0 %v15485_v40 }
 0x12a   : > { %13535 = vmatpush3.bf16.msra.mxu0 %v15485_v40  ;;  %v601_v40 = vsel %vm553_vm0, %v599_v17, %v600_v51  ;;  %v15658_v51 = vld [vmem:[#allocation9 + $0x100] sm:$0xff]  }
 0x12b   : > { %13536 = vmatprep.subr.bf16.mxu0 %v15487_v31 }
 0x12c   : > { %13281 = vmatmul.mubr.bf16.gmra.mrb[20].mxu1 %v16357_v7 }
 0x12d   : > { %13505 = vmatmul.mubr.msk.bf16.gmra.mrb[4].mxu0 %vm16265_vm3, %v16402_v30  ;;  %13284 = vmatprep.mubr.bf16.mxu1 %v16392_v24 }
 0x12e   : > { %13508 = vmatprep.mubr.msk.bf16.mxu0 %vm16265_vm3, %v16416_v44  ;;  %13537 = vmatpush3.bf16.msra.mxu0 %v15487_v31  ;;  %v15500_v31 = vld [vmem:[#allocation9 + $0xe8] sm:$0xff]  }
 0x12f   : > { %13538 = vmatprep.subr.bf16.mxu0 %v15489_v46 }
 0x132   : > { %13539 = vmatpush3.bf16.msra.mxu0 %v15489_v46  ;;  %v16747_v46 = vpack.c.bf16 %v601_v40, %v599_v17  ;;  %v15501_v17 = vld [vmem:[#allocation9 + $0x208] sm:$0xff]  }
 0x133   : > { %13540 = vmatprep.subr.bf16.mxu0 %v15491_v26 }
 0x134   : > { %13285 = vmatmul.mubr.bf16.gmra.mrb[24].mxu1 %v18144_v59 }
 0x135   : > { %13509 = vmatmul.mubr.msk.bf16.gmra.mrb[8].mxu0 %vm16265_vm3, %v18145_v45  ;;  %13288 = vmatprep.mubr.bf16.mxu1 %v18146_v15 }
 0x136   : > { %13512 = vmatprep.mubr.msk.bf16.mxu0 %vm16265_vm3, %v18147_v28  ;;  %13541 = vmatpush3.bf16.msra.mxu0 %v15491_v26  ;;  %v15505_v26 = vld [vmem:[#allocation9 + $0x218] sm:$0xff]  }
 0x137   : > { %13542 = vmatprep.subr.bf16.mxu0 %v15493_v36 }
 0x13a   : > { %13543 = vmatpush3.bf16.msra.mxu0 %v15493_v36  ;;  %v18150_v36 = vld [vmem:[#allocation25_spill] sm:$0xff] }
 0x13b   : > { %13544 = vmatprep.subr.bf16.mxu0 %v15495_v37 }
 0x13c   : > { %13289 = vmatmul.mubr.bf16.gmra.mrb[28].mxu1 %v18148_v47 }
 0x13d   : > { %13513 = vmatmul.mubr.msk.bf16.gmra.mrb[12].mxu0 %vm16265_vm3, %v16491_v35  ;;  %13308 = vmatprep.mubr.bf16.mxu1 %v18143_v9 }
 0x13e   : > { %13516 = vmatprep.mubr.msk.bf16.mxu0 %vm16265_vm3, %v16497_v18  ;;  %13545 = vmatpush3.bf16.msra.mxu0 %v15495_v37 }
 0x13f   : > { %13546 = vmatprep.subr.bf16.mxu0 %v15497_v38 }
 0x142   : > { %13547 = vmatpush3.bf16.msra.mxu0 %v15497_v38 }
 0x143   : > { %13580 = vmatprep.subr.bf16.mxu0 %v15499_v5 }
 0x144   : > { %13309 = vmatmul.mubr.msk.bf16.vlgmr.msra.gmra.mrb[0].mxu1 %vm16465_vm5, %v18149_v2 }
 0x145   : > { %13517 = vmatmul.mubr.msk.bf16.gmra.mrb[16].mxu0 %vm16265_vm3, %v16528_v61  ;;  %13341 = vmatpush3.bf16.msra.mxu1 %v15490_v57  ;;  %v15498_v57 = vld [vmem:[#allocation9 + $0xe0] sm:$0xff]  }
 0x146   : > { %13312 = vmatprep.mubr.msk.bf16.mxu1 %vm16465_vm5, %v16495_v10  ;;  %13520 = vmatprep.mubr.msk.bf16.mxu0 %vm16265_vm3, %v16532_v13 }
 0x147   : > { %13342 = vmatprep.subr.bf16.mxu1 %v15492_v16 }
 0x149   : > { %13343 = vmatpush3.bf16.msra.mxu1 %v15492_v16 }
 0x14a   : > { %13344 = vmatprep.subr.bf16.mxu1 %v15494_v19 }
 0x14c   : > { %13313 = vmatmul.mubr.msk.bf16.gmra.mrb[4].mxu1 %vm16465_vm5, %v16501_v27 }
 0x14d   : > { %13521 = vmatmul.mubr.msk.bf16.gmra.mrb[20].mxu0 %vm16265_vm3, %v16564_v63  ;;  %13316 = vmatprep.mubr.msk.bf16.mxu1 %vm16465_vm5, %v16530_v3 }
 0x14e   : > { %13524 = vmatprep.mubr.msk.bf16.mxu0 %vm16265_vm3, %v16570_v0  ;;  %13345 = vmatpush3.bf16.msra.mxu1 %v15494_v19 }
 0x14f   : > { %13346 = vmatprep.subr.bf16.mxu1 %v15496_v54 }
 0x152   : > { %13347 = vmatpush3.bf16.msra.mxu1 %v15496_v54 }
 0x153   : > { %13348 = vmatprep.subr.bf16.mxu1 %v15498_v57 }
 0x154   : > { %13317 = vmatmul.mubr.msk.bf16.gmra.mrb[8].mxu1 %vm16465_vm5, %v16536_v8 }
 0x155   : > { %13525 = vmatmul.mubr.msk.bf16.gmra.mrb[24].mxu0 %vm16265_vm3, %v16592_v29  ;;  %13320 = vmatprep.mubr.msk.bf16.mxu1 %vm16465_vm5, %v16568_v49 }
 0x156   : > { %13528 = vmatprep.mubr.msk.bf16.mxu0 %vm16265_vm3, %v16747_v46  ;;  %13349 = vmatpush3.bf16.msra.mxu1 %v15498_v57 }
 0x157   : > { %13350 = vmatprep.subr.bf16.mxu1 %v15500_v31 }
 0x15a   : > { %13351 = vmatpush3.bf16.msra.mxu1 %v15500_v31 }
 0x15b   : > { %13352 = vmatprep.subr.bf16.mxu1 %v15502_v33 }
 0x15c   : > { %13321 = vmatmul.mubr.msk.bf16.gmra.mrb[12].mxu1 %vm16465_vm5, %v16572_v4 }
 0x15d   : > { %13529 = vmatmul.mubr.bf16.gmra.mrb[28].mxu0 %v18143_v9  ;;  %13324 = vmatprep.mubr.msk.bf16.mxu1 %vm16465_vm5, %v16594_v22 }
 0x15e   : > { %13548 = vmatprep.mubr.bf16.mxu0 %v16273_v34  ;;  %13353 = vmatpush3.bf16.msra.mxu1 %v15502_v33  ;;  %v15503_v34 = vld [vmem:[#allocation9 + $0x210] sm:$0xff]  }
 0x15f   : > { %13354 = vmatprep.subr.bf16.mxu1 %v15504_v41 }
 0x162   : > { %13355 = vmatpush3.bf16.msra.mxu1 %v15504_v41 }
 0x163   : > { %14551 = vmatprep.subr.bf16.mxu1 %v15658_v51 }
 0x164   : > { %13325 = vmatmul.mubr.msk.bf16.gmra.mrb[16].mxu1 %vm16465_vm5, %v16596_v25 }
 0x165   : > { %13549 = vmatmul.mubr.bf16.vlgmr.msra.gmra.mrb[0].mxu0 %v16289_v43  ;;  %13328 = vmatprep.mubr.msk.bf16.mxu1 %vm16465_vm5, %v16618_v52  ;;  %v15506_v43 = vld [vmem:[#allocation9 + $0x220] sm:$0xff]  }
 0x166   : > { %13581 = vmatpush3.bf16.msra.mxu0 %v15499_v5  ;;  %13552 = vmatprep.mubr.bf16.mxu0 %v16324_v56  ;;  %v15507_v56 = vld [vmem:[#allocation9 + $0x228] sm:$0xff]  }
 0x167   : > { %13582 = vmatprep.subr.bf16.mxu0 %v15501_v17 }
 0x16a   : > { %13583 = vmatpush3.bf16.msra.mxu0 %v15501_v17 }
 0x16b   : > { %13584 = vmatprep.subr.bf16.mxu0 %v15503_v34 }
 0x16c   : > { %13329 = vmatmul.mubr.msk.bf16.gmra.mrb[20].mxu1 %vm16465_vm5, %v16620_v12 }
 0x16d   : > { %13553 = vmatmul.mubr.bf16.gmra.mrb[4].mxu0 %v16341_v1  ;;  %13332 = vmatprep.mubr.msk.bf16.mxu1 %vm16465_vm5, %v16639_v62  ;;  %v15508_v1 = vld [vmem:[#allocation9 + $0x230] sm:$0xff]  }
 0x16e   : > { %13556 = vmatprep.mubr.bf16.mxu0 %v16414_v42  ;;  %13585 = vmatpush3.bf16.msra.mxu0 %v15503_v34  ;;  %v15509_v42 = vld [vmem:[#allocation9 + $0x238] sm:$0xff]  }
 0x16f   : > { %13586 = vmatprep.subr.bf16.mxu0 %v15505_v26 }
 0x172   : > { %13587 = vmatpush3.bf16.msra.mxu0 %v15505_v26 }
 0x173   : > { %13588 = vmatprep.subr.bf16.mxu0 %v15506_v43 }
 0x174   : > { %13333 = vmatmul.mubr.msk.bf16.gmra.mrb[24].mxu1 %vm16465_vm5, %v16641_v48 }
 0x175   : > { %13557 = vmatmul.mubr.bf16.gmra.mrb[8].mxu0 %v16428_v50  ;;  %13336 = vmatprep.mubr.msk.bf16.mxu1 %vm16465_vm5, %v16654_v11  ;;  %v15659_v50 = vld [vmem:[#allocation9 + $0x108] sm:$0xff]  }
 0x176   : > { %13560 = vmatprep.mubr.bf16.mxu0 %v16456_v14  ;;  %13589 = vmatpush3.bf16.msra.mxu0 %v15506_v43  ;;  %v15660_v14 = vld [vmem:[#allocation9 + $0x110] sm:$0xff]  }
 0x177   : > { %13590 = vmatprep.subr.bf16.mxu0 %v15507_v56 }
 0x17a   : > { %13591 = vmatpush3.bf16.msra.mxu0 %v15507_v56 }
 0x17b   : > { %13592 = vmatprep.subr.bf16.mxu0 %v15508_v1 }
 0x17c   : > { %13337 = vmatmul.mubr.msk.bf16.gmra.mrb[28].mxu1 %vm16465_vm5, %v16656_v60 }
 0x17d   : > { %13561 = vmatmul.mubr.bf16.gmra.mrb[12].mxu0 %v16320_v55  ;;  %13356 = vmatprep.mubr.msk.bf16.mxu1 %vm16265_vm3, %v18150_v36 }
 0x17e   : > { %13564 = vmatprep.mubr.bf16.mxu0 %v16353_v6  ;;  %13593 = vmatpush3.bf16.msra.mxu0 %v15508_v1 }
 0x17f   : > { %13594 = vmatprep.subr.bf16.mxu0 %v15509_v42 }
 0x182   : > { %13595 = vmatpush3.bf16.msra.mxu0 %v15509_v42 }
 0x184   : > { %13357 = vmatmul.mubr.msk.bf16.vlgmr.msra.gmra.mrb[0].mxu1 %vm16265_vm3, %v16283_v39  ;;  %v15661_v39 = vld [vmem:[#allocation9 + $0x118] sm:$0xff]  }
 0x185   : > { %13565 = vmatmul.mubr.bf16.gmra.mrb[16].mxu0 %v16357_v7  ;;  %14559 = vmatpush3.bf16.msra.mxu1 %v15658_v51 }
 0x186   : > { %13360 = vmatprep.mubr.msk.bf16.mxu1 %vm16265_vm3, %v16313_v53  ;;  %13568 = vmatprep.mubr.bf16.mxu0 %v16392_v24  ;;  %v15662_v53 = vld [vmem:[#allocation9 + $0x120] sm:$0xff]  }
 0x187   : > { %14552 = vmatprep.subr.bf16.mxu1 %v15659_v50 }
 0x189   : > { %14560 = vmatpush3.bf16.msra.mxu1 %v15659_v50 }
 0x18a   : > { %14553 = vmatprep.subr.bf16.mxu1 %v15660_v14 }
 0x18c   : > { %13361 = vmatmul.mubr.msk.bf16.gmra.mrb[4].mxu1 %vm16265_vm3, %v16326_v58  ;;  %v15663_v58 = vld [vmem:[#allocation9 + $0x128] sm:$0xff]  }
 0x18d   : > { %13569 = vmatmul.mubr.bf16.gmra.mrb[20].mxu0 %v18144_v59  ;;  %13364 = vmatprep.mubr.msk.bf16.mxu1 %vm16265_vm3, %v16402_v30  ;;  %v15664_v30 = vld [vmem:[#allocation9 + $0x130] sm:$0xff]  }
 0x18e   : > { %13572 = vmatprep.mubr.bf16.mxu0 %v18146_v15  ;;  %14561 = vmatpush3.bf16.msra.mxu1 %v15660_v14 }
 0x18f   : > { %14554 = vmatprep.subr.bf16.mxu1 %v15661_v39 }
 0x192   : > { %14562 = vmatpush3.bf16.msra.mxu1 %v15661_v39 }
 0x193   : > { %14555 = vmatprep.subr.bf16.mxu1 %v15662_v53 }
 0x194   : > { %13365 = vmatmul.mubr.msk.bf16.gmra.mrb[8].mxu1 %vm16265_vm3, %v16416_v44  ;;  %v15665_v44 = vld [vmem:[#allocation9 + $0x138] sm:$0xff]  }
 0x195   : > { %13573 = vmatmul.mubr.bf16.gmra.mrb[24].mxu0 %v18148_v47  ;;  %13368 = vmatprep.mubr.msk.bf16.mxu1 %vm16265_vm3, %v18145_v45 }
 0x196   : > { %13576 = vmatprep.mubr.bf16.mxu0 %v16666_v20  ;;  %14563 = vmatpush3.bf16.msra.mxu1 %v15662_v53 }
 0x197   : > { %14556 = vmatprep.subr.bf16.mxu1 %v15663_v58 }
 0x19a   : > { %14564 = vmatpush3.bf16.msra.mxu1 %v15663_v58 }
 0x19b   : > { %14557 = vmatprep.subr.bf16.mxu1 %v15664_v30 }
 0x19c   : > { %13369 = vmatmul.mubr.msk.bf16.gmra.mrb[12].mxu1 %vm16265_vm3, %v18147_v28 }
 0x19d   : > { %13577 = vmatmul.mubr.bf16.gmra.mrb[28].mxu0 %v18143_v9  ;;  %13372 = vmatprep.mubr.msk.bf16.mxu1 %vm16265_vm3, %v16491_v35  ;;  %v15514_v35 = vld [vmem:[#allocation11 + $0x20] sm:$0xff]  }
 0x19e   : > { %13596 = vmatprep.mubr.msk.bf16.mxu0 %vm16465_vm5, %v16495_v10  ;;  %14565 = vmatpush3.bf16.msra.mxu1 %v15664_v30  ;;  %v15516_v10 = vld [vmem:[#allocation11 + $0x30] sm:$0xff]  }
 0x19f   : > { %14558 = vmatprep.subr.bf16.mxu1 %v15665_v44 }
 0x1a2   : > { %14566 = vmatpush3.bf16.msra.mxu1 %v15665_v44 }
 0x1a4   : > { %13373 = vmatmul.mubr.msk.bf16.gmra.mrb[16].mxu1 %vm16265_vm3, %v16497_v18  ;;  %v15517_v18 = vld [vmem:[#allocation11 + $0x38] sm:$0xff]  }
 0x1a5   : > { %13597 = vmatmul.mubr.msk.bf16.vlgmr.msra.gmra.mrb[0].mxu0 %vm16465_vm5, %v16501_v27  ;;  %13376 = vmatprep.mubr.msk.bf16.mxu1 %vm16265_vm3, %v16528_v61  ;;  %v15515_v27 = vld [vmem:[#allocation11 + $0x28] sm:$0xff]   ;;  %v16909_v61 = vld [vmem:[#allocation11 + $0x40] sm:$0xff]  }
 0x1a6   : > { %13600 = vmatprep.mubr.msk.bf16.mxu0 %vm16465_vm5, %v16530_v3 }
 0x1ac   : > { %13377 = vmatmul.mubr.msk.bf16.gmra.mrb[20].mxu1 %vm16265_vm3, %v16532_v13 }
 0x1ad   : > { %13601 = vmatmul.mubr.msk.bf16.gmra.mrb[4].mxu0 %vm16465_vm5, %v16536_v8  ;;  %13380 = vmatprep.mubr.msk.bf16.mxu1 %vm16265_vm3, %v16564_v63 }
 0x1ae   : > { %13604 = vmatprep.mubr.msk.bf16.mxu0 %vm16465_vm5, %v16568_v49 }
 0x1b4   : > { %13381 = vmatmul.mubr.msk.bf16.gmra.mrb[24].mxu1 %vm16265_vm3, %v16570_v0 }
 0x1b5   : > { %13605 = vmatmul.mubr.msk.bf16.gmra.mrb[8].mxu0 %vm16465_vm5, %v16572_v4  ;;  %13384 = vmatprep.mubr.msk.bf16.mxu1 %vm16265_vm3, %v16592_v29 }
 0x1b6   : > { %13608 = vmatprep.mubr.msk.bf16.mxu0 %vm16465_vm5, %v16594_v22 }
 0x1bc   : > { %13385 = vmatmul.mubr.msk.bf16.gmra.mrb[28].mxu1 %vm16265_vm3, %v16747_v46 }
 0x1bd   : > { %13609 = vmatmul.mubr.msk.bf16.gmra.mrb[12].mxu0 %vm16465_vm5, %v16596_v25  ;;  %13420 = vmatprep.mubr.bf16.mxu1 %v16320_v55  ;;  %v15510_v55 = vld [vmem:[#allocation11] sm:$0xff]  }
 0x1be   : > { %13612 = vmatprep.mubr.msk.bf16.mxu0 %vm16465_vm5, %v16618_v52  ;;  %13628 = vmatprep.subr.bf16.mxu1 %v15510_v55 }
 0x1c4   : > { %13421 = vmatmul.mubr.bf16.vlgmr.msra.gmra.mrb[16].mxu1 %v16353_v6  ;;  %v15511_v6 = vld [vmem:[#allocation11 + $0x8] sm:$0xff]  }
 0x1c5   : > { %13613 = vmatmul.mubr.msk.bf16.gmra.mrb[16].mxu0 %vm16465_vm5, %v16620_v12  ;;  %13424 = vmatprep.mubr.bf16.mxu1 %v16357_v7  ;;  %v15512_v7 = vld [vmem:[#allocation11 + $0x10] sm:$0xff]  }
 0x1c6   : > { %13616 = vmatprep.mubr.msk.bf16.mxu0 %vm16465_vm5, %v16639_v62  ;;  %13629 = vmatpush3.bf16.msra.mxu1 %v15510_v55 }
 0x1c7   : > { %13630 = vmatprep.subr.bf16.mxu1 %v15511_v6 }
 0x1ca   : > { %13631 = vmatpush3.bf16.msra.mxu1 %v15511_v6 }
 0x1cb   : > { %13632 = vmatprep.subr.bf16.mxu1 %v15512_v7 }
 0x1cc   : > { %13425 = vmatmul.mubr.bf16.gmra.mrb[20].mxu1 %v16392_v24  ;;  %v15513_v24 = vld [vmem:[#allocation11 + $0x18] sm:$0xff]  }
 0x1cd   : > { %13617 = vmatmul.mubr.msk.bf16.gmra.mrb[20].mxu0 %vm16465_vm5, %v16641_v48  ;;  %13428 = vmatprep.mubr.bf16.mxu1 %v18144_v59 }
 0x1ce   : > { %13620 = vmatprep.mubr.msk.bf16.mxu0 %vm16465_vm5, %v16654_v11  ;;  %13633 = vmatpush3.bf16.msra.mxu1 %v15512_v7 }
 0x1cf   : > { %13634 = vmatprep.subr.bf16.mxu1 %v15513_v24 }
 0x1d2   : > { %13635 = vmatpush3.bf16.msra.mxu1 %v15513_v24 }
 0x1d3   : > { %13636 = vmatprep.subr.bf16.mxu1 %v15514_v35 }
 0x1d4   : > { %13429 = vmatmul.mubr.bf16.gmra.mrb[24].mxu1 %v18146_v15 }
 0x1d5   : > { %13621 = vmatmul.mubr.msk.bf16.gmra.mrb[24].mxu0 %vm16465_vm5, %v16656_v60  ;;  %13432 = vmatprep.mubr.bf16.mxu1 %v18148_v47 }
 0x1d6   : > { %13624 = vmatprep.mubr.msk.bf16.mxu0 %vm16465_vm5, %v16672_v21  ;;  %13637 = vmatpush3.bf16.msra.mxu1 %v15514_v35  ;;  %v16931_v21 = vld [vmem:[%s18072_s2] ss:$0 sm:$0xff] }
 0x1d7   : > { %13638 = vmatprep.subr.bf16.mxu1 %v15515_v27 }
 0x1da   : > { %13639 = vmatpush3.bf16.msra.mxu1 %v15515_v27 }
 0x1db   : > { %13640 = vmatprep.subr.bf16.mxu1 %v15516_v10 }
 0x1dc   : > { %13433 = vmatmul.mubr.bf16.gmra.mrb[28].mxu1 %v16666_v20 }
 0x1dd   : > { %13625 = vmatmul.mubr.bf16.gmra.mrb[28].mxu0 %v18143_v9  ;;  %13644 = vmatprep.mubr.bf16.mxu1 %v18143_v9 }
 0x1de   : > { %14076 = vmatprep.mubr.bf16.mxu0 %v18143_v9  ;;  %13641 = vmatpush3.bf16.msra.mxu1 %v15516_v10 }
 0x1df   : > { %13642 = vmatprep.subr.bf16.mxu1 %v15517_v18 }
 0x1e2   : > { %13643 = vmatpush3.bf16.msra.mxu1 %v15517_v18 }
 0x1e3   : > { %13676 = vmatprep.subr.bf16.mxu1 %v16909_v61 }
 0x257   : > { %v13358_v3 = vpop.f32.mrb[0].mxu1 }
 0x258   : > { %v1877_v13 = vpop.f32.mrb[1].mxu1 }
 0x259   : > { %v13359_v8 = vpop.f32.mrb[2].mxu1 }
 0x25a   : > { %v1880_v63 = vpop.f32.mrb[3].mxu1 }
 0x25f   : > { %v13362_v49 = vpop.f32.mrb[4].mxu1 }
 0x260   : > { %v1893_v0 = vpop.f32.mrb[5].mxu1 }
 0x261   : > { %v13363_v4 = vpop.f32.mrb[6].mxu1 }
 0x262   : > { %v1896_v29 = vpop.f32.mrb[7].mxu1 }
 0x267   : > { %v16912_v22 = vpop.f32.mrb[8].mxu1 }
 0x268   : > { %v16914_v25 = vpop.f32.mrb[9].mxu1 }
 0x269   : > { %v16916_v52 = vpop.f32.mrb[10].mxu1 }
 0x26a   : > { %v16918_v12 = vpop.f32.mrb[11].mxu1 }
 0x26f   : > { %v16920_v62 = vpop.f32.mrb[12].mxu1 }
 0x270   : > { %v16922_v48 = vpop.f32.mrb[13].mxu1 }
 0x271   : > { %v16924_v11 = vpop.f32.mrb[14].mxu1 }
 0x272   : > { %v16926_v60 = vpop.f32.mrb[15].mxu1 }
 0x278   : > { %v13598_v20 = vpop.f32.mrb[0].mxu0 }
 0x279   : > { %v14567_v59 = vadd.f32 %v13598_v20, %v13358_v3  ;;  %v3570_v45 = vpop.f32.mrb[1].mxu0 }
 0x27a   : > { %v14568_v15 = vadd.f32 %v3570_v45, %v1877_v13  ;;  %v13599_v37 = vpop.f32.mrb[2].mxu0  ;;  %v15519_v13 = vld [vmem:[#allocation11 + $0x48] sm:$0xff]  }
 0x27b   : > { %v3834_v28 = vadd.f32 %v14567_v59, %v16931_v21  ;;  %v14569_v38 = vadd.f32 %v13599_v37, %v13359_v8  ;;  %v3573_v47 = vpop.f32.mrb[3].mxu0 }
 0x27c   : > { %v3832_v5 = vadd.f32 %v14568_v15, %v16931_v21  ;;  %v14570_v16 = vadd.f32 %v3573_v47, %v1880_v63 }
 0x27d   : > { %v3866_v2 = vmax.f32 %v3834_v28, 0.0  ;;  %v3835_v19 = vadd.f32 %v14569_v38, %v16931_v21 }
 0x27e   : > { %v3864_v54 = vmax.f32 %v3832_v5, 0.0  ;;  %v3833_v57 = vadd.f32 %v14570_v16, %v16931_v21  ;;  %v15520_v16 = vld [vmem:[#allocation11 + $0x50] sm:$0xff]  }
 0x27f   : > { %v3963_v40 = vrot.slane %v3866_v2, 7  ;;  %v3867_v31 = vmax.f32 %v3835_v19, 0.0  ;;  %v4091_v46 = vrot.slane %v3866_v2, 1 }
 0x280   : > { %v3960_v33 = vrot.slane %v3864_v54, 7  ;;  %v4088_v41 = vrot.slane %v3864_v54, 1  ;;  %v3865_v17 = vmax.f32 %v3833_v57, 0.0  ;;  %v13602_v51 = vpop.f32.mrb[4].mxu0 }
 0x281   : > { %v3964_v34 = vrot.slane %v3867_v31, 7  ;;  %v4092_v26 = vrot.slane %v3867_v31, 1  ;;  %v14571_v43 = vadd.f32 %v13602_v51, %v13362_v49  ;;  %v3586_v56 = vpop.f32.mrb[5].mxu0  ;;  %v16937_v1 = vpack.c.bf16 %v3867_v31, %v3866_v2 }
 0x282   : > { %v16939_v42 = vpack.c.bf16 %v3865_v17, %v3864_v54  ;;  %v3961_v36 = vrot.slane %v3865_v17, 7  ;;  %v4089_v50 = vrot.slane %v3865_v17, 1  ;;  %v14572_v14 = vadd.f32 %v3586_v56, %v1893_v0  ;;  %v13603_v39 = vpop.f32.mrb[6].mxu0 }
 0x283   : > { %v3838_v53 = vadd.f32 %v14571_v43, %v16931_v21  ;;  %v14573_v58 = vadd.f32 %v13603_v39, %v13363_v4  ;;  %v3589_v30 = vpop.f32.mrb[7].mxu0  ;;  %v3965_v44 = vsel %vm553_vm0, %v3963_v40, %v3964_v34  ;;  %v4093_v55 = vsel %vm683_vm4, %v4091_v46, %v4092_v26 }
 0x284   : > { %v3962_v6 = vsel %vm553_vm0, %v3960_v33, %v3961_v36  ;;  %v4090_v7 = vsel %vm683_vm4, %v4088_v41, %v4089_v50  ;;  %v3836_v24 = vadd.f32 %v14572_v14, %v16931_v21  ;;  %v14574_v35 = vadd.f32 %v3589_v30, %v1896_v29 }
 0x285   : > { %v16947_v27 = vpack.c.bf16 %v3962_v6, %v3960_v33  ;;  %v16949_v10 = vpack.c.bf16 %v4089_v50, %v4090_v7  ;;  %v3870_v18 = vmax.f32 %v3838_v53, 0.0  ;;  %v3839_v3 = vadd.f32 %v14573_v58, %v16931_v21 }
 0x286   : > { %v3868_v8 = vmax.f32 %v3836_v24, 0.0  ;;  %v3837_v63 = vadd.f32 %v14574_v35, %v16931_v21  ;;  %v16953_v49 = vpack.c.bf16 %v3965_v44, %v3963_v40  ;;  %v16955_v0 = vpack.c.bf16 %v4092_v26, %v4093_v55 }
 0x287   : > { %v3969_v4 = vrot.slane %v3870_v18, 7  ;;  %v3871_v20 = vmax.f32 %v3839_v3, 0.0  ;;  %13645 = vmatmul.mubr.msk.bf16.vlgmr.msra.gmra.mrb[32].mxu1 %vm16265_vm3, %v16947_v27  ;;  %v4097_v29 = vrot.slane %v3870_v18, 1 }
 0x288   : > { %v3966_v59 = vrot.slane %v3868_v8, 7  ;;  %v4094_v45 = vrot.slane %v3868_v8, 1  ;;  %v3869_v15 = vmax.f32 %v3837_v63, 0.0  ;;  %v13606_v37 = vpop.f32.mrb[8].mxu0  ;;  %13648 = vmatprep.mubr.msk.bf16.mxu1 %vm16265_vm3, %v16953_v49  ;;  %13677 = vmatpush3.bf16.msra.mxu1 %v16909_v61 }
 0x289   : > { %v3970_v28 = vrot.slane %v3871_v20, 7  ;;  %v4098_v38 = vrot.slane %v3871_v20, 1  ;;  %v14575_v47 = vadd.f32 %v13606_v37, %v16912_v22  ;;  %v3602_v5 = vpop.f32.mrb[9].mxu0  ;;  %13678 = vmatprep.subr.bf16.mxu1 %v15519_v13  ;;  %v16965_v2 = vpack.c.bf16 %v3871_v20, %v3870_v18 }
 0x28a   : > { %v3967_v19 = vrot.slane %v3869_v15, 7  ;;  %v4095_v54 = vrot.slane %v3869_v15, 1  ;;  %v14576_v57 = vadd.f32 %v3602_v5, %v16914_v25  ;;  %v13607_v40 = vpop.f32.mrb[10].mxu0  ;;  %v16968_v31 = vpack.c.bf16 %v3869_v15, %v3868_v8 }
 0x28b   : > { %v3842_v46 = vadd.f32 %v14575_v47, %v16931_v21  ;;  %v14577_v61 = vadd.f32 %v13607_v40, %v16916_v52  ;;  %v3605_v33 = vpop.f32.mrb[11].mxu0  ;;  %v3971_v41 = vsel %vm553_vm0, %v3969_v4, %v3970_v28  ;;  %v4099_v22 = vsel %vm683_vm4, %v4097_v29, %v4098_v38  ;;  %v15521_v52 = vld [vmem:[#allocation11 + $0x58] sm:$0xff]  }
 0x28c   : > { %v3840_v17 = vadd.f32 %v14576_v57, %v16931_v21  ;;  %v14578_v51 = vadd.f32 %v3605_v33, %v16918_v12  ;;  %v3968_v34 = vsel %vm553_vm0, %v3966_v59, %v3967_v19  ;;  %v16977_v26 = vpack.c.bf16 %v3971_v41, %v3969_v4  ;;  %13679 = vmatpush3.bf16.msra.mxu1 %v15519_v13  ;;  %v15522_v13 = vld [vmem:[#allocation11 + $0x60] sm:$0xff]  }
 0x28d   : > { %v3874_v25 = vmax.f32 %v3842_v46, 0.0  ;;  %v3843_v43 = vadd.f32 %v14577_v61, %v16931_v21  ;;  %v16980_v56 = vpack.c.bf16 %v3968_v34, %v3966_v59  ;;  %13680 = vmatprep.subr.bf16.mxu1 %v15520_v16  ;;  %v4096_v36 = vsel %vm683_vm4, %v4094_v45, %v4095_v54 }
 0x28e   : > { %v3872_v50 = vmax.f32 %v3840_v17, 0.0  ;;  %v3841_v14 = vadd.f32 %v14578_v51, %v16931_v21  ;;  %v16984_v39 = vpack.c.bf16 %v4095_v54, %v4096_v36  ;;  %v16986_v12 = vpack.c.bf16 %v4098_v38, %v4099_v22 }
 0x28f   : > { %v3975_v53 = vrot.slane %v3874_v25, 7  ;;  %v3875_v58 = vmax.f32 %v3843_v43, 0.0  ;;  %13649 = vmatmul.mubr.msk.bf16.gmra.mrb[36].mxu1 %vm16265_vm3, %v16980_v56  ;;  %v4103_v30 = vrot.slane %v3874_v25, 1 }
 0x290   : > { %v3972_v44 = vrot.slane %v3872_v50, 7  ;;  %v4100_v55 = vrot.slane %v3872_v50, 1  ;;  %v3873_v6 = vmax.f32 %v3841_v14, 0.0  ;;  %v13610_v7 = vpop.f32.mrb[12].mxu0  ;;  %13652 = vmatprep.mubr.msk.bf16.mxu1 %vm16265_vm3, %v16977_v26  ;;  %13681 = vmatpush3.bf16.msra.mxu1 %v15520_v16 }
 0x291   : > { %v3976_v24 = vrot.slane %v3875_v58, 7  ;;  %v4104_v35 = vrot.slane %v3875_v58, 1  ;;  %v14579_v18 = vadd.f32 %v13610_v7, %v16920_v62  ;;  %v3618_v3 = vpop.f32.mrb[13].mxu0  ;;  %13682 = vmatprep.subr.bf16.mxu1 %v15521_v52  ;;  %v16995_v8 = vpack.c.bf16 %v3875_v58, %v3874_v25 }
 0x292   : > { %v3973_v63 = vrot.slane %v3873_v6, 7  ;;  %v4101_v4 = vrot.slane %v3873_v6, 1  ;;  %v14580_v20 = vadd.f32 %v3618_v3, %v16922_v48  ;;  %v13611_v29 = vpop.f32.mrb[14].mxu0  ;;  %v16998_v59 = vpack.c.bf16 %v3873_v6, %v3872_v50 }
 0x293   : > { %v3846_v45 = vadd.f32 %v14579_v18, %v16931_v21  ;;  %v14581_v15 = vadd.f32 %v13611_v29, %v16924_v11  ;;  %v3621_v37 = vpop.f32.mrb[15].mxu0  ;;  %v3977_v28 = vsel %vm553_vm0, %v3975_v53, %v3976_v24  ;;  %v4105_v62 = vsel %vm683_vm4, %v4103_v30, %v4104_v35  ;;  %v15523_v11 = vld [vmem:[#allocation11 + $0x68] sm:$0xff]   ;;  %v15524_v30 = vld [vmem:[#allocation11 + $0x70] sm:$0xff]  }
 0x294   : > { %v3844_v38 = vadd.f32 %v14580_v20, %v16931_v21  ;;  %v14582_v47 = vadd.f32 %v3621_v37, %v16926_v60  ;;  %v3974_v5 = vsel %vm553_vm0, %v3972_v44, %v3973_v63  ;;  %v17007_v16 = vpack.c.bf16 %v3977_v28, %v3975_v53  ;;  %13683 = vmatpush3.bf16.msra.mxu1 %v15521_v52 }
 0x295   : > { %v3878_v48 = vmax.f32 %v3846_v45, 0.0  ;;  %v3847_v19 = vadd.f32 %v14581_v15, %v16931_v21  ;;  %v17010_v54 = vpack.c.bf16 %v3974_v5, %v3972_v44  ;;  %13684 = vmatprep.subr.bf16.mxu1 %v15522_v13  ;;  %v4102_v57 = vsel %vm683_vm4, %v4100_v55, %v4101_v4 }
 0x296   : > { %v3876_v40 = vmax.f32 %v3844_v38, 0.0  ;;  %v3845_v46 = vadd.f32 %v14582_v47, %v16931_v21  ;;  %v17014_v61 = vpack.c.bf16 %v4101_v4, %v4102_v57  ;;  %v17016_v60 = vpack.c.bf16 %v4104_v35, %v4105_v62  ;;  %v15525_v47 = vld [vmem:[#allocation11 + $0x78] sm:$0xff]  }
 0x297   : > { %v3981_v33 = vrot.slane %v3878_v48, 7  ;;  %v3879_v41 = vmax.f32 %v3847_v19, 0.0  ;;  %13653 = vmatmul.mubr.msk.bf16.gmra.mrb[40].mxu1 %vm16265_vm3, %v17010_v54  ;;  %v13422_v22 = vpop.f32.mrb[16].mxu1  ;;  %v4109_v17 = vrot.slane %v3878_v48, 1 }
 0x298   : > { %v3978_v51 = vrot.slane %v3876_v40, 7  ;;  %v4106_v34 = vrot.slane %v3876_v40, 1  ;;  %v3877_v25 = vmax.f32 %v3845_v46, 0.0  ;;  %v13614_v43 = vpop.f32.mrb[16].mxu0  ;;  %13656 = vmatprep.mubr.msk.bf16.mxu1 %vm16265_vm3, %v17007_v16  ;;  %v2279_v52 = vpop.f32.mrb[17].mxu1  ;;  %13685 = vmatpush3.bf16.msra.mxu1 %v15522_v13 }
 0x299   : > { %v3982_v36 = vrot.slane %v3879_v41, 7  ;;  %v4110_v50 = vrot.slane %v3879_v41, 1  ;;  %v14583_v14 = vadd.f32 %v13614_v43, %v13422_v22  ;;  %v3634_v53 = vpop.f32.mrb[17].mxu0  ;;  %v13423_v58 = vpop.f32.mrb[18].mxu1  ;;  %13686 = vmatprep.subr.bf16.mxu1 %v15523_v11  ;;  %v17024_v44 = vpack.c.bf16 %v3879_v41, %v3878_v48 }
 0x29a   : > { %v3979_v55 = vrot.slane %v3877_v25, 7  ;;  %v4107_v6 = vrot.slane %v3877_v25, 1  ;;  %v14584_v7 = vadd.f32 %v3634_v53, %v2279_v52  ;;  %v13615_v24 = vpop.f32.mrb[18].mxu0  ;;  %v2282_v35 = vpop.f32.mrb[19].mxu1  ;;  %v17026_v18 = vpack.c.bf16 %v3877_v25, %v3876_v40  ;;  %v17050_v53 = vld [vmem:[#allocation11 + $0x80] sm:$0xff]  }
 0x29b   : > { %v3850_v3 = vadd.f32 %v14583_v14, %v16931_v21  ;;  %v14585_v63 = vadd.f32 %v13615_v24, %v13423_v58  ;;  %v3637_v13 = vpop.f32.mrb[19].mxu0  ;;  %v3983_v4 = vsel %vm553_vm0, %v3981_v33, %v3982_v36  ;;  %v4111_v20 = vsel %vm683_vm4, %v4109_v17, %v4110_v50 }
 0x29c   : > { %v3848_v29 = vadd.f32 %v14584_v7, %v16931_v21  ;;  %v14586_v45 = vadd.f32 %v3637_v13, %v2282_v35  ;;  %v3980_v15 = vsel %vm553_vm0, %v3978_v51, %v3979_v55  ;;  %v17033_v37 = vpack.c.bf16 %v3983_v4, %v3981_v33  ;;  %13687 = vmatpush3.bf16.msra.mxu1 %v15523_v11 }
 0x29d   : > { %v3882_v28 = vmax.f32 %v3850_v3, 0.0  ;;  %v3851_v62 = vadd.f32 %v14585_v63, %v16931_v21  ;;  %v17036_v38 = vpack.c.bf16 %v3980_v15, %v3978_v51  ;;  %13688 = vmatprep.subr.bf16.mxu1 %v15524_v30  ;;  %v4108_v5 = vsel %vm683_vm4, %v4106_v34, %v4107_v6 }
 0x29e   : > { %18151 = vst [vmem:[#allocation26_spill] sm:$0xff] %v17033_v37  ;;  %v3880_v48 = vmax.f32 %v3848_v29, 0.0  ;;  %v3849_v19 = vadd.f32 %v14586_v45, %v16931_v21  ;;  %v17040_v57 = vpack.c.bf16 %v4107_v6, %v4108_v5  ;;  %v17042_v40 = vpack.c.bf16 %v4110_v50, %v4111_v20 }
 0x29f   : > { %v3987_v46 = vrot.slane %v3882_v28, 7  ;;  %v3883_v33 = vmax.f32 %v3851_v62, 0.0  ;;  %13657 = vmatmul.mubr.msk.bf16.gmra.mrb[44].mxu1 %vm16265_vm3, %v17036_v38  ;;  %v13426_v11 = vpop.f32.mrb[20].mxu1  ;;  %v4115_v41 = vrot.slane %v3882_v28, 1 }
 0x2a0   : > { %v3984_v22 = vrot.slane %v3880_v48, 7  ;;  %v4112_v17 = vrot.slane %v3880_v48, 1  ;;  %v3881_v51 = vmax.f32 %v3849_v19, 0.0  ;;  %v13618_v25 = vpop.f32.mrb[20].mxu0  ;;  %13660 = vmatprep.mubr.msk.bf16.mxu1 %vm16265_vm3, %v17033_v37  ;;  %v2295_v34 = vpop.f32.mrb[21].mxu1  ;;  %13689 = vmatpush3.bf16.msra.mxu1 %v15524_v30 }
 0x2a1   : > { %v3988_v43 = vrot.slane %v3883_v33, 7  ;;  %v4116_v52 = vrot.slane %v3883_v33, 1  ;;  %v14587_v36 = vadd.f32 %v13618_v25, %v13426_v11  ;;  %v3650_v50 = vpop.f32.mrb[21].mxu0  ;;  %v13427_v14 = vpop.f32.mrb[22].mxu1  ;;  %13690 = vmatprep.subr.bf16.mxu1 %v15525_v47  ;;  %v17052_v58 = vpack.c.bf16 %v3883_v33, %v3882_v28 }
 0x2a2   : > { %v3985_v55 = vrot.slane %v3881_v51, 7  ;;  %v4113_v6 = vrot.slane %v3881_v51, 1  ;;  %v14588_v7 = vadd.f32 %v3650_v50, %v2295_v34  ;;  %v13619_v24 = vpop.f32.mrb[22].mxu0  ;;  %v2298_v35 = vpop.f32.mrb[23].mxu1  ;;  %v17054_v3 = vpack.c.bf16 %v3881_v51, %v3880_v48 }
 0x2a3   : > { %v3854_v63 = vadd.f32 %v14587_v36, %v16931_v21  ;;  %v14589_v30 = vadd.f32 %v13619_v24, %v13427_v14  ;;  %v3653_v13 = vpop.f32.mrb[23].mxu0  ;;  %v3989_v4 = vsel %vm553_vm0, %v3987_v46, %v3988_v43  ;;  %v4117_v20 = vsel %vm683_vm4, %v4115_v41, %v4116_v52 }
 0x2a4   : > { %v3852_v29 = vadd.f32 %v14588_v7, %v16931_v21  ;;  %v14590_v45 = vadd.f32 %v3653_v13, %v2298_v35  ;;  %v3986_v15 = vsel %vm553_vm0, %v3984_v22, %v3985_v55  ;;  %v17061_v28 = vpack.c.bf16 %v3989_v4, %v3987_v46  ;;  %13691 = vmatpush3.bf16.msra.mxu1 %v15525_v47 }
 0x2a5   : > { %v3886_v62 = vmax.f32 %v3854_v63, 0.0  ;;  %v3855_v5 = vadd.f32 %v14589_v30, %v16931_v21  ;;  %v17064_v48 = vpack.c.bf16 %v3986_v15, %v3984_v22  ;;  %13724 = vmatprep.subr.bf16.mxu1 %v17050_v53  ;;  %v4114_v19 = vsel %vm683_vm4, %v4112_v17, %v4113_v6 }
 0x2a6   : > { %18152 = vst [vmem:[#allocation29_spill] sm:$0xff] %v17061_v28  ;;  %v3884_v33 = vmax.f32 %v3852_v29, 0.0  ;;  %v3853_v11 = vadd.f32 %v14590_v45, %v16931_v21  ;;  %v17069_v41 = vpack.c.bf16 %v4113_v6, %v4114_v19  ;;  %v17071_v51 = vpack.c.bf16 %v4116_v52, %v4117_v20 }
 0x2a7   : > { %18153 = vst [vmem:[#allocation27_spill] sm:$0xff] %v17064_v48  ;;  %v3993_v25 = vrot.slane %v3886_v62, 7  ;;  %v3887_v46 = vmax.f32 %v3855_v5, 0.0  ;;  %13661 = vmatmul.mubr.msk.bf16.gmra.mrb[48].mxu1 %vm16265_vm3, %v17064_v48  ;;  %v13430_v47 = vpop.f32.mrb[24].mxu1  ;;  %v4121_v22 = vrot.slane %v3886_v62, 1 }
 0x2a8   : > { %v3990_v34 = vrot.slane %v3884_v33, 7  ;;  %v4118_v43 = vrot.slane %v3884_v33, 1  ;;  %v3885_v36 = vmax.f32 %v3853_v11, 0.0  ;;  %v13622_v50 = vpop.f32.mrb[24].mxu0  ;;  %13664 = vmatprep.mubr.msk.bf16.mxu1 %vm16265_vm3, %v17061_v28  ;;  %v2311_v17 = vpop.f32.mrb[25].mxu1 }
 0x2a9   : > { %v3994_v14 = vrot.slane %v3887_v46, 7  ;;  %v4122_v52 = vrot.slane %v3887_v46, 1  ;;  %v14591_v55 = vadd.f32 %v13622_v50, %v13430_v47  ;;  %v3666_v6 = vpop.f32.mrb[25].mxu0  ;;  %v13431_v7 = vpop.f32.mrb[26].mxu1  ;;  %v17079_v24 = vpack.c.bf16 %v3887_v46, %v3886_v62 }
 0x2aa   : > { %v3991_v35 = vrot.slane %v3885_v36, 7  ;;  %v4119_v63 = vrot.slane %v3885_v36, 1  ;;  %v14592_v30 = vadd.f32 %v3666_v6, %v2311_v17  ;;  %v13623_v13 = vpop.f32.mrb[26].mxu0  ;;  %v2314_v4 = vpop.f32.mrb[27].mxu1  ;;  %v17081_v20 = vpack.c.bf16 %v3885_v36, %v3884_v33 }
 0x2ab   : > { %v3858_v29 = vadd.f32 %v14591_v55, %v16931_v21  ;;  %v14593_v45 = vadd.f32 %v13623_v13, %v13431_v7  ;;  %v3669_v15 = vpop.f32.mrb[27].mxu0  ;;  %v3995_v5 = vsel %vm553_vm0, %v3993_v25, %v3994_v14  ;;  %v4123_v19 = vsel %vm683_vm4, %v4121_v22, %v4122_v52 }
 0x2ac   : > { %v3856_v11 = vadd.f32 %v14592_v30, %v16931_v21  ;;  %v14594_v47 = vadd.f32 %v3669_v15, %v2314_v4  ;;  %v3992_v62 = vsel %vm553_vm0, %v3990_v34, %v3991_v35  ;;  %v17088_v46 = vpack.c.bf16 %v3995_v5, %v3993_v25 }
 0x2ad   : > { %v3890_v50 = vmax.f32 %v3858_v29, 0.0  ;;  %v3859_v17 = vadd.f32 %v14593_v45, %v16931_v21  ;;  %v17091_v33 = vpack.c.bf16 %v3992_v62, %v3990_v34  ;;  %v4120_v36 = vsel %vm683_vm4, %v4118_v43, %v4119_v63 }
 0x2ae   : > { %18154 = vst [vmem:[#allocation30_spill] sm:$0xff] %v17088_v46  ;;  %v3888_v55 = vmax.f32 %v3856_v11, 0.0  ;;  %v3857_v6 = vadd.f32 %v14594_v47, %v16931_v21  ;;  %v17095_v14 = vpack.c.bf16 %v4119_v63, %v4120_v36  ;;  %v17097_v22 = vpack.c.bf16 %v4122_v52, %v4123_v19 }
 0x2af   : > { %18155 = vst [vmem:[#allocation28_spill] sm:$0xff] %v17091_v33  ;;  %v3999_v7 = vrot.slane %v3890_v50, 7  ;;  %v3891_v30 = vmax.f32 %v3859_v17, 0.0  ;;  %13665 = vmatmul.mubr.msk.bf16.gmra.mrb[52].mxu1 %vm16265_vm3, %v17091_v33  ;;  %v13434_v25 = vpop.f32.mrb[28].mxu1  ;;  %v4127_v35 = vrot.slane %v3890_v50, 1 }
 0x2b0   : > { %v3996_v13 = vrot.slane %v3888_v55, 7  ;;  %v4124_v34 = vrot.slane %v3888_v55, 1  ;;  %v3889_v4 = vmax.f32 %v3857_v6, 0.0  ;;  %v13626_v29 = vpop.f32.mrb[28].mxu0  ;;  %13668 = vmatprep.mubr.msk.bf16.mxu1 %vm16265_vm3, %v17088_v46  ;;  %v2327_v43 = vpop.f32.mrb[29].mxu1 }
 0x2b1   : > { %v4000_v63 = vrot.slane %v3891_v30, 7  ;;  %v4128_v52 = vrot.slane %v3891_v30, 1  ;;  %v14595_v45 = vadd.f32 %v13626_v29, %v13434_v25  ;;  %v3682_v15 = vpop.f32.mrb[29].mxu0  ;;  %v13435_v5 = vpop.f32.mrb[30].mxu1  ;;  %v17105_v19 = vpack.c.bf16 %v3891_v30, %v3890_v50 }
 0x2b2   : > { %v3997_v11 = vrot.slane %v3889_v4, 7  ;;  %v4125_v47 = vrot.slane %v3889_v4, 1  ;;  %v14596_v62 = vadd.f32 %v3682_v15, %v2327_v43  ;;  %v13627_v17 = vpop.f32.mrb[30].mxu0  ;;  %v2330_v36 = vpop.f32.mrb[31].mxu1  ;;  %v17107_v33 = vpack.c.bf16 %v3889_v4, %v3888_v55 }
 0x2b3   : > { %v3862_v6 = vadd.f32 %v14595_v45, %v16931_v21  ;;  %v14597_v28 = vadd.f32 %v13627_v17, %v13435_v5  ;;  %v3685_v48 = vpop.f32.mrb[31].mxu0  ;;  %v4001_v46 = vsel %vm553_vm0, %v3999_v7, %v4000_v63  ;;  %v4129_v37 = vsel %vm683_vm4, %v4127_v35, %v4128_v52 }
 0x2b4   : > { %v3860_v25 = vadd.f32 %v14596_v62, %v16931_v21  ;;  %v14598_v29 = vadd.f32 %v3685_v48, %v2330_v36  ;;  %v3998_v50 = vsel %vm553_vm0, %v3996_v13, %v3997_v11  ;;  %v17114_v30 = vpack.c.bf16 %v4001_v46, %v3999_v7 }
 0x2b5   : > { %v3894_v43 = vmax.f32 %v3862_v6, 0.0  ;;  %v3863_v15 = vadd.f32 %v14597_v28, %v16931_v21  ;;  %v17117_v55 = vpack.c.bf16 %v3998_v50, %v3996_v13  ;;  %v4126_v4 = vsel %vm683_vm4, %v4124_v34, %v4125_v47 }
 0x2b6   : > { %v3892_v45 = vmax.f32 %v3860_v25, 0.0  ;;  %v3861_v5 = vadd.f32 %v14598_v29, %v16931_v21  ;;  %v17121_v63 = vpack.c.bf16 %v4125_v47, %v4126_v4  ;;  %v17123_v35 = vpack.c.bf16 %v4128_v52, %v4129_v37  ;;  %v15527_v4 = vld [vmem:[#allocation11 + $0x88] sm:$0xff]  }
 0x2b7   : > { %v3895_v62 = vmax.f32 %v3863_v15, 0.0  ;;  %13669 = vmatmul.mubr.msk.bf16.gmra.mrb[56].mxu1 %vm16265_vm3, %v17117_v55  ;;  %v4005_v48 = vrot.slane %v3894_v43, 7  ;;  %v4133_v46 = vrot.slane %v3894_v43, 1 }
 0x2b8   : > { %v3893_v7 = vmax.f32 %v3861_v5, 0.0  ;;  %13672 = vmatprep.mubr.msk.bf16.mxu1 %vm16265_vm3, %v17114_v30  ;;  %v4002_v28 = vrot.slane %v3892_v45, 7  ;;  %v4130_v11 = vrot.slane %v3892_v45, 1  ;;  %v15529_v5 = vld [vmem:[#allocation11 + $0x98] sm:$0xff]  }
 0x2b9   : > { %v4006_v13 = vrot.slane %v3895_v62, 7  ;;  %v4134_v34 = vrot.slane %v3895_v62, 1  ;;  %v17131_v21 = vpack.c.bf16 %v3895_v62, %v3894_v43  ;;  %v15530_v62 = vld [vmem:[#allocation11 + $0xa0] sm:$0xff]  }
 0x2ba   : > { %v4003_v37 = vrot.slane %v3893_v7, 7  ;;  %v4131_v52 = vrot.slane %v3893_v7, 1  ;;  %v17133_v47 = vpack.c.bf16 %v3893_v7, %v3892_v45  ;;  %v15528_v45 = vld [vmem:[#allocation11 + $0x90] sm:$0xff]   ;;  %v15534_v7 = vld [vmem:[#allocation11 + $0xc0] sm:$0xff]  }
 0x2bb   : > { %v4007_v17 = vsel %vm553_vm0, %v4005_v48, %v4006_v13  ;;  %v4135_v36 = vsel %vm683_vm4, %v4133_v46, %v4134_v34  ;;  %v15533_v46 = vld [vmem:[#allocation11 + $0xb8] sm:$0xff]   ;;  %v15536_v13 = vld [vmem:[#allocation11 + $0xd0] sm:$0xff]  }
 0x2bc   : > { %v4004_v6 = vsel %vm553_vm0, %v4002_v28, %v4003_v37  ;;  %v4132_v25 = vsel %vm683_vm4, %v4130_v11, %v4131_v52  ;;  %v17139_v29 = vpack.c.bf16 %v4007_v17, %v4005_v48  ;;  %v17141_v50 = vpack.c.bf16 %v4134_v34, %v4135_v36  ;;  %v15531_v48 = vld [vmem:[#allocation11 + $0xa8] sm:$0xff]   ;;  %v15537_v34 = vld [vmem:[#allocation11 + $0xd8] sm:$0xff]   ;;  %v15538_v11 = vld [vmem:[#allocation11 + $0xe0] sm:$0xff]  }
 0x2bd   : > { %v17143_v15 = vpack.c.bf16 %v4004_v6, %v4002_v28  ;;  %v17145_v43 = vpack.c.bf16 %v4131_v52, %v4132_v25  ;;  %v15535_v28 = vld [vmem:[#allocation11 + $0xc8] sm:$0xff]   ;;  %v15540_v52 = vld [vmem:[#allocation11 + $0xf0] sm:$0xff]   ;;  %v15541_v17 = vld [vmem:[#allocation11 + $0xf8] sm:$0xff]  }
 0x2be   : > { %v15539_v37 = vld [vmem:[#allocation11 + $0xe8] sm:$0xff]   ;;  %v15542_v36 = vld [vmem:[#allocation11 + $0x100] sm:$0xff]   ;;  %v15544_v25 = vld [vmem:[#allocation11 + $0x110] sm:$0xff]  }
 0x2bf   : > { %13673 = vmatmul.mubr.msk.bf16.gmra.mrb[60].mxu1 %vm16265_vm3, %v17143_v15  ;;  %v15543_v6 = vld [vmem:[#allocation11 + $0x108] sm:$0xff]  }
 0x2c0   : > { %13692 = vmatprep.mubr.bf16.mxu1 %v18143_v9 }
 0x2c7   : > { %13693 = vmatmul.mubr.bf16.vlgmr.msra.gmra.mrb[32].mxu1 %v16939_v42 }
 0x2c8   : > { %13696 = vmatprep.mubr.bf16.mxu1 %v16937_v1  ;;  %13725 = vmatpush3.bf16.msra.mxu1 %v17050_v53  ;;  %v15532_v53 = vld [vmem:[#allocation11 + $0xb0] sm:$0xff]  }
 0x2c9   : > { %13726 = vmatprep.subr.bf16.mxu1 %v15527_v4 }
 0x2cc   : > { %13727 = vmatpush3.bf16.msra.mxu1 %v15527_v4  ;;  %v15545_v4 = vld [vmem:[#allocation11 + $0x118] sm:$0xff]  }
 0x2cd   : > { %13728 = vmatprep.subr.bf16.mxu1 %v15528_v45 }
 0x2cf   : > { %13697 = vmatmul.mubr.bf16.gmra.mrb[36].mxu1 %v16968_v31 }
 0x2d0   : > { %13700 = vmatprep.mubr.bf16.mxu1 %v16965_v2  ;;  %13729 = vmatpush3.bf16.msra.mxu1 %v15528_v45  ;;  %v15547_v45 = vld [vmem:[#allocation11 + $0x128] sm:$0xff]  }
 0x2d1   : > { %13730 = vmatprep.subr.bf16.mxu1 %v15529_v5 }
 0x2d4   : > { %13731 = vmatpush3.bf16.msra.mxu1 %v15529_v5  ;;  %v15548_v5 = vld [vmem:[#allocation11 + $0x130] sm:$0xff]  }
 0x2d5   : > { %13732 = vmatprep.subr.bf16.mxu1 %v15530_v62 }
 0x2d7   : > { %13701 = vmatmul.mubr.bf16.gmra.mrb[40].mxu1 %v16998_v59 }
 0x2d8   : > { %13704 = vmatprep.mubr.bf16.mxu1 %v16995_v8  ;;  %13733 = vmatpush3.bf16.msra.mxu1 %v15530_v62  ;;  %v15549_v62 = vld [vmem:[#allocation11 + $0x138] sm:$0xff]  }
 0x2d9   : > { %13734 = vmatprep.subr.bf16.mxu1 %v15531_v48 }
 0x2dc   : > { %13735 = vmatpush3.bf16.msra.mxu1 %v15531_v48  ;;  %v18156_v48 = vld [vmem:[#allocation26_spill] sm:$0xff] }
 0x2dd   : > { %13736 = vmatprep.subr.bf16.mxu1 %v15532_v53 }
 0x2df   : > { %13705 = vmatmul.mubr.bf16.gmra.mrb[44].mxu1 %v17026_v18 }
 0x2e0   : > { %13708 = vmatprep.mubr.bf16.mxu1 %v17024_v44  ;;  %13737 = vmatpush3.bf16.msra.mxu1 %v15532_v53  ;;  %v18157_v53 = vld [vmem:[#allocation27_spill] sm:$0xff] }
 0x2e1   : > { %13738 = vmatprep.subr.bf16.mxu1 %v15533_v46 }
 0x2e4   : > { %13739 = vmatpush3.bf16.msra.mxu1 %v15533_v46  ;;  %v15550_v46 = vld [vmem:[#allocation11 + $0x140] sm:$0xff]  }
 0x2e5   : > { %13772 = vmatprep.subr.bf16.mxu1 %v15534_v7 }
 0x2e7   : > { %13709 = vmatmul.mubr.bf16.gmra.mrb[48].mxu1 %v17054_v3 }
 0x2e8   : > { %13712 = vmatprep.mubr.bf16.mxu1 %v17052_v58 }
 0x2ef   : > { %13713 = vmatmul.mubr.bf16.gmra.mrb[52].mxu1 %v17081_v20 }
 0x2f0   : > { %13716 = vmatprep.mubr.bf16.mxu1 %v17079_v24 }
 0x2f7   : > { %13717 = vmatmul.mubr.bf16.gmra.mrb[56].mxu1 %v17107_v33 }
 0x2f8   : > { %13720 = vmatprep.mubr.bf16.mxu1 %v17105_v19 }
 0x2ff   : > { %13721 = vmatmul.mubr.bf16.gmra.mrb[60].mxu1 %v17133_v47 }
 0x300   : > { %13740 = vmatprep.mubr.bf16.mxu1 %v18143_v9 }
 0x307   : > { %13741 = vmatmul.mubr.msk.bf16.vlgmr.msra.gmra.mrb[32].mxu1 %vm16465_vm5, %v16949_v10 }
 0x308   : > { %13744 = vmatprep.mubr.msk.bf16.mxu1 %vm16465_vm5, %v16955_v0  ;;  %13773 = vmatpush3.bf16.msra.mxu1 %v15534_v7  ;;  %v18158_v7 = vld [vmem:[#allocation29_spill] sm:$0xff] }
 0x309   : > { %13774 = vmatprep.subr.bf16.mxu1 %v15535_v28 }
 0x30c   : > { %13775 = vmatpush3.bf16.msra.mxu1 %v15535_v28  ;;  %v18159_v28 = vld [vmem:[#allocation28_spill] sm:$0xff] }
 0x30d   : > { %13776 = vmatprep.subr.bf16.mxu1 %v15536_v13 }
 0x30f   : > { %13745 = vmatmul.mubr.msk.bf16.gmra.mrb[36].mxu1 %vm16465_vm5, %v16984_v39 }
 0x310   : > { %13748 = vmatprep.mubr.msk.bf16.mxu1 %vm16465_vm5, %v16986_v12  ;;  %13777 = vmatpush3.bf16.msra.mxu1 %v15536_v13  ;;  %v18160_v13 = vld [vmem:[#allocation30_spill] sm:$0xff] }
 0x311   : > { %13778 = vmatprep.subr.bf16.mxu1 %v15537_v34 }
 0x314   : > { %13779 = vmatpush3.bf16.msra.mxu1 %v15537_v34  ;;  %v15551_v34 = vld [vmem:[#allocation11 + $0x148] sm:$0xff]  }
 0x315   : > { %13780 = vmatprep.subr.bf16.mxu1 %v15538_v11 }
 0x317   : > { %13749 = vmatmul.mubr.msk.bf16.gmra.mrb[40].mxu1 %vm16465_vm5, %v17014_v61 }
 0x318   : > { %13752 = vmatprep.mubr.msk.bf16.mxu1 %vm16465_vm5, %v17016_v60  ;;  %13781 = vmatpush3.bf16.msra.mxu1 %v15538_v11  ;;  %v15552_v11 = vld [vmem:[#allocation11 + $0x150] sm:$0xff]  }
 0x319   : > { %13782 = vmatprep.subr.bf16.mxu1 %v15539_v37 }
 0x31c   : > { %13783 = vmatpush3.bf16.msra.mxu1 %v15539_v37  ;;  %v15553_v37 = vld [vmem:[#allocation11 + $0x158] sm:$0xff]  }
 0x31d   : > { %13784 = vmatprep.subr.bf16.mxu1 %v15540_v52 }
 0x31f   : > { %13753 = vmatmul.mubr.msk.bf16.gmra.mrb[44].mxu1 %vm16465_vm5, %v17040_v57 }
 0x320   : > { %13756 = vmatprep.mubr.msk.bf16.mxu1 %vm16465_vm5, %v17042_v40  ;;  %13785 = vmatpush3.bf16.msra.mxu1 %v15540_v52  ;;  %v15554_v52 = vld [vmem:[#allocation11 + $0x160] sm:$0xff]  }
 0x321   : > { %13786 = vmatprep.subr.bf16.mxu1 %v15541_v17 }
 0x324   : > { %13787 = vmatpush3.bf16.msra.mxu1 %v15541_v17  ;;  %v15556_v17 = vld [vmem:[#allocation11 + $0x170] sm:$0xff]  }
 0x325   : > { %13820 = vmatprep.subr.bf16.mxu1 %v15542_v36 }
 0x327   : > { %13757 = vmatmul.mubr.msk.bf16.gmra.mrb[48].mxu1 %vm16465_vm5, %v17069_v41 }
 0x328   : > { %13760 = vmatprep.mubr.msk.bf16.mxu1 %vm16465_vm5, %v17071_v51 }
 0x32f   : > { %13761 = vmatmul.mubr.msk.bf16.gmra.mrb[52].mxu1 %vm16465_vm5, %v17095_v14 }
 0x330   : > { %13764 = vmatprep.mubr.msk.bf16.mxu1 %vm16465_vm5, %v17097_v22 }
 0x337   : > { %13765 = vmatmul.mubr.msk.bf16.gmra.mrb[56].mxu1 %vm16465_vm5, %v17121_v63 }
 0x338   : > { %13768 = vmatprep.mubr.msk.bf16.mxu1 %vm16465_vm5, %v17123_v35 }
 0x33f   : > { %13769 = vmatmul.mubr.msk.bf16.gmra.mrb[60].mxu1 %vm16465_vm5, %v17145_v43 }
 0x340   : > { %13788 = vmatprep.mubr.msk.bf16.mxu1 %vm16265_vm3, %v16947_v27  ;;  %v15546_v27 = vld [vmem:[#allocation11 + $0x120] sm:$0xff]  }
 0x347   : > { %13789 = vmatmul.mubr.msk.bf16.vlgmr.msra.gmra.mrb[32].mxu1 %vm16265_vm3, %v16953_v49 }
 0x348   : > { %13792 = vmatprep.mubr.msk.bf16.mxu1 %vm16265_vm3, %v16980_v56  ;;  %13821 = vmatpush3.bf16.msra.mxu1 %v15542_v36  ;;  %v15557_v36 = vld [vmem:[#allocation11 + $0x178] sm:$0xff]  }
 0x349   : > { %13822 = vmatprep.subr.bf16.mxu1 %v15543_v6 }
 0x34c   : > { %13823 = vmatpush3.bf16.msra.mxu1 %v15543_v6  ;;  %v15558_v6 = vld [vmem:[#allocation11 + $0x180] sm:$0xff]  }
 0x34d   : > { %13824 = vmatprep.subr.bf16.mxu1 %v15544_v25 }
 0x34f   : > { %13793 = vmatmul.mubr.msk.bf16.gmra.mrb[36].mxu1 %vm16265_vm3, %v16977_v26 }
 0x350   : > { %13796 = vmatprep.mubr.msk.bf16.mxu1 %vm16265_vm3, %v17010_v54  ;;  %13825 = vmatpush3.bf16.msra.mxu1 %v15544_v25  ;;  %v15559_v25 = vld [vmem:[#allocation11 + $0x188] sm:$0xff]  }
 0x351   : > { %13826 = vmatprep.subr.bf16.mxu1 %v15545_v4 }
 0x354   : > { %13827 = vmatpush3.bf16.msra.mxu1 %v15545_v4  ;;  %v15560_v4 = vld [vmem:[#allocation11 + $0x190] sm:$0xff]  }
 0x355   : > { %13828 = vmatprep.subr.bf16.mxu1 %v15546_v27 }
 0x357   : > { %13797 = vmatmul.mubr.msk.bf16.gmra.mrb[40].mxu1 %vm16265_vm3, %v17007_v16 }
 0x358   : > { %13800 = vmatprep.mubr.msk.bf16.mxu1 %vm16265_vm3, %v17036_v38  ;;  %13829 = vmatpush3.bf16.msra.mxu1 %v15546_v27  ;;  %v15561_v27 = vld [vmem:[#allocation11 + $0x198] sm:$0xff]  }
 0x359   : > { %13830 = vmatprep.subr.bf16.mxu1 %v15547_v45 }
 0x35c   : > { %13831 = vmatpush3.bf16.msra.mxu1 %v15547_v45  ;;  %v15563_v45 = vld [vmem:[#allocation11 + $0x1a8] sm:$0xff]  }
 0x35d   : > { %13832 = vmatprep.subr.bf16.mxu1 %v15548_v5 }
 0x35f   : > { %13801 = vmatmul.mubr.msk.bf16.gmra.mrb[44].mxu1 %vm16265_vm3, %v18156_v48 }
 0x360   : > { %13804 = vmatprep.mubr.msk.bf16.mxu1 %vm16265_vm3, %v18157_v53  ;;  %13833 = vmatpush3.bf16.msra.mxu1 %v15548_v5  ;;  %v15564_v5 = vld [vmem:[#allocation11 + $0x1b0] sm:$0xff]  }
 0x361   : > { %13834 = vmatprep.subr.bf16.mxu1 %v15549_v62 }
 0x364   : > { %13835 = vmatpush3.bf16.msra.mxu1 %v15549_v62  ;;  %v15565_v62 = vld [vmem:[#allocation11 + $0x1b8] sm:$0xff]  }
 0x365   : > { %13868 = vmatprep.subr.bf16.mxu1 %v15550_v46 }
 0x367   : > { %13805 = vmatmul.mubr.msk.bf16.gmra.mrb[48].mxu1 %vm16265_vm3, %v18158_v7 }
 0x368   : > { %13808 = vmatprep.mubr.msk.bf16.mxu1 %vm16265_vm3, %v18159_v28 }
 0x36f   : > { %13809 = vmatmul.mubr.msk.bf16.gmra.mrb[52].mxu1 %vm16265_vm3, %v18160_v13 }
 0x370   : > { %13812 = vmatprep.mubr.msk.bf16.mxu1 %vm16265_vm3, %v17117_v55 }
 0x377   : > { %13813 = vmatmul.mubr.msk.bf16.gmra.mrb[56].mxu1 %vm16265_vm3, %v17114_v30 }
 0x378   : > { %13816 = vmatprep.mubr.msk.bf16.mxu1 %vm16265_vm3, %v17143_v15 }
 0x37f   : > { %13817 = vmatmul.mubr.msk.bf16.gmra.mrb[60].mxu1 %vm16265_vm3, %v17139_v29 }
 0x380   : > { %13836 = vmatprep.mubr.bf16.mxu1 %v16939_v42  ;;  %v15555_v42 = vld [vmem:[#allocation11 + $0x168] sm:$0xff]  }
 0x387   : > { %13837 = vmatmul.mubr.bf16.vlgmr.msra.gmra.mrb[32].mxu1 %v16937_v1 }
 0x388   : > { %13840 = vmatprep.mubr.bf16.mxu1 %v16968_v31  ;;  %13869 = vmatpush3.bf16.msra.mxu1 %v15550_v46  ;;  %v15566_v46 = vld [vmem:[#allocation11 + $0x1c0] sm:$0xff]  }
 0x389   : > { %13870 = vmatprep.subr.bf16.mxu1 %v15551_v34 }
 0x38c   : > { %13871 = vmatpush3.bf16.msra.mxu1 %v15551_v34  ;;  %v15567_v34 = vld [vmem:[#allocation11 + $0x1c8] sm:$0xff]  }
 0x38d   : > { %13872 = vmatprep.subr.bf16.mxu1 %v15552_v11 }
 0x38f   : > { %13841 = vmatmul.mubr.bf16.gmra.mrb[36].mxu1 %v16965_v2 }
 0x390   : > { %13844 = vmatprep.mubr.bf16.mxu1 %v16998_v59  ;;  %13873 = vmatpush3.bf16.msra.mxu1 %v15552_v11  ;;  %v15568_v11 = vld [vmem:[#allocation11 + $0x1d0] sm:$0xff]  }
 0x391   : > { %13874 = vmatprep.subr.bf16.mxu1 %v15553_v37 }
 0x394   : > { %13875 = vmatpush3.bf16.msra.mxu1 %v15553_v37  ;;  %v15569_v37 = vld [vmem:[#allocation11 + $0x1d8] sm:$0xff]  }
 0x395   : > { %13876 = vmatprep.subr.bf16.mxu1 %v15554_v52 }
 0x397   : > { %13845 = vmatmul.mubr.bf16.gmra.mrb[40].mxu1 %v16995_v8 }
 0x398   : > { %13848 = vmatprep.mubr.bf16.mxu1 %v17026_v18  ;;  %13877 = vmatpush3.bf16.msra.mxu1 %v15554_v52 }
 0x399   : > { %13878 = vmatprep.subr.bf16.mxu1 %v15555_v42 }
 0x39c   : > { %13879 = vmatpush3.bf16.msra.mxu1 %v15555_v42 }
 0x39d   : > { %13880 = vmatprep.subr.bf16.mxu1 %v15556_v17 }
 0x39f   : > { %13849 = vmatmul.mubr.bf16.gmra.mrb[44].mxu1 %v17024_v44 }
 0x3a0   : > { %13852 = vmatprep.mubr.bf16.mxu1 %v17054_v3  ;;  %13881 = vmatpush3.bf16.msra.mxu1 %v15556_v17 }
 0x3a1   : > { %13882 = vmatprep.subr.bf16.mxu1 %v15557_v36 }
 0x3a4   : > { %13883 = vmatpush3.bf16.msra.mxu1 %v15557_v36 }
 0x3a5   : > { %13916 = vmatprep.subr.bf16.mxu1 %v15558_v6 }
 0x3a7   : > { %13853 = vmatmul.mubr.bf16.gmra.mrb[48].mxu1 %v17052_v58 }
 0x3a8   : > { %13856 = vmatprep.mubr.bf16.mxu1 %v17081_v20 }
 0x3af   : > { %13857 = vmatmul.mubr.bf16.gmra.mrb[52].mxu1 %v17079_v24 }
 0x3b0   : > { %13860 = vmatprep.mubr.bf16.mxu1 %v17107_v33 }
 0x3b7   : > { %13861 = vmatmul.mubr.bf16.gmra.mrb[56].mxu1 %v17105_v19 }
 0x3b8   : > { %13864 = vmatprep.mubr.bf16.mxu1 %v17133_v47 }
 0x3bf   : > { %13865 = vmatmul.mubr.bf16.gmra.mrb[60].mxu1 %v17131_v21 }
 0x3c0   : > { %13884 = vmatprep.mubr.msk.bf16.mxu1 %vm16465_vm5, %v16949_v10  ;;  %v15562_v10 = vld [vmem:[#allocation11 + $0x1a0] sm:$0xff]  }
 0x3c7   : > { %13885 = vmatmul.mubr.msk.bf16.vlgmr.msra.gmra.mrb[32].mxu1 %vm16465_vm5, %v16955_v0 }
 0x3c8   : > { %13888 = vmatprep.mubr.msk.bf16.mxu1 %vm16465_vm5, %v16984_v39  ;;  %13917 = vmatpush3.bf16.msra.mxu1 %v15558_v6 }
 0x3c9   : > { %13918 = vmatprep.subr.bf16.mxu1 %v15559_v25 }
 0x3cc   : > { %13919 = vmatpush3.bf16.msra.mxu1 %v15559_v25 }
 0x3cd   : > { %13920 = vmatprep.subr.bf16.mxu1 %v15560_v4 }
 0x3cf   : > { %13889 = vmatmul.mubr.msk.bf16.gmra.mrb[36].mxu1 %vm16465_vm5, %v16986_v12 }
 0x3d0   : > { %13892 = vmatprep.mubr.msk.bf16.mxu1 %vm16465_vm5, %v17014_v61  ;;  %13921 = vmatpush3.bf16.msra.mxu1 %v15560_v4 }
 0x3d1   : > { %13922 = vmatprep.subr.bf16.mxu1 %v15561_v27 }
 0x3d4   : > { %13923 = vmatpush3.bf16.msra.mxu1 %v15561_v27 }
 0x3d5   : > { %13924 = vmatprep.subr.bf16.mxu1 %v15562_v10 }
 0x3d7   : > { %13893 = vmatmul.mubr.msk.bf16.gmra.mrb[40].mxu1 %vm16465_vm5, %v17016_v60 }
 0x3d8   : > { %13896 = vmatprep.mubr.msk.bf16.mxu1 %vm16465_vm5, %v17040_v57  ;;  %13925 = vmatpush3.bf16.msra.mxu1 %v15562_v10 }
 0x3d9   : > { %13926 = vmatprep.subr.bf16.mxu1 %v15563_v45 }
 0x3dc   : > { %13927 = vmatpush3.bf16.msra.mxu1 %v15563_v45 }
 0x3dd   : > { %13928 = vmatprep.subr.bf16.mxu1 %v15564_v5 }
 0x3df   : > { %13897 = vmatmul.mubr.msk.bf16.gmra.mrb[44].mxu1 %vm16465_vm5, %v17042_v40 }
 0x3e0   : > { %13900 = vmatprep.mubr.msk.bf16.mxu1 %vm16465_vm5, %v17069_v41  ;;  %13929 = vmatpush3.bf16.msra.mxu1 %v15564_v5 }
 0x3e1   : > { %13930 = vmatprep.subr.bf16.mxu1 %v15565_v62 }
 0x3e4   : > { %13931 = vmatpush3.bf16.msra.mxu1 %v15565_v62 }
 0x3e5   : > { %13964 = vmatprep.subr.bf16.mxu1 %v15566_v46 }
 0x3e7   : > { %13901 = vmatmul.mubr.msk.bf16.gmra.mrb[48].mxu1 %vm16465_vm5, %v17071_v51 }
 0x3e8   : > { %13904 = vmatprep.mubr.msk.bf16.mxu1 %vm16465_vm5, %v17095_v14 }
 0x3ef   : > { %13905 = vmatmul.mubr.msk.bf16.gmra.mrb[52].mxu1 %vm16465_vm5, %v17097_v22 }
 0x3f0   : > { %13908 = vmatprep.mubr.msk.bf16.mxu1 %vm16465_vm5, %v17121_v63 }
 0x3f7   : > { %13909 = vmatmul.mubr.msk.bf16.gmra.mrb[56].mxu1 %vm16465_vm5, %v17123_v35 }
 0x3f8   : > { %13912 = vmatprep.mubr.msk.bf16.mxu1 %vm16465_vm5, %v17145_v43 }
 0x3ff   : > { %13913 = vmatmul.mubr.msk.bf16.gmra.mrb[60].mxu1 %vm16465_vm5, %v17141_v50 }
 0x400   : > { %13932 = vmatprep.mubr.msk.bf16.mxu1 %vm16265_vm3, %v16953_v49  ;;  %v15570_v49 = vld [vmem:[#allocation11 + $0x1e0] sm:$0xff]  }
 0x407   : > { %13933 = vmatmul.mubr.msk.bf16.vlgmr.msra.gmra.mrb[32].mxu1 %vm16265_vm3, %v16980_v56  ;;  %v15572_v56 = vld [vmem:[#allocation11 + $0x1f0] sm:$0xff]  }
 0x408   : > { %13936 = vmatprep.mubr.msk.bf16.mxu1 %vm16265_vm3, %v16977_v26  ;;  %13965 = vmatpush3.bf16.msra.mxu1 %v15566_v46  ;;  %v15571_v26 = vld [vmem:[#allocation11 + $0x1e8] sm:$0xff]  }
 0x409   : > { %13966 = vmatprep.subr.bf16.mxu1 %v15567_v34 }
 0x40c   : > { %13967 = vmatpush3.bf16.msra.mxu1 %v15567_v34 }
 0x40d   : > { %13968 = vmatprep.subr.bf16.mxu1 %v15568_v11 }
 0x40f   : > { %13937 = vmatmul.mubr.msk.bf16.gmra.mrb[36].mxu1 %vm16265_vm3, %v17010_v54  ;;  %v15574_v54 = vld [vmem:[#allocation11 + $0x200] sm:$0xff]  }
 0x410   : > { %13940 = vmatprep.mubr.msk.bf16.mxu1 %vm16265_vm3, %v17007_v16  ;;  %13969 = vmatpush3.bf16.msra.mxu1 %v15568_v11  ;;  %v15573_v16 = vld [vmem:[#allocation11 + $0x1f8] sm:$0xff]   ;;  %v15591_v11 = vld [vmem:[#allocation12 + $0x48] sm:$0xff]  }
 0x411   : > { %13970 = vmatprep.subr.bf16.mxu1 %v15569_v37 }
 0x414   : > { %13971 = vmatpush3.bf16.msra.mxu1 %v15569_v37 }
 0x415   : > { %13972 = vmatprep.subr.bf16.mxu1 %v15570_v49 }
 0x417   : > { %13941 = vmatmul.mubr.msk.bf16.gmra.mrb[40].mxu1 %vm16265_vm3, %v17036_v38  ;;  %v15582_v38 = vld [vmem:[#allocation12] sm:$0xff]  }
 0x418   : > { %13944 = vmatprep.mubr.msk.bf16.mxu1 %vm16265_vm3, %v18156_v48  ;;  %13973 = vmatpush3.bf16.msra.mxu1 %v15570_v49  ;;  %v15583_v48 = vld [vmem:[#allocation12 + $0x8] sm:$0xff]  }
 0x419   : > { %13974 = vmatprep.subr.bf16.mxu1 %v15571_v26  ;;  %14060 = vmatprep.subr.bf16.mxu0 %v15582_v38 }
 0x41a   : > { %14061 = vmatpush3.bf16.msra.mxu0 %v15582_v38 }
 0x41b   : > { %14062 = vmatprep.subr.bf16.mxu0 %v15583_v48 }
 0x41c   : > { %13975 = vmatpush3.bf16.msra.mxu1 %v15571_v26 }
 0x41d   : > { %13976 = vmatprep.subr.bf16.mxu1 %v15572_v56 }
 0x41e   : > { %14063 = vmatpush3.bf16.msra.mxu0 %v15583_v48 }
 0x41f   : > { %13945 = vmatmul.mubr.msk.bf16.gmra.mrb[44].mxu1 %vm16265_vm3, %v18157_v53  ;;  %v15575_v53 = vld [vmem:[#allocation11 + $0x208] sm:$0xff]  }
 0x420   : > { %13948 = vmatprep.mubr.msk.bf16.mxu1 %vm16265_vm3, %v18158_v7  ;;  %13977 = vmatpush3.bf16.msra.mxu1 %v15572_v56  ;;  %v15587_v7 = vld [vmem:[#allocation12 + $0x28] sm:$0xff]  }
 0x421   : > { %13978 = vmatprep.subr.bf16.mxu1 %v15573_v16 }
 0x424   : > { %13979 = vmatpush3.bf16.msra.mxu1 %v15573_v16 }
 0x425   : > { %14012 = vmatprep.subr.bf16.mxu1 %v15574_v54 }
 0x427   : > { %13949 = vmatmul.mubr.msk.bf16.gmra.mrb[48].mxu1 %vm16265_vm3, %v18159_v28  ;;  %v15579_v28 = vld [vmem:[#allocation11 + $0x228] sm:$0xff]  }
 0x428   : > { %13952 = vmatprep.mubr.msk.bf16.mxu1 %vm16265_vm3, %v18160_v13 }
 0x42f   : > { %13953 = vmatmul.mubr.msk.bf16.gmra.mrb[52].mxu1 %vm16265_vm3, %v17117_v55  ;;  %v15584_v55 = vld [vmem:[#allocation12 + $0x10] sm:$0xff]  }
 0x430   : > { %13956 = vmatprep.mubr.msk.bf16.mxu1 %vm16265_vm3, %v17114_v30  ;;  %14064 = vmatprep.subr.bf16.mxu0 %v15584_v55  ;;  %v15585_v30 = vld [vmem:[#allocation12 + $0x18] sm:$0xff]  }
 0x431   : > { %14065 = vmatpush3.bf16.msra.mxu0 %v15584_v55 }
 0x432   : > { %14066 = vmatprep.subr.bf16.mxu0 %v15585_v30 }
 0x435   : > { %14067 = vmatpush3.bf16.msra.mxu0 %v15585_v30  ;;  %v15592_v30 = vld [vmem:[#allocation12 + $0x50] sm:$0xff]  }
 0x437   : > { %13957 = vmatmul.mubr.msk.bf16.gmra.mrb[56].mxu1 %vm16265_vm3, %v17143_v15  ;;  %v15586_v15 = vld [vmem:[#allocation12 + $0x20] sm:$0xff]  }
 0x438   : > { %13960 = vmatprep.mubr.msk.bf16.mxu1 %vm16265_vm3, %v17139_v29  ;;  %v15576_v29 = vld [vmem:[#allocation11 + $0x210] sm:$0xff]   ;;  %14068 = vmatprep.subr.bf16.mxu0 %v15586_v15 }
 0x439   : > { %14069 = vmatpush3.bf16.msra.mxu0 %v15586_v15 }
 0x43a   : > { %14070 = vmatprep.subr.bf16.mxu0 %v15587_v7 }
 0x43d   : > { %14071 = vmatpush3.bf16.msra.mxu0 %v15587_v7 }
 0x43f   : > { %13961 = vmatmul.mubr.bf16.gmra.mrb[60].mxu1 %v18143_v9 }
 0x440   : > { %13980 = vmatprep.mubr.bf16.mxu1 %v16937_v1  ;;  %v15577_v1 = vld [vmem:[#allocation11 + $0x218] sm:$0xff]  }
 0x447   : > { %13981 = vmatmul.mubr.bf16.vlgmr.msra.gmra.mrb[32].mxu1 %v16968_v31  ;;  %v15578_v31 = vld [vmem:[#allocation11 + $0x220] sm:$0xff]  }
 0x448   : > { %13984 = vmatprep.mubr.bf16.mxu1 %v16965_v2  ;;  %14013 = vmatpush3.bf16.msra.mxu1 %v15574_v54  ;;  %v15588_v2 = vld [vmem:[#allocation12 + $0x30] sm:$0xff]  }
 0x449   : > { %14014 = vmatprep.subr.bf16.mxu1 %v15575_v53  ;;  %14072 = vmatprep.subr.bf16.mxu0 %v15588_v2 }
 0x44a   : > { %14073 = vmatpush3.bf16.msra.mxu0 %v15588_v2 }
 0x44c   : > { %14015 = vmatpush3.bf16.msra.mxu1 %v15575_v53 }
 0x44d   : > { %14016 = vmatprep.subr.bf16.mxu1 %v15576_v29 }
 0x44f   : > { %13985 = vmatmul.mubr.bf16.gmra.mrb[36].mxu1 %v16998_v59  ;;  %v15580_v59 = vld [vmem:[#allocation11 + $0x230] sm:$0xff]  }
 0x450   : > { %13988 = vmatprep.mubr.bf16.mxu1 %v16995_v8  ;;  %14017 = vmatpush3.bf16.msra.mxu1 %v15576_v29  ;;  %v15581_v8 = vld [vmem:[#allocation11 + $0x238] sm:$0xff]  }
 0x451   : > { %14018 = vmatprep.subr.bf16.mxu1 %v15577_v1 }
 0x454   : > { %14019 = vmatpush3.bf16.msra.mxu1 %v15577_v1 }
 0x455   : > { %14020 = vmatprep.subr.bf16.mxu1 %v15578_v31 }
 0x457   : > { %13989 = vmatmul.mubr.bf16.gmra.mrb[40].mxu1 %v17026_v18 }
 0x458   : > { %13992 = vmatprep.mubr.bf16.mxu1 %v17024_v44  ;;  %14021 = vmatpush3.bf16.msra.mxu1 %v15578_v31 }
 0x459   : > { %14022 = vmatprep.subr.bf16.mxu1 %v15579_v28 }
 0x45c   : > { %14023 = vmatpush3.bf16.msra.mxu1 %v15579_v28 }
 0x45d   : > { %14024 = vmatprep.subr.bf16.mxu1 %v15580_v59 }
 0x45f   : > { %13993 = vmatmul.mubr.bf16.gmra.mrb[44].mxu1 %v17054_v3 }
 0x460   : > { %13996 = vmatprep.mubr.bf16.mxu1 %v17052_v58  ;;  %14025 = vmatpush3.bf16.msra.mxu1 %v15580_v59 }
 0x461   : > { %14026 = vmatprep.subr.bf16.mxu1 %v15581_v8 }
 0x464   : > { %14027 = vmatpush3.bf16.msra.mxu1 %v15581_v8 }
 0x467   : > { %13997 = vmatmul.mubr.bf16.gmra.mrb[48].mxu1 %v17081_v20 }
 0x468   : > { %14000 = vmatprep.mubr.bf16.mxu1 %v17079_v24 }
 0x46f   : > { %14001 = vmatmul.mubr.bf16.gmra.mrb[52].mxu1 %v17107_v33 }
 0x470   : > { %14004 = vmatprep.mubr.bf16.mxu1 %v17105_v19 }
 0x477   : > { %14005 = vmatmul.mubr.bf16.gmra.mrb[56].mxu1 %v17133_v47 }
 0x478   : > { %14008 = vmatprep.mubr.bf16.mxu1 %v17131_v21 }
 0x47f   : > { %14009 = vmatmul.mubr.bf16.gmra.mrb[60].mxu1 %v18143_v9 }
 0x480   : > { %14028 = vmatprep.mubr.msk.bf16.mxu1 %vm16465_vm5, %v16955_v0  ;;  %v15589_v0 = vld [vmem:[#allocation12 + $0x38] sm:$0xff]  }
 0x481   : > { %14074 = vmatprep.subr.bf16.mxu0 %v15589_v0 }
 0x482   : > { %14075 = vmatpush3.bf16.msra.mxu0 %v15589_v0 }
 0x487   : > { %14029 = vmatmul.mubr.msk.bf16.vlgmr.msra.gmra.mrb[32].mxu1 %vm16465_vm5, %v16984_v39  ;;  %v15590_v39 = vld [vmem:[#allocation12 + $0x40] sm:$0xff]  }
 0x488   : > { %14032 = vmatprep.mubr.msk.bf16.mxu1 %vm16465_vm5, %v16986_v12  ;;  %14108 = vmatprep.subr.bf16.mxu0 %v15590_v39  ;;  %v17436_v12 = vld [vmem:[%s18074_s4] ss:$0 sm:$0xff] }
 0x48f   : > { %14033 = vmatmul.mubr.msk.bf16.gmra.mrb[36].mxu1 %vm16465_vm5, %v17014_v61 }
 0x490   : > { %14036 = vmatprep.mubr.msk.bf16.mxu1 %vm16465_vm5, %v17016_v60 }
 0x497   : > { %14037 = vmatmul.mubr.msk.bf16.gmra.mrb[40].mxu1 %vm16465_vm5, %v17040_v57 }
 0x498   : > { %14040 = vmatprep.mubr.msk.bf16.mxu1 %vm16465_vm5, %v17042_v40 }
 0x49f   : > { %14041 = vmatmul.mubr.msk.bf16.gmra.mrb[44].mxu1 %vm16465_vm5, %v17069_v41 }
 0x4a0   : > { %14044 = vmatprep.mubr.msk.bf16.mxu1 %vm16465_vm5, %v17071_v51 }
 0x4a7   : > { %14045 = vmatmul.mubr.msk.bf16.gmra.mrb[48].mxu1 %vm16465_vm5, %v17095_v14 }
 0x4a8   : > { %14048 = vmatprep.mubr.msk.bf16.mxu1 %vm16465_vm5, %v17097_v22 }
 0x4af   : > { %14049 = vmatmul.mubr.msk.bf16.gmra.mrb[52].mxu1 %vm16465_vm5, %v17121_v63 }
 0x4b0   : > { %14052 = vmatprep.mubr.msk.bf16.mxu1 %vm16465_vm5, %v17123_v35 }
 0x4b7   : > { %14053 = vmatmul.mubr.msk.bf16.gmra.mrb[56].mxu1 %vm16465_vm5, %v17145_v43 }
 0x4b8   : > { %14056 = vmatprep.mubr.msk.bf16.mxu1 %vm16465_vm5, %v17141_v50 }
 0x4bf   : > { %14057 = vmatmul.mubr.bf16.gmra.mrb[60].mxu1 %v18143_v9 }
 0x55a   : > { %v14030_v61 = vpop.f32.mrb[32].mxu1 }
 0x55b   : > { %v7234_v60 = vadd.f32 %v14030_v61, %v17436_v12  ;;  %v6970_v44 = vpop.f32.mrb[33].mxu1 }
 0x55c   : > { %v7232_v18 = vadd.f32 %v17436_v12, %v6970_v44  ;;  %v14031_v57 = vpop.f32.mrb[34].mxu1 }
 0x55d   : > { %v7266_v40 = vmax.f32 %v7234_v60, 0.0  ;;  %v7235_v58 = vadd.f32 %v14031_v57, %v17436_v12  ;;  %v6973_v3 = vpop.f32.mrb[35].mxu1 }
 0x55e   : > { %v7264_v41 = vmax.f32 %v7232_v18, 0.0  ;;  %v7233_v51 = vadd.f32 %v17436_v12, %v6973_v3 }
 0x55f   : > { %v7267_v24 = vmax.f32 %v7235_v58, 0.0  ;;  %v7363_v20 = vrot.slane %v7266_v40, 7  ;;  %v7491_v33 = vrot.slane %v7266_v40, 1 }
 0x560   : > { %v7265_v14 = vmax.f32 %v7233_v51, 0.0  ;;  %v7360_v22 = vrot.slane %v7264_v41, 7  ;;  %v7488_v21 = vrot.slane %v7264_v41, 1 }
 0x561   : > { %v7364_v19 = vrot.slane %v7267_v24, 7  ;;  %v7492_v63 = vrot.slane %v7267_v24, 1  ;;  %v17442_v35 = vpack.c.bf16 %v7267_v24, %v7266_v40 }
 0x562   : > { %v17444_v47 = vpack.c.bf16 %v7265_v14, %v7264_v41  ;;  %v7361_v50 = vrot.slane %v7265_v14, 7  ;;  %v7489_v43 = vrot.slane %v7265_v14, 1  ;;  %v14034_v13 = vpop.f32.mrb[36].mxu1  ;;  %v15593_v41 = vld [vmem:[#allocation12 + $0x58] sm:$0xff]  }
 0x563   : > { %v7238_v52 = vadd.f32 %v14034_v13, %v17436_v12  ;;  %v6986_v42 = vpop.f32.mrb[37].mxu1  ;;  %v7365_v17 = vsel %vm553_vm0, %v7363_v20, %v7364_v19  ;;  %v7493_v36 = vsel %vm683_vm4, %v7491_v33, %v7492_v63  ;;  %v15594_v13 = vld [vmem:[#allocation12 + $0x60] sm:$0xff]  }
 0x564   : > { %v7362_v6 = vsel %vm553_vm0, %v7360_v22, %v7361_v50  ;;  %v7490_v25 = vsel %vm683_vm4, %v7488_v21, %v7489_v43  ;;  %v7236_v4 = vadd.f32 %v17436_v12, %v6986_v42  ;;  %v14035_v27 = vpop.f32.mrb[38].mxu1  ;;  %v17452_v10 = vpack.c.bf16 %v7365_v17, %v7363_v20 }
 0x565   : > { %v17454_v45 = vpack.c.bf16 %v7362_v6, %v7360_v22  ;;  %v17456_v5 = vpack.c.bf16 %v7489_v43, %v7490_v25  ;;  %v7270_v62 = vmax.f32 %v7238_v52, 0.0  ;;  %v7239_v46 = vadd.f32 %v14035_v27, %v17436_v12  ;;  %v6989_v34 = vpop.f32.mrb[39].mxu1 }
 0x566   : > { %v7268_v37 = vmax.f32 %v7236_v4, 0.0  ;;  %v7237_v49 = vadd.f32 %v17436_v12, %v6989_v34  ;;  %v17460_v26 = vpack.c.bf16 %v7492_v63, %v7493_v36 }
 0x567   : > { %v7271_v56 = vmax.f32 %v7239_v46, 0.0  ;;  %14077 = vmatmul.mubr.msk.bf16.vlgmr.msra.gmra.mrb[32].mxu0 %vm16265_vm3, %v17454_v45  ;;  %v7369_v16 = vrot.slane %v7270_v62, 7  ;;  %v7497_v54 = vrot.slane %v7270_v62, 1 }
 0x568   : > { %v7269_v38 = vmax.f32 %v7237_v49, 0.0  ;;  %14080 = vmatprep.mubr.msk.bf16.mxu0 %vm16265_vm3, %v17452_v10  ;;  %14109 = vmatpush3.bf16.msra.mxu0 %v15590_v39  ;;  %v7366_v48 = vrot.slane %v7268_v37, 7  ;;  %v7494_v15 = vrot.slane %v7268_v37, 1 }
 0x569   : > { %v7370_v55 = vrot.slane %v7271_v56, 7  ;;  %v7498_v53 = vrot.slane %v7271_v56, 1  ;;  %14110 = vmatprep.subr.bf16.mxu0 %v15591_v11  ;;  %v17468_v29 = vpack.c.bf16 %v7271_v56, %v7270_v62 }
 0x56a   : > { %v7367_v1 = vrot.slane %v7269_v38, 7  ;;  %v7495_v7 = vrot.slane %v7269_v38, 1  ;;  %v14038_v31 = vpop.f32.mrb[40].mxu1  ;;  %v17470_v2 = vpack.c.bf16 %v7269_v38, %v7268_v37 }
 0x56b   : > { %v7242_v28 = vadd.f32 %v14038_v31, %v17436_v12  ;;  %v7002_v59 = vpop.f32.mrb[41].mxu1  ;;  %v7371_v8 = vsel %vm553_vm0, %v7369_v16, %v7370_v55  ;;  %v7499_v0 = vsel %vm683_vm4, %v7497_v54, %v7498_v53  ;;  %v15595_v55 = vld [vmem:[#allocation12 + $0x68] sm:$0xff]  }
 0x56c   : > { %v7240_v39 = vadd.f32 %v17436_v12, %v7002_v59  ;;  %v14039_v61 = vpop.f32.mrb[42].mxu1  ;;  %v7368_v60 = vsel %vm553_vm0, %v7366_v48, %v7367_v1  ;;  %v17477_v44 = vpack.c.bf16 %v7371_v8, %v7369_v16  ;;  %14111 = vmatpush3.bf16.msra.mxu0 %v15591_v11  ;;  %v7496_v18 = vsel %vm683_vm4, %v7494_v15, %v7495_v7 }
 0x56d   : > { %v7274_v57 = vmax.f32 %v7242_v28, 0.0  ;;  %v7243_v40 = vadd.f32 %v14039_v61, %v17436_v12  ;;  %v7005_v58 = vpop.f32.mrb[43].mxu1  ;;  %v17481_v3 = vpack.c.bf16 %v7368_v60, %v7366_v48  ;;  %14112 = vmatprep.subr.bf16.mxu0 %v15592_v30  ;;  %v17483_v51 = vpack.c.bf16 %v7495_v7, %v7496_v18  ;;  %v15596_v61 = vld [vmem:[#allocation12 + $0x70] sm:$0xff]  }
 0x56e   : > { %v7272_v24 = vmax.f32 %v7240_v39, 0.0  ;;  %v7241_v20 = vadd.f32 %v17436_v12, %v7005_v58  ;;  %v17486_v33 = vpack.c.bf16 %v7498_v53, %v7499_v0 }
 0x56f   : > { %v7275_v14 = vmax.f32 %v7243_v40, 0.0  ;;  %14081 = vmatmul.mubr.msk.bf16.gmra.mrb[36].mxu0 %vm16265_vm3, %v17481_v3  ;;  %v7375_v22 = vrot.slane %v7274_v57, 7  ;;  %v7503_v19 = vrot.slane %v7274_v57, 1 }
 0x570   : > { %v7273_v63 = vmax.f32 %v7241_v20, 0.0  ;;  %14084 = vmatprep.mubr.msk.bf16.mxu0 %vm16265_vm3, %v17477_v44  ;;  %14113 = vmatpush3.bf16.msra.mxu0 %v15592_v30  ;;  %v7372_v21 = vrot.slane %v7272_v24, 7  ;;  %v7500_v42 = vrot.slane %v7272_v24, 1 }
 0x571   : > { %v7376_v50 = vrot.slane %v7275_v14, 7  ;;  %v7504_v43 = vrot.slane %v7275_v14, 1  ;;  %14114 = vmatprep.subr.bf16.mxu0 %v15593_v41  ;;  %v17494_v52 = vpack.c.bf16 %v7275_v14, %v7274_v57 }
 0x572   : > { %v7373_v17 = vrot.slane %v7273_v63, 7  ;;  %v7501_v36 = vrot.slane %v7273_v63, 1  ;;  %v14042_v6 = vpop.f32.mrb[44].mxu1  ;;  %v17496_v25 = vpack.c.bf16 %v7273_v63, %v7272_v24 }
 0x573   : > { %v7246_v4 = vadd.f32 %v14042_v6, %v17436_v12  ;;  %v7018_v27 = vpop.f32.mrb[45].mxu1  ;;  %v7377_v62 = vsel %vm553_vm0, %v7375_v22, %v7376_v50  ;;  %v7505_v46 = vsel %vm683_vm4, %v7503_v19, %v7504_v43  ;;  %v15597_v6 = vld [vmem:[#allocation12 + $0x78] sm:$0xff]  }
 0x574   : > { %v7244_v34 = vadd.f32 %v17436_v12, %v7018_v27  ;;  %v14043_v11 = vpop.f32.mrb[46].mxu1  ;;  %v7374_v37 = vsel %vm553_vm0, %v7372_v21, %v7373_v17  ;;  %v17503_v49 = vpack.c.bf16 %v7377_v62, %v7375_v22  ;;  %14115 = vmatpush3.bf16.msra.mxu0 %v15593_v41  ;;  %v7502_v56 = vsel %vm683_vm4, %v7500_v42, %v7501_v36 }
 0x575   : > { %v7278_v16 = vmax.f32 %v7246_v4, 0.0  ;;  %v7247_v54 = vadd.f32 %v14043_v11, %v17436_v12  ;;  %v7021_v38 = vpop.f32.mrb[47].mxu1  ;;  %v17507_v48 = vpack.c.bf16 %v7374_v37, %v7372_v21  ;;  %14116 = vmatprep.subr.bf16.mxu0 %v15594_v13  ;;  %v17509_v53 = vpack.c.bf16 %v7501_v36, %v7502_v56 }
 0x576   : > { %v7276_v30 = vmax.f32 %v7244_v34, 0.0  ;;  %v7245_v15 = vadd.f32 %v17436_v12, %v7021_v38  ;;  %v17512_v1 = vpack.c.bf16 %v7504_v43, %v7505_v46 }
 0x577   : > { %v7279_v7 = vmax.f32 %v7247_v54, 0.0  ;;  %14085 = vmatmul.mubr.msk.bf16.gmra.mrb[40].mxu0 %vm16265_vm3, %v17507_v48  ;;  %v7381_v31 = vrot.slane %v7278_v16, 7  ;;  %v7509_v28 = vrot.slane %v7278_v16, 1 }
 0x578   : > { %v7277_v59 = vmax.f32 %v7245_v15, 0.0  ;;  %14088 = vmatprep.mubr.msk.bf16.mxu0 %vm16265_vm3, %v17503_v49  ;;  %14117 = vmatpush3.bf16.msra.mxu0 %v15594_v13  ;;  %v7378_v8 = vrot.slane %v7276_v30, 7  ;;  %v7506_v18 = vrot.slane %v7276_v30, 1 }
 0x579   : > { %v7382_v0 = vrot.slane %v7279_v7, 7  ;;  %v7510_v39 = vrot.slane %v7279_v7, 1  ;;  %14118 = vmatprep.subr.bf16.mxu0 %v15595_v55  ;;  %v17520_v60 = vpack.c.bf16 %v7279_v7, %v7278_v16 }
 0x57a   : > { %v7379_v57 = vrot.slane %v7277_v59, 7  ;;  %v7507_v40 = vrot.slane %v7277_v59, 1  ;;  %v14046_v58 = vpop.f32.mrb[48].mxu1  ;;  %v17522_v41 = vpack.c.bf16 %v7277_v59, %v7276_v30 }
 0x57b   : > { %v7250_v24 = vadd.f32 %v14046_v58, %v17436_v12  ;;  %v7034_v20 = vpop.f32.mrb[49].mxu1  ;;  %v7383_v14 = vsel %vm553_vm0, %v7381_v31, %v7382_v0  ;;  %v7511_v22 = vsel %vm683_vm4, %v7509_v28, %v7510_v39 }
 0x57c   : > { %v7248_v19 = vadd.f32 %v17436_v12, %v7034_v20  ;;  %v14047_v63 = vpop.f32.mrb[50].mxu1  ;;  %v7380_v21 = vsel %vm553_vm0, %v7378_v8, %v7379_v57  ;;  %v17529_v50 = vpack.c.bf16 %v7383_v14, %v7381_v31  ;;  %14119 = vmatpush3.bf16.msra.mxu0 %v15595_v55  ;;  %v7508_v43 = vsel %vm683_vm4, %v7506_v18, %v7507_v40  ;;  %v17546_v55 = vld [vmem:[#allocation12 + $0x80] sm:$0xff]  }
 0x57d   : > { %v7282_v13 = vmax.f32 %v7250_v24, 0.0  ;;  %v7251_v42 = vadd.f32 %v14047_v63, %v17436_v12  ;;  %v7037_v17 = vpop.f32.mrb[51].mxu1  ;;  %v17533_v36 = vpack.c.bf16 %v7380_v21, %v7378_v8  ;;  %14120 = vmatprep.subr.bf16.mxu0 %v15596_v61  ;;  %v17535_v4 = vpack.c.bf16 %v7507_v40, %v7508_v43 }
 0x57e   : > { %v7280_v27 = vmax.f32 %v7248_v19, 0.0  ;;  %v7249_v62 = vadd.f32 %v17436_v12, %v7037_v17  ;;  %v17538_v46 = vpack.c.bf16 %v7510_v39, %v7511_v22 }
 0x57f   : > { %v7283_v34 = vmax.f32 %v7251_v42, 0.0  ;;  %14089 = vmatmul.mubr.msk.bf16.gmra.mrb[44].mxu0 %vm16265_vm3, %v17533_v36  ;;  %v7387_v11 = vrot.slane %v7282_v13, 7  ;;  %v7515_v37 = vrot.slane %v7282_v13, 1 }
 0x580   : > { %v7281_v56 = vmax.f32 %v7249_v62, 0.0  ;;  %14092 = vmatprep.mubr.msk.bf16.mxu0 %vm16265_vm3, %v17529_v50  ;;  %14121 = vmatpush3.bf16.msra.mxu0 %v15596_v61  ;;  %v7384_v16 = vrot.slane %v7280_v27, 7  ;;  %v7512_v15 = vrot.slane %v7280_v27, 1 }
 0x581   : > { %v7388_v54 = vrot.slane %v7283_v34, 7  ;;  %v7516_v38 = vrot.slane %v7283_v34, 1  ;;  %14122 = vmatprep.subr.bf16.mxu0 %v15597_v6  ;;  %v17548_v30 = vpack.c.bf16 %v7283_v34, %v7282_v13 }
 0x582   : > { %v7385_v7 = vrot.slane %v7281_v56, 7  ;;  %v7513_v31 = vrot.slane %v7281_v56, 1  ;;  %v14050_v28 = vpop.f32.mrb[52].mxu1  ;;  %v17550_v59 = vpack.c.bf16 %v7281_v56, %v7280_v27 }
 0x583   : > { %v7254_v8 = vadd.f32 %v14050_v28, %v17436_v12  ;;  %v7050_v0 = vpop.f32.mrb[53].mxu1  ;;  %v7389_v39 = vsel %vm553_vm0, %v7387_v11, %v7388_v54  ;;  %v7517_v61 = vsel %vm683_vm4, %v7515_v37, %v7516_v38 }
 0x584   : > { %v7252_v18 = vadd.f32 %v17436_v12, %v7050_v0  ;;  %v14051_v57 = vpop.f32.mrb[54].mxu1  ;;  %v7386_v40 = vsel %vm553_vm0, %v7384_v16, %v7385_v7  ;;  %v17557_v58 = vpack.c.bf16 %v7389_v39, %v7387_v11  ;;  %14123 = vmatpush3.bf16.msra.mxu0 %v15597_v6  ;;  %v7514_v24 = vsel %vm683_vm4, %v7512_v15, %v7513_v31 }
 0x585   : > { %v7286_v20 = vmax.f32 %v7254_v8, 0.0  ;;  %v7255_v14 = vadd.f32 %v14051_v57, %v17436_v12  ;;  %v7053_v22 = vpop.f32.mrb[55].mxu1  ;;  %v17561_v19 = vpack.c.bf16 %v7386_v40, %v7384_v16  ;;  %14156 = vmatprep.subr.bf16.mxu0 %v17546_v55  ;;  %v17564_v63 = vpack.c.bf16 %v7513_v31, %v7514_v24 }
 0x586   : > { %v7284_v21 = vmax.f32 %v7252_v18, 0.0  ;;  %v7253_v43 = vadd.f32 %v17436_v12, %v7053_v22  ;;  %v17567_v13 = vpack.c.bf16 %v7516_v38, %v7517_v61 }
 0x587   : > { %v7287_v42 = vmax.f32 %v7255_v14, 0.0  ;;  %14093 = vmatmul.mubr.msk.bf16.gmra.mrb[48].mxu0 %vm16265_vm3, %v17561_v19  ;;  %v7393_v17 = vrot.slane %v7286_v20, 7  ;;  %v7521_v6 = vrot.slane %v7286_v20, 1 }
 0x588   : > { %v7285_v27 = vmax.f32 %v7253_v43, 0.0  ;;  %14096 = vmatprep.mubr.msk.bf16.mxu0 %vm16265_vm3, %v17557_v58  ;;  %v7390_v62 = vrot.slane %v7284_v21, 7  ;;  %v7518_v56 = vrot.slane %v7284_v21, 1 }
 0x589   : > { %v7394_v34 = vrot.slane %v7287_v42, 7  ;;  %v7522_v11 = vrot.slane %v7287_v42, 1  ;;  %v17575_v37 = vpack.c.bf16 %v7287_v42, %v7286_v20 }
 0x58a   : > { %v7391_v16 = vrot.slane %v7285_v27, 7  ;;  %v7519_v54 = vrot.slane %v7285_v27, 1  ;;  %v14054_v38 = vpop.f32.mrb[56].mxu1  ;;  %v17577_v15 = vpack.c.bf16 %v7285_v27, %v7284_v21 }
 0x58b   : > { %v7258_v7 = vadd.f32 %v14054_v38, %v17436_v12  ;;  %v7066_v31 = vpop.f32.mrb[57].mxu1  ;;  %v7395_v28 = vsel %vm553_vm0, %v7393_v17, %v7394_v34  ;;  %v7523_v8 = vsel %vm683_vm4, %v7521_v6, %v7522_v11 }
 0x58c   : > { %v7256_v0 = vadd.f32 %v17436_v12, %v7066_v31  ;;  %v14055_v39 = vpop.f32.mrb[58].mxu1  ;;  %v7392_v61 = vsel %vm553_vm0, %v7390_v62, %v7391_v16  ;;  %v17584_v18 = vpack.c.bf16 %v7395_v28, %v7393_v17  ;;  %v7520_v57 = vsel %vm683_vm4, %v7518_v56, %v7519_v54 }
 0x58d   : > { %v7290_v40 = vmax.f32 %v7258_v7, 0.0  ;;  %v7259_v24 = vadd.f32 %v14055_v39, %v17436_v12  ;;  %v7069_v20 = vpop.f32.mrb[59].mxu1  ;;  %v17588_v14 = vpack.c.bf16 %v7392_v61, %v7390_v62  ;;  %v17590_v22 = vpack.c.bf16 %v7519_v54, %v7520_v57 }
 0x58e   : > { %18161 = vst [vmem:[#allocation31_spill] sm:$0xff] %v17584_v18  ;;  %v7288_v21 = vmax.f32 %v7256_v0, 0.0  ;;  %v7257_v43 = vadd.f32 %v17436_v12, %v7069_v20  ;;  %v17593_v42 = vpack.c.bf16 %v7522_v11, %v7523_v8 }
 0x58f   : > { %18162 = vst [vmem:[#allocation25_spill] sm:$0xff] %v17588_v14  ;;  %v7291_v6 = vmax.f32 %v7259_v24, 0.0  ;;  %14097 = vmatmul.mubr.msk.bf16.gmra.mrb[52].mxu0 %vm16265_vm3, %v17588_v14  ;;  %v7399_v17 = vrot.slane %v7290_v40, 7  ;;  %v7527_v27 = vrot.slane %v7290_v40, 1 }
 0x590   : > { %v7289_v34 = vmax.f32 %v7257_v43, 0.0  ;;  %14100 = vmatprep.mubr.msk.bf16.mxu0 %vm16265_vm3, %v17584_v18  ;;  %v7396_v62 = vrot.slane %v7288_v21, 7  ;;  %v7524_v38 = vrot.slane %v7288_v21, 1 }
 0x591   : > { %v7400_v56 = vrot.slane %v7291_v6, 7  ;;  %v7528_v16 = vrot.slane %v7291_v6, 1  ;;  %v17601_v54 = vpack.c.bf16 %v7291_v6, %v7290_v40 }
 0x592   : > { %v7397_v11 = vrot.slane %v7289_v34, 7  ;;  %v7525_v7 = vrot.slane %v7289_v34, 1  ;;  %v14058_v31 = vpop.f32.mrb[60].mxu1  ;;  %v17603_v28 = vpack.c.bf16 %v7289_v34, %v7288_v21 }
 0x593   : > { %v7262_v8 = vadd.f32 %v14058_v31, %v17436_v12  ;;  %v7082_v0 = vpop.f32.mrb[61].mxu1  ;;  %v7401_v39 = vsel %vm553_vm0, %v7399_v17, %v7400_v56  ;;  %v7529_v61 = vsel %vm683_vm4, %v7527_v27, %v7528_v16 }
 0x594   : > { %v7260_v57 = vadd.f32 %v17436_v12, %v7082_v0  ;;  %v14059_v24 = vpop.f32.mrb[62].mxu1  ;;  %v7398_v20 = vsel %vm553_vm0, %v7396_v62, %v7397_v11  ;;  %v17610_v40 = vpack.c.bf16 %v7401_v39, %v7399_v17  ;;  %v7526_v43 = vsel %vm683_vm4, %v7524_v38, %v7525_v7 }
 0x595   : > { %v7294_v6 = vmax.f32 %v7262_v8, 0.0  ;;  %v7263_v21 = vadd.f32 %v14059_v24, %v17436_v12  ;;  %v7085_v34 = vpop.f32.mrb[63].mxu1  ;;  %v17614_v18 = vpack.c.bf16 %v7398_v20, %v7396_v62  ;;  %v17616_v31 = vpack.c.bf16 %v7525_v7, %v7526_v43 }
 0x596   : > { %18163 = vst [vmem:[#allocation26_spill] sm:$0xff] %v17610_v40  ;;  %v7292_v56 = vmax.f32 %v7260_v57, 0.0  ;;  %v7261_v27 = vadd.f32 %v17436_v12, %v7085_v34  ;;  %v17619_v14 = vpack.c.bf16 %v7528_v16, %v7529_v61 }
 0x597   : > { %v7295_v0 = vmax.f32 %v7263_v21, 0.0  ;;  %14101 = vmatmul.mubr.msk.bf16.gmra.mrb[56].mxu0 %vm16265_vm3, %v17614_v18  ;;  %v7405_v17 = vrot.slane %v7294_v6, 7  ;;  %v7533_v38 = vrot.slane %v7294_v6, 1 }
 0x598   : > { %v7293_v11 = vmax.f32 %v7261_v27, 0.0  ;;  %14104 = vmatprep.mubr.msk.bf16.mxu0 %vm16265_vm3, %v17610_v40  ;;  %v7402_v62 = vrot.slane %v7292_v56, 7  ;;  %v7530_v12 = vrot.slane %v7292_v56, 1 }
 0x599   : > { %v7406_v7 = vrot.slane %v7295_v0, 7  ;;  %v7534_v8 = vrot.slane %v7295_v0, 1  ;;  %v17627_v39 = vpack.c.bf16 %v7295_v0, %v7294_v6  ;;  %v15600_v0 = vld [vmem:[#allocation12 + $0x90] sm:$0xff]  }
 0x59a   : > { %v7403_v16 = vrot.slane %v7293_v11, 7  ;;  %v7531_v61 = vrot.slane %v7293_v11, 1  ;;  %v17629_v57 = vpack.c.bf16 %v7293_v11, %v7292_v56  ;;  %v15599_v56 = vld [vmem:[#allocation12 + $0x88] sm:$0xff]  }
 0x59b   : > { %v7407_v24 = vsel %vm553_vm0, %v7405_v17, %v7406_v7  ;;  %v7535_v20 = vsel %vm683_vm4, %v7533_v38, %v7534_v8  ;;  %v15602_v38 = vld [vmem:[#allocation12 + $0xa0] sm:$0xff]   ;;  %v15603_v11 = vld [vmem:[#allocation12 + $0xa8] sm:$0xff]  }
 0x59c   : > { %v7404_v43 = vsel %vm553_vm0, %v7402_v62, %v7403_v16  ;;  %v7532_v21 = vsel %vm683_vm4, %v7530_v12, %v7531_v61  ;;  %v17635_v34 = vpack.c.bf16 %v7407_v24, %v7405_v17  ;;  %v17637_v27 = vpack.c.bf16 %v7534_v8, %v7535_v20  ;;  %v15601_v17 = vld [vmem:[#allocation12 + $0x98] sm:$0xff]   ;;  %v15606_v7 = vld [vmem:[#allocation12 + $0xc0] sm:$0xff]   ;;  %v15607_v8 = vld [vmem:[#allocation12 + $0xc8] sm:$0xff]  }
 0x59d   : > { %v17639_v40 = vpack.c.bf16 %v7404_v43, %v7402_v62  ;;  %v17641_v6 = vpack.c.bf16 %v7531_v61, %v7532_v21  ;;  %v15605_v62 = vld [vmem:[#allocation12 + $0xb8] sm:$0xff]   ;;  %v15608_v12 = vld [vmem:[#allocation12 + $0xd0] sm:$0xff]   ;;  %v15610_v61 = vld [vmem:[#allocation12 + $0xe0] sm:$0xff]  }
 0x59e   : > { %v15609_v16 = vld [vmem:[#allocation12 + $0xd8] sm:$0xff]   ;;  %v15611_v24 = vld [vmem:[#allocation12 + $0xe8] sm:$0xff]   ;;  %v15612_v20 = vld [vmem:[#allocation12 + $0xf0] sm:$0xff]  }
 0x59f   : > { %14105 = vmatmul.mubr.msk.bf16.gmra.mrb[60].mxu0 %vm16265_vm3, %v17639_v40  ;;  %v15613_v43 = vld [vmem:[#allocation12 + $0xf8] sm:$0xff]   ;;  %v15614_v21 = vld [vmem:[#allocation12 + $0x100] sm:$0xff]  }
 0x5a0   : > { %14124 = vmatprep.mubr.bf16.mxu0 %v18143_v9 }
 0x5a7   : > { %14125 = vmatmul.mubr.bf16.vlgmr.msra.gmra.mrb[32].mxu0 %v17444_v47 }
 0x5a8   : > { %14128 = vmatprep.mubr.bf16.mxu0 %v17442_v35  ;;  %14157 = vmatpush3.bf16.msra.mxu0 %v17546_v55  ;;  %v15604_v55 = vld [vmem:[#allocation12 + $0xb0] sm:$0xff]  }
 0x5a9   : > { %14158 = vmatprep.subr.bf16.mxu0 %v15599_v56 }
 0x5ac   : > { %14159 = vmatpush3.bf16.msra.mxu0 %v15599_v56  ;;  %v15615_v56 = vld [vmem:[#allocation12 + $0x108] sm:$0xff]  }
 0x5ad   : > { %14160 = vmatprep.subr.bf16.mxu0 %v15600_v0 }
 0x5af   : > { %14129 = vmatmul.mubr.bf16.gmra.mrb[36].mxu0 %v17470_v2 }
 0x5b0   : > { %14132 = vmatprep.mubr.bf16.mxu0 %v17468_v29  ;;  %14161 = vmatpush3.bf16.msra.mxu0 %v15600_v0  ;;  %v15616_v0 = vld [vmem:[#allocation12 + $0x110] sm:$0xff]  }
 0x5b1   : > { %14162 = vmatprep.subr.bf16.mxu0 %v15601_v17 }
 0x5b4   : > { %14163 = vmatpush3.bf16.msra.mxu0 %v15601_v17  ;;  %v15617_v17 = vld [vmem:[#allocation12 + $0x118] sm:$0xff]  }
 0x5b5   : > { %14164 = vmatprep.subr.bf16.mxu0 %v15602_v38 }
 0x5b7   : > { %14133 = vmatmul.mubr.bf16.gmra.mrb[40].mxu0 %v17496_v25 }
 0x5b8   : > { %14136 = vmatprep.mubr.bf16.mxu0 %v17494_v52  ;;  %14165 = vmatpush3.bf16.msra.mxu0 %v15602_v38  ;;  %v15619_v38 = vld [vmem:[#allocation12 + $0x128] sm:$0xff]  }
 0x5b9   : > { %14166 = vmatprep.subr.bf16.mxu0 %v15603_v11 }
 0x5bc   : > { %14167 = vmatpush3.bf16.msra.mxu0 %v15603_v11  ;;  %v15620_v11 = vld [vmem:[#allocation12 + $0x130] sm:$0xff]  }
 0x5bd   : > { %14168 = vmatprep.subr.bf16.mxu0 %v15604_v55 }
 0x5bf   : > { %14137 = vmatmul.mubr.bf16.gmra.mrb[44].mxu0 %v17522_v41 }
 0x5c0   : > { %14140 = vmatprep.mubr.bf16.mxu0 %v17520_v60  ;;  %14169 = vmatpush3.bf16.msra.mxu0 %v15604_v55  ;;  %v15621_v55 = vld [vmem:[#allocation12 + $0x138] sm:$0xff]  }
 0x5c1   : > { %14170 = vmatprep.subr.bf16.mxu0 %v15605_v62 }
 0x5c4   : > { %14171 = vmatpush3.bf16.msra.mxu0 %v15605_v62  ;;  %v15622_v62 = vld [vmem:[#allocation12 + $0x140] sm:$0xff]  }
 0x5c5   : > { %14204 = vmatprep.subr.bf16.mxu0 %v15606_v7 }
 0x5c7   : > { %14141 = vmatmul.mubr.bf16.gmra.mrb[48].mxu0 %v17550_v59 }
 0x5c8   : > { %14144 = vmatprep.mubr.bf16.mxu0 %v17548_v30 }
 0x5cf   : > { %14145 = vmatmul.mubr.bf16.gmra.mrb[52].mxu0 %v17577_v15 }
 0x5d0   : > { %14148 = vmatprep.mubr.bf16.mxu0 %v17575_v37 }
 0x5d7   : > { %14149 = vmatmul.mubr.bf16.gmra.mrb[56].mxu0 %v17603_v28 }
 0x5d8   : > { %14152 = vmatprep.mubr.bf16.mxu0 %v17601_v54 }
 0x5df   : > { %14153 = vmatmul.mubr.bf16.gmra.mrb[60].mxu0 %v17629_v57 }
 0x5e0   : > { %14172 = vmatprep.mubr.bf16.mxu0 %v18143_v9 }
 0x5e7   : > { %14173 = vmatmul.mubr.msk.bf16.vlgmr.msra.gmra.mrb[32].mxu0 %vm16465_vm5, %v17456_v5 }
 0x5e8   : > { %14176 = vmatprep.mubr.msk.bf16.mxu0 %vm16465_vm5, %v17460_v26  ;;  %14205 = vmatpush3.bf16.msra.mxu0 %v15606_v7  ;;  %v18164_v7 = vld [vmem:[#allocation25_spill] sm:$0xff] }
 0x5e9   : > { %14206 = vmatprep.subr.bf16.mxu0 %v15607_v8 }
 0x5ec   : > { %14207 = vmatpush3.bf16.msra.mxu0 %v15607_v8  ;;  %v18165_v8 = vld [vmem:[#allocation31_spill] sm:$0xff] }
 0x5ed   : > { %14208 = vmatprep.subr.bf16.mxu0 %v15608_v12 }
 0x5ef   : > { %14177 = vmatmul.mubr.msk.bf16.gmra.mrb[36].mxu0 %vm16465_vm5, %v17483_v51 }
 0x5f0   : > { %14180 = vmatprep.mubr.msk.bf16.mxu0 %vm16465_vm5, %v17486_v33  ;;  %14209 = vmatpush3.bf16.msra.mxu0 %v15608_v12  ;;  %v18166_v12 = vld [vmem:[#allocation26_spill] sm:$0xff] }
 0x5f1   : > { %14210 = vmatprep.subr.bf16.mxu0 %v15609_v16 }
 0x5f4   : > { %14211 = vmatpush3.bf16.msra.mxu0 %v15609_v16  ;;  %v15623_v16 = vld [vmem:[#allocation12 + $0x148] sm:$0xff]  }
 0x5f5   : > { %14212 = vmatprep.subr.bf16.mxu0 %v15610_v61 }
 0x5f7   : > { %14181 = vmatmul.mubr.msk.bf16.gmra.mrb[40].mxu0 %vm16465_vm5, %v17509_v53 }
 0x5f8   : > { %14184 = vmatprep.mubr.msk.bf16.mxu0 %vm16465_vm5, %v17512_v1  ;;  %14213 = vmatpush3.bf16.msra.mxu0 %v15610_v61  ;;  %v15624_v61 = vld [vmem:[#allocation12 + $0x150] sm:$0xff]  }
 0x5f9   : > { %14214 = vmatprep.subr.bf16.mxu0 %v15611_v24 }
 0x5fc   : > { %14215 = vmatpush3.bf16.msra.mxu0 %v15611_v24  ;;  %v15625_v24 = vld [vmem:[#allocation12 + $0x158] sm:$0xff]  }
 0x5fd   : > { %14216 = vmatprep.subr.bf16.mxu0 %v15612_v20 }
 0x5ff   : > { %14185 = vmatmul.mubr.msk.bf16.gmra.mrb[44].mxu0 %vm16465_vm5, %v17535_v4 }
 0x600   : > { %14188 = vmatprep.mubr.msk.bf16.mxu0 %vm16465_vm5, %v17538_v46  ;;  %14217 = vmatpush3.bf16.msra.mxu0 %v15612_v20  ;;  %v15626_v20 = vld [vmem:[#allocation12 + $0x160] sm:$0xff]  }
 0x601   : > { %14218 = vmatprep.subr.bf16.mxu0 %v15613_v43 }
 0x604   : > { %14219 = vmatpush3.bf16.msra.mxu0 %v15613_v43  ;;  %v15628_v43 = vld [vmem:[#allocation12 + $0x170] sm:$0xff]  }
 0x605   : > { %14252 = vmatprep.subr.bf16.mxu0 %v15614_v21 }
 0x607   : > { %14189 = vmatmul.mubr.msk.bf16.gmra.mrb[48].mxu0 %vm16465_vm5, %v17564_v63 }
 0x608   : > { %14192 = vmatprep.mubr.msk.bf16.mxu0 %vm16465_vm5, %v17567_v13 }
 0x60f   : > { %14193 = vmatmul.mubr.msk.bf16.gmra.mrb[52].mxu0 %vm16465_vm5, %v17590_v22 }
 0x610   : > { %14196 = vmatprep.mubr.msk.bf16.mxu0 %vm16465_vm5, %v17593_v42 }
 0x617   : > { %14197 = vmatmul.mubr.msk.bf16.gmra.mrb[56].mxu0 %vm16465_vm5, %v17616_v31 }
 0x618   : > { %14200 = vmatprep.mubr.msk.bf16.mxu0 %vm16465_vm5, %v17619_v14 }
 0x61f   : > { %14201 = vmatmul.mubr.msk.bf16.gmra.mrb[60].mxu0 %vm16465_vm5, %v17641_v6 }
 0x620   : > { %14220 = vmatprep.mubr.msk.bf16.mxu0 %vm16265_vm3, %v17454_v45  ;;  %v15618_v45 = vld [vmem:[#allocation12 + $0x120] sm:$0xff]  }
 0x627   : > { %14221 = vmatmul.mubr.msk.bf16.vlgmr.msra.gmra.mrb[32].mxu0 %vm16265_vm3, %v17452_v10 }
 0x628   : > { %14224 = vmatprep.mubr.msk.bf16.mxu0 %vm16265_vm3, %v17481_v3  ;;  %14253 = vmatpush3.bf16.msra.mxu0 %v15614_v21  ;;  %v15629_v21 = vld [vmem:[#allocation12 + $0x178] sm:$0xff]  }
 0x629   : > { %14254 = vmatprep.subr.bf16.mxu0 %v15615_v56 }
 0x62c   : > { %14255 = vmatpush3.bf16.msra.mxu0 %v15615_v56  ;;  %v15630_v56 = vld [vmem:[#allocation12 + $0x180] sm:$0xff]  }
 0x62d   : > { %14256 = vmatprep.subr.bf16.mxu0 %v15616_v0 }
 0x62f   : > { %14225 = vmatmul.mubr.msk.bf16.gmra.mrb[36].mxu0 %vm16265_vm3, %v17477_v44 }
 0x630   : > { %14228 = vmatprep.mubr.msk.bf16.mxu0 %vm16265_vm3, %v17507_v48  ;;  %14257 = vmatpush3.bf16.msra.mxu0 %v15616_v0  ;;  %v15631_v0 = vld [vmem:[#allocation12 + $0x188] sm:$0xff]  }
 0x631   : > { %14258 = vmatprep.subr.bf16.mxu0 %v15617_v17 }
 0x634   : > { %14259 = vmatpush3.bf16.msra.mxu0 %v15617_v17  ;;  %v15632_v17 = vld [vmem:[#allocation12 + $0x190] sm:$0xff]  }
 0x635   : > { %14260 = vmatprep.subr.bf16.mxu0 %v15618_v45 }
 0x637   : > { %14229 = vmatmul.mubr.msk.bf16.gmra.mrb[40].mxu0 %vm16265_vm3, %v17503_v49 }
 0x638   : > { %14232 = vmatprep.mubr.msk.bf16.mxu0 %vm16265_vm3, %v17533_v36  ;;  %14261 = vmatpush3.bf16.msra.mxu0 %v15618_v45  ;;  %v15633_v45 = vld [vmem:[#allocation12 + $0x198] sm:$0xff]  }
 0x639   : > { %14262 = vmatprep.subr.bf16.mxu0 %v15619_v38 }
 0x63c   : > { %14263 = vmatpush3.bf16.msra.mxu0 %v15619_v38  ;;  %v15635_v38 = vld [vmem:[#allocation12 + $0x1a8] sm:$0xff]  }
 0x63d   : > { %14264 = vmatprep.subr.bf16.mxu0 %v15620_v11 }
 0x63f   : > { %14233 = vmatmul.mubr.msk.bf16.gmra.mrb[44].mxu0 %vm16265_vm3, %v17529_v50 }
 0x640   : > { %14236 = vmatprep.mubr.msk.bf16.mxu0 %vm16265_vm3, %v17561_v19  ;;  %14265 = vmatpush3.bf16.msra.mxu0 %v15620_v11  ;;  %v15636_v11 = vld [vmem:[#allocation12 + $0x1b0] sm:$0xff]  }
 0x641   : > { %14266 = vmatprep.subr.bf16.mxu0 %v15621_v55 }
 0x644   : > { %14267 = vmatpush3.bf16.msra.mxu0 %v15621_v55  ;;  %v15637_v55 = vld [vmem:[#allocation12 + $0x1b8] sm:$0xff]  }
 0x645   : > { %14300 = vmatprep.subr.bf16.mxu0 %v15622_v62 }
 0x647   : > { %14237 = vmatmul.mubr.msk.bf16.gmra.mrb[48].mxu0 %vm16265_vm3, %v17557_v58 }
 0x648   : > { %14240 = vmatprep.mubr.msk.bf16.mxu0 %vm16265_vm3, %v18164_v7 }
 0x64f   : > { %14241 = vmatmul.mubr.msk.bf16.gmra.mrb[52].mxu0 %vm16265_vm3, %v18165_v8 }
 0x650   : > { %14244 = vmatprep.mubr.msk.bf16.mxu0 %vm16265_vm3, %v17614_v18 }
 0x657   : > { %14245 = vmatmul.mubr.msk.bf16.gmra.mrb[56].mxu0 %vm16265_vm3, %v18166_v12 }
 0x658   : > { %14248 = vmatprep.mubr.msk.bf16.mxu0 %vm16265_vm3, %v17639_v40 }
 0x65f   : > { %14249 = vmatmul.mubr.msk.bf16.gmra.mrb[60].mxu0 %vm16265_vm3, %v17635_v34 }
 0x660   : > { %14268 = vmatprep.mubr.bf16.mxu0 %v17444_v47  ;;  %v15627_v47 = vld [vmem:[#allocation12 + $0x168] sm:$0xff]  }
 0x667   : > { %14269 = vmatmul.mubr.bf16.vlgmr.msra.gmra.mrb[32].mxu0 %v17442_v35 }
 0x668   : > { %14272 = vmatprep.mubr.bf16.mxu0 %v17470_v2  ;;  %14301 = vmatpush3.bf16.msra.mxu0 %v15622_v62  ;;  %v15638_v62 = vld [vmem:[#allocation12 + $0x1c0] sm:$0xff]  }
 0x669   : > { %14302 = vmatprep.subr.bf16.mxu0 %v15623_v16 }
 0x66c   : > { %14303 = vmatpush3.bf16.msra.mxu0 %v15623_v16  ;;  %v15639_v16 = vld [vmem:[#allocation12 + $0x1c8] sm:$0xff]  }
 0x66d   : > { %14304 = vmatprep.subr.bf16.mxu0 %v15624_v61 }
 0x66f   : > { %14273 = vmatmul.mubr.bf16.gmra.mrb[36].mxu0 %v17468_v29 }
 0x670   : > { %14276 = vmatprep.mubr.bf16.mxu0 %v17496_v25  ;;  %14305 = vmatpush3.bf16.msra.mxu0 %v15624_v61  ;;  %v15640_v61 = vld [vmem:[#allocation12 + $0x1d0] sm:$0xff]  }
 0x671   : > { %14306 = vmatprep.subr.bf16.mxu0 %v15625_v24 }
 0x674   : > { %14307 = vmatpush3.bf16.msra.mxu0 %v15625_v24  ;;  %v15641_v24 = vld [vmem:[#allocation12 + $0x1d8] sm:$0xff]  }
 0x675   : > { %14308 = vmatprep.subr.bf16.mxu0 %v15626_v20 }
 0x677   : > { %14277 = vmatmul.mubr.bf16.gmra.mrb[40].mxu0 %v17494_v52 }
 0x678   : > { %14280 = vmatprep.mubr.bf16.mxu0 %v17522_v41  ;;  %14309 = vmatpush3.bf16.msra.mxu0 %v15626_v20 }
 0x679   : > { %14310 = vmatprep.subr.bf16.mxu0 %v15627_v47 }
 0x67c   : > { %14311 = vmatpush3.bf16.msra.mxu0 %v15627_v47 }
 0x67d   : > { %14312 = vmatprep.subr.bf16.mxu0 %v15628_v43 }
 0x67f   : > { %14281 = vmatmul.mubr.bf16.gmra.mrb[44].mxu0 %v17520_v60 }
 0x680   : > { %14284 = vmatprep.mubr.bf16.mxu0 %v17550_v59  ;;  %14313 = vmatpush3.bf16.msra.mxu0 %v15628_v43 }
 0x681   : > { %14314 = vmatprep.subr.bf16.mxu0 %v15629_v21 }
 0x684   : > { %14315 = vmatpush3.bf16.msra.mxu0 %v15629_v21 }
 0x685   : > { %14348 = vmatprep.subr.bf16.mxu0 %v15630_v56 }
 0x687   : > { %14285 = vmatmul.mubr.bf16.gmra.mrb[48].mxu0 %v17548_v30 }
 0x688   : > { %14288 = vmatprep.mubr.bf16.mxu0 %v17577_v15 }
 0x68f   : > { %14289 = vmatmul.mubr.bf16.gmra.mrb[52].mxu0 %v17575_v37 }
 0x690   : > { %14292 = vmatprep.mubr.bf16.mxu0 %v17603_v28 }
 0x697   : > { %14293 = vmatmul.mubr.bf16.gmra.mrb[56].mxu0 %v17601_v54 }
 0x698   : > { %14296 = vmatprep.mubr.bf16.mxu0 %v17629_v57 }
 0x69f   : > { %14297 = vmatmul.mubr.bf16.gmra.mrb[60].mxu0 %v17627_v39 }
 0x6a0   : > { %14316 = vmatprep.mubr.msk.bf16.mxu0 %vm16465_vm5, %v17456_v5  ;;  %v15634_v5 = vld [vmem:[#allocation12 + $0x1a0] sm:$0xff]  }
 0x6a7   : > { %14317 = vmatmul.mubr.msk.bf16.vlgmr.msra.gmra.mrb[32].mxu0 %vm16465_vm5, %v17460_v26 }
 0x6a8   : > { %14320 = vmatprep.mubr.msk.bf16.mxu0 %vm16465_vm5, %v17483_v51  ;;  %14349 = vmatpush3.bf16.msra.mxu0 %v15630_v56 }
 0x6a9   : > { %14350 = vmatprep.subr.bf16.mxu0 %v15631_v0 }
 0x6ac   : > { %14351 = vmatpush3.bf16.msra.mxu0 %v15631_v0 }
 0x6ad   : > { %14352 = vmatprep.subr.bf16.mxu0 %v15632_v17 }
 0x6af   : > { %14321 = vmatmul.mubr.msk.bf16.gmra.mrb[36].mxu0 %vm16465_vm5, %v17486_v33 }
 0x6b0   : > { %14324 = vmatprep.mubr.msk.bf16.mxu0 %vm16465_vm5, %v17509_v53  ;;  %14353 = vmatpush3.bf16.msra.mxu0 %v15632_v17 }
 0x6b1   : > { %14354 = vmatprep.subr.bf16.mxu0 %v15633_v45 }
 0x6b4   : > { %14355 = vmatpush3.bf16.msra.mxu0 %v15633_v45 }
 0x6b5   : > { %14356 = vmatprep.subr.bf16.mxu0 %v15634_v5 }
 0x6b7   : > { %14325 = vmatmul.mubr.msk.bf16.gmra.mrb[40].mxu0 %vm16465_vm5, %v17512_v1 }
 0x6b8   : > { %14328 = vmatprep.mubr.msk.bf16.mxu0 %vm16465_vm5, %v17535_v4  ;;  %14357 = vmatpush3.bf16.msra.mxu0 %v15634_v5 }
 0x6b9   : > { %14358 = vmatprep.subr.bf16.mxu0 %v15635_v38 }
 0x6bc   : > { %14359 = vmatpush3.bf16.msra.mxu0 %v15635_v38 }
 0x6bd   : > { %14360 = vmatprep.subr.bf16.mxu0 %v15636_v11 }
 0x6bf   : > { %14329 = vmatmul.mubr.msk.bf16.gmra.mrb[44].mxu0 %vm16465_vm5, %v17538_v46 }
 0x6c0   : > { %14332 = vmatprep.mubr.msk.bf16.mxu0 %vm16465_vm5, %v17564_v63  ;;  %14361 = vmatpush3.bf16.msra.mxu0 %v15636_v11 }
 0x6c1   : > { %14362 = vmatprep.subr.bf16.mxu0 %v15637_v55 }
 0x6c4   : > { %14363 = vmatpush3.bf16.msra.mxu0 %v15637_v55 }
 0x6c5   : > { %14396 = vmatprep.subr.bf16.mxu0 %v15638_v62 }
 0x6c7   : > { %14333 = vmatmul.mubr.msk.bf16.gmra.mrb[48].mxu0 %vm16465_vm5, %v17567_v13 }
 0x6c8   : > { %14336 = vmatprep.mubr.msk.bf16.mxu0 %vm16465_vm5, %v17590_v22 }
 0x6cf   : > { %14337 = vmatmul.mubr.msk.bf16.gmra.mrb[52].mxu0 %vm16465_vm5, %v17593_v42 }
 0x6d0   : > { %14340 = vmatprep.mubr.msk.bf16.mxu0 %vm16465_vm5, %v17616_v31 }
 0x6d7   : > { %14341 = vmatmul.mubr.msk.bf16.gmra.mrb[56].mxu0 %vm16465_vm5, %v17619_v14 }
 0x6d8   : > { %14344 = vmatprep.mubr.msk.bf16.mxu0 %vm16465_vm5, %v17641_v6 }
 0x6df   : > { %14345 = vmatmul.mubr.msk.bf16.gmra.mrb[60].mxu0 %vm16465_vm5, %v17637_v27 }
 0x6e0   : > { %14364 = vmatprep.mubr.msk.bf16.mxu0 %vm16265_vm3, %v17452_v10  ;;  %v15642_v10 = vld [vmem:[#allocation12 + $0x1e0] sm:$0xff]  }
 0x6e7   : > { %14365 = vmatmul.mubr.msk.bf16.vlgmr.msra.gmra.mrb[32].mxu0 %vm16265_vm3, %v17481_v3  ;;  %v15644_v3 = vld [vmem:[#allocation12 + $0x1f0] sm:$0xff]  }
 0x6e8   : > { %14368 = vmatprep.mubr.msk.bf16.mxu0 %vm16265_vm3, %v17477_v44  ;;  %14397 = vmatpush3.bf16.msra.mxu0 %v15638_v62  ;;  %v15643_v44 = vld [vmem:[#allocation12 + $0x1e8] sm:$0xff]  }
 0x6e9   : > { %14398 = vmatprep.subr.bf16.mxu0 %v15639_v16 }
 0x6ec   : > { %14399 = vmatpush3.bf16.msra.mxu0 %v15639_v16 }
 0x6ed   : > { %14400 = vmatprep.subr.bf16.mxu0 %v15640_v61 }
 0x6ef   : > { %14369 = vmatmul.mubr.msk.bf16.gmra.mrb[36].mxu0 %vm16265_vm3, %v17507_v48  ;;  %v15646_v48 = vld [vmem:[#allocation12 + $0x200] sm:$0xff]  }
 0x6f0   : > { %14372 = vmatprep.mubr.msk.bf16.mxu0 %vm16265_vm3, %v17503_v49  ;;  %14401 = vmatpush3.bf16.msra.mxu0 %v15640_v61  ;;  %v15645_v49 = vld [vmem:[#allocation12 + $0x1f8] sm:$0xff]  }
 0x6f1   : > { %14402 = vmatprep.subr.bf16.mxu0 %v15641_v24 }
 0x6f4   : > { %14403 = vmatpush3.bf16.msra.mxu0 %v15641_v24 }
 0x6f5   : > { %14404 = vmatprep.subr.bf16.mxu0 %v15642_v10 }
 0x6f7   : > { %14373 = vmatmul.mubr.msk.bf16.gmra.mrb[40].mxu0 %vm16265_vm3, %v17533_v36  ;;  %v15648_v36 = vld [vmem:[#allocation12 + $0x210] sm:$0xff]  }
 0x6f8   : > { %14376 = vmatprep.mubr.msk.bf16.mxu0 %vm16265_vm3, %v17529_v50  ;;  %14405 = vmatpush3.bf16.msra.mxu0 %v15642_v10  ;;  %v15647_v50 = vld [vmem:[#allocation12 + $0x208] sm:$0xff]  }
 0x6f9   : > { %14406 = vmatprep.subr.bf16.mxu0 %v15643_v44 }
 0x6fc   : > { %14407 = vmatpush3.bf16.msra.mxu0 %v15643_v44 }
 0x6fd   : > { %14408 = vmatprep.subr.bf16.mxu0 %v15644_v3 }
 0x6ff   : > { %14377 = vmatmul.mubr.msk.bf16.gmra.mrb[44].mxu0 %vm16265_vm3, %v17561_v19 }
 0x700   : > { %14380 = vmatprep.mubr.msk.bf16.mxu0 %vm16265_vm3, %v17557_v58  ;;  %14409 = vmatpush3.bf16.msra.mxu0 %v15644_v3  ;;  %v15649_v58 = vld [vmem:[#allocation12 + $0x218] sm:$0xff]  }
 0x701   : > { %14410 = vmatprep.subr.bf16.mxu0 %v15645_v49 }
 0x704   : > { %14411 = vmatpush3.bf16.msra.mxu0 %v15645_v49 }
 0x705   : > { %14444 = vmatprep.subr.bf16.mxu0 %v15646_v48 }
 0x707   : > { %14381 = vmatmul.mubr.msk.bf16.gmra.mrb[48].mxu0 %vm16265_vm3, %v18164_v7 }
 0x708   : > { %14384 = vmatprep.mubr.msk.bf16.mxu0 %vm16265_vm3, %v18165_v8 }
 0x70f   : > { %14385 = vmatmul.mubr.msk.bf16.gmra.mrb[52].mxu0 %vm16265_vm3, %v17614_v18  ;;  %v10907_v18 = vld [vmem:[#allocation14 + $0x68] sm:$0xff] }
 0x710   : > { %14388 = vmatprep.mubr.msk.bf16.mxu0 %vm16265_vm3, %v18166_v12 }
 0x717   : > { %14389 = vmatmul.mubr.msk.bf16.gmra.mrb[56].mxu0 %vm16265_vm3, %v17639_v40  ;;  %v17932_v40 = vld [vmem:[%s18076_s6] ss:$0 sm:$0xff] }
 0x718   : > { %14392 = vmatprep.mubr.msk.bf16.mxu0 %vm16265_vm3, %v17635_v34 }
 0x71f   : > { %14393 = vmatmul.mubr.bf16.gmra.mrb[60].mxu0 %v18143_v9 }
 0x720   : > { %14412 = vmatprep.mubr.bf16.mxu0 %v17442_v35  ;;  %v15651_v35 = vld [vmem:[#allocation12 + $0x228] sm:$0xff]  }
 0x727   : > { %14413 = vmatmul.mubr.bf16.vlgmr.msra.gmra.mrb[32].mxu0 %v17470_v2  ;;  %v15653_v2 = vld [vmem:[#allocation12 + $0x238] sm:$0xff]  }
 0x728   : > { %14416 = vmatprep.mubr.bf16.mxu0 %v17468_v29  ;;  %14445 = vmatpush3.bf16.msra.mxu0 %v15646_v48  ;;  %v15652_v29 = vld [vmem:[#allocation12 + $0x230] sm:$0xff]  }
 0x729   : > { %14446 = vmatprep.subr.bf16.mxu0 %v15647_v50 }
 0x72c   : > { %14447 = vmatpush3.bf16.msra.mxu0 %v15647_v50 }
 0x72d   : > { %14448 = vmatprep.subr.bf16.mxu0 %v15648_v36 }
 0x72f   : > { %14417 = vmatmul.mubr.bf16.gmra.mrb[36].mxu0 %v17496_v25  ;;  %v10896_v25 = vld [vmem:[#allocation14 + $0x10] sm:$0xff] }
 0x730   : > { %14420 = vmatprep.mubr.bf16.mxu0 %v17494_v52  ;;  %14449 = vmatpush3.bf16.msra.mxu0 %v15648_v36 }
 0x731   : > { %14450 = vmatprep.subr.bf16.mxu0 %v15649_v58 }
 0x734   : > { %14451 = vmatpush3.bf16.msra.mxu0 %v15649_v58 }
 0x735   : > { %14452 = vmatprep.subr.bf16.mxu0 %v15650_v32 }
 0x737   : > { %14421 = vmatmul.mubr.bf16.gmra.mrb[40].mxu0 %v17522_v41  ;;  %v10899_v41 = vld [vmem:[#allocation14 + $0x28] sm:$0xff] }
 0x738   : > { %14424 = vmatprep.mubr.bf16.mxu0 %v17520_v60  ;;  %14453 = vmatpush3.bf16.msra.mxu0 %v15650_v32  ;;  %v10898_v60 = vld [vmem:[#allocation14 + $0x20] sm:$0xff] }
 0x739   : > { %14454 = vmatprep.subr.bf16.mxu0 %v15651_v35 }
 0x73c   : > { %14455 = vmatpush3.bf16.msra.mxu0 %v15651_v35 }
 0x73d   : > { %14456 = vmatprep.subr.bf16.mxu0 %v15652_v29 }
 0x73f   : > { %14425 = vmatmul.mubr.bf16.gmra.mrb[44].mxu0 %v17550_v59  ;;  %v10903_v59 = vld [vmem:[#allocation14 + $0x48] sm:$0xff] }
 0x740   : > { %14428 = vmatprep.mubr.bf16.mxu0 %v17548_v30  ;;  %14457 = vmatpush3.bf16.msra.mxu0 %v15652_v29  ;;  %v10902_v30 = vld [vmem:[#allocation14 + $0x40] sm:$0xff] }
 0x741   : > { %14458 = vmatprep.subr.bf16.mxu0 %v15653_v2  ;;  %v14540_v19 = vpack.c.bf16 %v10903_v59, %v10902_v30 }
 0x744   : > { %14459 = vmatpush3.bf16.msra.mxu0 %v15653_v2 }
 0x747   : > { %14429 = vmatmul.mubr.bf16.gmra.mrb[48].mxu0 %v17577_v15  ;;  %v10906_v15 = vld [vmem:[#allocation14 + $0x60] sm:$0xff] }
 0x748   : > { %14432 = vmatprep.mubr.bf16.mxu0 %v17575_v37 }
 0x74f   : > { %14433 = vmatmul.mubr.bf16.gmra.mrb[52].mxu0 %v17603_v28  ;;  %v15929_v28 = vmov 0.0  }
 0x750   : > { %14436 = vmatprep.mubr.bf16.mxu0 %v17601_v54  ;;  %14524 = vmatprep.mubr.msk.f32.mxu1 %vm15928_vm6, %v15929_v28 }
 0x757   : > { %14437 = vmatmul.mubr.bf16.gmra.mrb[56].mxu0 %v17629_v57 }
 0x758   : > { %14440 = vmatprep.mubr.bf16.mxu0 %v17627_v39 }
 0x75f   : > { %14441 = vmatmul.mubr.bf16.gmra.mrb[60].mxu0 %v18143_v9 }
 0x760   : > { %14460 = vmatprep.mubr.msk.bf16.mxu0 %vm16465_vm5, %v17460_v26  ;;  %v10894_v26 = vld [vmem:[#allocation14] sm:$0xff] }
 0x767   : > { %14461 = vmatmul.mubr.msk.bf16.vlgmr.msra.gmra.mrb[32].mxu0 %vm16465_vm5, %v17483_v51  ;;  %v10895_v51 = vld [vmem:[#allocation14 + $0x8] sm:$0xff] }
 0x768   : > { %14464 = vmatprep.mubr.msk.bf16.mxu0 %vm16465_vm5, %v17486_v33  ;;  %v15927_v33 = vmov 0.0|0.0   ;;  %v14528_v52 = vpack.c.bf16 %v10895_v51, %v10894_v26 }
 0x769   : > { %14527 = vmatprep.subr.bf16.mxu1 %v15927_v33 }
 0x76a   : > { %14529 = vmatpush3.bf16.msra.mxu1 %v14528_v52 }
 0x76b   : > { %14530 = vmatprep.subr.bf16.mxu1 %v15927_v33 }
 0x76f   : > { %14465 = vmatmul.mubr.msk.bf16.gmra.mrb[36].mxu0 %vm16465_vm5, %v17509_v53  ;;  %v10897_v53 = vld [vmem:[#allocation14 + $0x18] sm:$0xff] }
 0x770   : > { %14468 = vmatprep.mubr.msk.bf16.mxu0 %vm16465_vm5, %v17512_v1  ;;  %v14531_v1 = vpack.c.bf16 %v10897_v53, %v10896_v25 }
 0x772   : > { %14532 = vmatpush3.bf16.msra.mxu1 %v14531_v1 }
 0x773   : > { %14533 = vmatprep.subr.bf16.mxu1 %v15927_v33 }
 0x777   : > { %14469 = vmatmul.mubr.msk.bf16.gmra.mrb[40].mxu0 %vm16465_vm5, %v17535_v4  ;;  %v14534_v4 = vpack.c.bf16 %v10899_v41, %v10898_v60 }
 0x778   : > { %14472 = vmatprep.mubr.msk.bf16.mxu0 %vm16465_vm5, %v17538_v46  ;;  %v10901_v46 = vld [vmem:[#allocation14 + $0x38] sm:$0xff] }
 0x779   : > { %14535 = vmatpush3.bf16.msra.mxu1 %v14534_v4 }
 0x77a   : > { %14536 = vmatprep.subr.bf16.mxu1 %v15927_v33 }
 0x77f   : > { %14473 = vmatmul.mubr.msk.bf16.gmra.mrb[44].mxu0 %vm16465_vm5, %v17564_v63  ;;  %v10904_v63 = vld [vmem:[#allocation14 + $0x50] sm:$0xff] }
 0x780   : > { %14476 = vmatprep.mubr.msk.bf16.mxu0 %vm16465_vm5, %v17567_v13  ;;  %v10905_v13 = vld [vmem:[#allocation14 + $0x58] sm:$0xff] }
 0x781   : > { %v14543_v37 = vpack.c.bf16 %v10905_v13, %v10904_v63 }
 0x787   : > { %14477 = vmatmul.mubr.msk.bf16.gmra.mrb[48].mxu0 %vm16465_vm5, %v17590_v22  ;;  %v10908_v22 = vld [vmem:[#allocation14 + $0x70] sm:$0xff] }
 0x788   : > { %14480 = vmatprep.mubr.msk.bf16.mxu0 %vm16465_vm5, %v17593_v42  ;;  %v10909_v42 = vld [vmem:[#allocation14 + $0x78] sm:$0xff] }
 0x789   : > { %v14549_v54 = vpack.c.bf16 %v10909_v42, %v10908_v22 }
 0x78f   : > { %14481 = vmatmul.mubr.msk.bf16.gmra.mrb[52].mxu0 %vm16465_vm5, %v17616_v31 }
 0x790   : > { %14484 = vmatprep.mubr.msk.bf16.mxu0 %vm16465_vm5, %v17619_v14  ;;  %v14546_v14 = vpack.c.bf16 %v10907_v18, %v10906_v15 }
 0x797   : > { %14485 = vmatmul.mubr.msk.bf16.gmra.mrb[56].mxu0 %vm16465_vm5, %v17641_v6 }
 0x798   : > { %14488 = vmatprep.mubr.msk.bf16.mxu0 %vm16465_vm5, %v17637_v27 }
 0x79f   : > { %14489 = vmatmul.mubr.bf16.gmra.mrb[60].mxu0 %v18143_v9  ;;  %v14537_v9 = vpack.c.bf16 %v10901_v46, %v10900_v23 }
 0x7a1   : > { %14538 = vmatpush3.bf16.msra.mxu1 %v14537_v9 }
 0x7a2   : > { %14539 = vmatprep.subr.bf16.mxu1 %v15927_v33 }
 0x7a5   : > { %14541 = vmatpush3.bf16.msra.mxu1 %v14540_v19 }
 0x7a6   : > { %14542 = vmatprep.subr.bf16.mxu1 %v15927_v33 }
 0x7a9   : > { %14544 = vmatpush3.bf16.msra.mxu1 %v14543_v37 }
 0x7aa   : > { %14545 = vmatprep.subr.bf16.mxu1 %v15927_v33 }
 0x7ad   : > { %14547 = vmatpush3.bf16.msra.mxu1 %v14546_v14 }
 0x7ae   : > { %14548 = vmatprep.subr.bf16.mxu1 %v15927_v33 }
 0x7b1   : > { %14550 = vmatpush3.bf16.msra.mxu1 %v14549_v54 }
 0x83a   : > { %v14462_v31 = vpop.f32.mrb[32].mxu0 }
 0x83b   : > { %v10634_v39 = vadd.f32 %v14462_v31, %v17932_v40  ;;  %v10370_v57 = vpop.f32.mrb[33].mxu0 }
 0x83c   : > { %v10632_v34 = vadd.f32 %v17932_v40, %v10370_v57  ;;  %v14463_v27 = vpop.f32.mrb[34].mxu0 }
 0x83d   : > { %v10635_v6 = vadd.f32 %v14463_v27, %v17932_v40  ;;  %v10373_v7 = vpop.f32.mrb[35].mxu0  ;;  %v10666_v12 = vmax.f32 %v10634_v39, 0.0 }
 0x83e   : > { %v10633_v8 = vadd.f32 %v17932_v40, %v10373_v7  ;;  %v10664_v47 = vmax.f32 %v10632_v34, 0.0 }
 0x83f   : > { %v10667_v20 = vmax.f32 %v10635_v6, 0.0 }
 0x840   : > { %v10665_v43 = vmax.f32 %v10633_v8, 0.0 }
 0x841   : > { %v11478_v21 = vpack.c.bf16 %v10667_v20, %v10666_v12 }
 0x842   : > { %v11473_v56 = vpack.c.bf16 %v10665_v43, %v10664_v47  ;;  %v10856_v0 = vadd.f32 %v10665_v43, %v10664_v47  ;;  %v14466_v17 = vpop.f32.mrb[36].mxu0 }
 0x843   : > { %11550 = vst [vmem:[%s17939_s9 + $0x8] sm:$0xff] %v11478_v21   ;;  %v10638_v45 = vadd.f32 %v14466_v17, %v17932_v40  ;;  %v10386_v5 = vpop.f32.mrb[37].mxu0 }
 0x844   : > { %11474 = vst [vmem:[%s17939_s9] sm:$0xff] %v11473_v56   ;;  %v10857_v38 = vadd.f32 %v10856_v0, %v10666_v12  ;;  %v10636_v11 = vadd.f32 %v17932_v40, %v10386_v5  ;;  %v14467_v55 = vpop.f32.mrb[38].mxu0 }
 0x845   : > { %v10639_v62 = vadd.f32 %v14467_v55, %v17932_v40  ;;  %v10389_v16 = vpop.f32.mrb[39].mxu0  ;;  %v10670_v44 = vmax.f32 %v10638_v45, 0.0 }
 0x846   : > { %v10668_v61 = vmax.f32 %v10636_v11, 0.0  ;;  %v10858_v24 = vadd.f32 %v10857_v38, %v10667_v20  ;;  %v10637_v10 = vadd.f32 %v17932_v40, %v10389_v16 }
 0x847   : > { %v10671_v3 = vmax.f32 %v10639_v62, 0.0 }
 0x848   : > { %v10859_v49 = vadd.f32 %v10858_v24, %v10668_v61  ;;  %v10669_v48 = vmax.f32 %v10637_v10, 0.0 }
 0x849   : > { %v11488_v50 = vpack.c.bf16 %v10671_v3, %v10670_v44 }
 0x84a   : > { %v11483_v36 = vpack.c.bf16 %v10669_v48, %v10668_v61  ;;  %v10860_v58 = vadd.f32 %v10859_v49, %v10669_v48  ;;  %v14470_v32 = vpop.f32.mrb[40].mxu0 }
 0x84b   : > { %11552 = vst [vmem:[%s17939_s9 + $0x18] sm:$0xff] %v11488_v50   ;;  %v10642_v35 = vadd.f32 %v14470_v32, %v17932_v40  ;;  %v10402_v29 = vpop.f32.mrb[41].mxu0 }
 0x84c   : > { %11551 = vst [vmem:[%s17939_s9 + $0x10] sm:$0xff] %v11483_v36   ;;  %v10861_v2 = vadd.f32 %v10860_v58, %v10670_v44  ;;  %v10640_v26 = vadd.f32 %v17932_v40, %v10402_v29  ;;  %v14471_v51 = vpop.f32.mrb[42].mxu0 }
 0x84d   : > { %v10643_v33 = vadd.f32 %v14471_v51, %v17932_v40  ;;  %v10405_v52 = vpop.f32.mrb[43].mxu0  ;;  %v10674_v60 = vmax.f32 %v10642_v35, 0.0 }
 0x84e   : > { %v10672_v25 = vmax.f32 %v10640_v26, 0.0  ;;  %v10862_v53 = vadd.f32 %v10861_v2, %v10671_v3  ;;  %v10641_v1 = vadd.f32 %v17932_v40, %v10405_v52 }
 0x84f   : > { %v10675_v41 = vmax.f32 %v10643_v33, 0.0 }
 0x850   : > { %v10863_v4 = vadd.f32 %v10862_v53, %v10672_v25  ;;  %v10673_v23 = vmax.f32 %v10641_v1, 0.0 }
 0x851   : > { %v11498_v46 = vpack.c.bf16 %v10675_v41, %v10674_v60 }
 0x852   : > { %v11493_v9 = vpack.c.bf16 %v10673_v23, %v10672_v25  ;;  %v10864_v30 = vadd.f32 %v10863_v4, %v10673_v23  ;;  %v14474_v59 = vpop.f32.mrb[44].mxu0 }
 0x853   : > { %11554 = vst [vmem:[%s17939_s9 + $0x28] sm:$0xff] %v11498_v46   ;;  %v10646_v19 = vadd.f32 %v14474_v59, %v17932_v40  ;;  %v10418_v63 = vpop.f32.mrb[45].mxu0 }
 0x854   : > { %11553 = vst [vmem:[%s17939_s9 + $0x20] sm:$0xff] %v11493_v9   ;;  %v10865_v13 = vadd.f32 %v10864_v30, %v10674_v60  ;;  %v10644_v37 = vadd.f32 %v17932_v40, %v10418_v63  ;;  %v14475_v15 = vpop.f32.mrb[46].mxu0 }
 0x855   : > { %v10647_v18 = vadd.f32 %v14475_v15, %v17932_v40  ;;  %v10421_v14 = vpop.f32.mrb[47].mxu0  ;;  %v10678_v28 = vmax.f32 %v10646_v19, 0.0 }
 0x856   : > { %v10676_v22 = vmax.f32 %v10644_v37, 0.0  ;;  %v10866_v42 = vadd.f32 %v10865_v13, %v10675_v41  ;;  %v10645_v54 = vadd.f32 %v17932_v40, %v10421_v14 }
 0x857   : > { %v10679_v31 = vmax.f32 %v10647_v18, 0.0 }
 0x858   : > { %v10867_v39 = vadd.f32 %v10866_v42, %v10676_v22  ;;  %v10677_v57 = vmax.f32 %v10645_v54, 0.0 }
 0x859   : > { %v11508_v34 = vpack.c.bf16 %v10679_v31, %v10678_v28 }
 0x85a   : > { %v11503_v27 = vpack.c.bf16 %v10677_v57, %v10676_v22  ;;  %v10868_v6 = vadd.f32 %v10867_v39, %v10677_v57  ;;  %v14478_v7 = vpop.f32.mrb[48].mxu0 }
 0x85b   : > { %11556 = vst [vmem:[%s17939_s9 + $0x38] sm:$0xff] %v11508_v34   ;;  %v10650_v8 = vadd.f32 %v14478_v7, %v17932_v40  ;;  %v10434_v12 = vpop.f32.mrb[49].mxu0 }
 0x85c   : > { %11555 = vst [vmem:[%s17939_s9 + $0x30] sm:$0xff] %v11503_v27   ;;  %v10869_v20 = vadd.f32 %v10868_v6, %v10678_v28  ;;  %v10648_v47 = vadd.f32 %v17932_v40, %v10434_v12  ;;  %v14479_v43 = vpop.f32.mrb[50].mxu0 }
 0x85d   : > { %v10651_v21 = vadd.f32 %v14479_v43, %v17932_v40  ;;  %v10437_v56 = vpop.f32.mrb[51].mxu0  ;;  %v10682_v5 = vmax.f32 %v10650_v8, 0.0 }
 0x85e   : > { %v10680_v0 = vmax.f32 %v10648_v47, 0.0  ;;  %v10870_v17 = vadd.f32 %v10869_v20, %v10679_v31  ;;  %v10649_v45 = vadd.f32 %v17932_v40, %v10437_v56 }
 0x85f   : > { %v10683_v38 = vmax.f32 %v10651_v21, 0.0 }
 0x860   : > { %v10871_v11 = vadd.f32 %v10870_v17, %v10680_v0  ;;  %v10681_v55 = vmax.f32 %v10649_v45, 0.0 }
 0x861   : > { %v11518_v62 = vpack.c.bf16 %v10683_v38, %v10682_v5 }
 0x862   : > { %v11513_v16 = vpack.c.bf16 %v10681_v55, %v10680_v0  ;;  %v10872_v61 = vadd.f32 %v10871_v11, %v10681_v55  ;;  %v14482_v24 = vpop.f32.mrb[52].mxu0 }
 0x863   : > { %11558 = vst [vmem:[%s17939_s9 + $0x48] sm:$0xff] %v11518_v62   ;;  %v10654_v10 = vadd.f32 %v14482_v24, %v17932_v40  ;;  %v10450_v44 = vpop.f32.mrb[53].mxu0 }
 0x864   : > { %11557 = vst [vmem:[%s17939_s9 + $0x40] sm:$0xff] %v11513_v16   ;;  %v10873_v3 = vadd.f32 %v10872_v61, %v10682_v5  ;;  %v10652_v49 = vadd.f32 %v17932_v40, %v10450_v44  ;;  %v14483_v48 = vpop.f32.mrb[54].mxu0 }
 0x865   : > { %v10655_v50 = vadd.f32 %v14483_v48, %v17932_v40  ;;  %v10453_v36 = vpop.f32.mrb[55].mxu0  ;;  %v10686_v29 = vmax.f32 %v10654_v10, 0.0 }
 0x866   : > { %v10684_v58 = vmax.f32 %v10652_v49, 0.0  ;;  %v10874_v32 = vadd.f32 %v10873_v3, %v10683_v38  ;;  %v10653_v35 = vadd.f32 %v17932_v40, %v10453_v36 }
 0x867   : > { %v10687_v2 = vmax.f32 %v10655_v50, 0.0 }
 0x868   : > { %v10875_v26 = vadd.f32 %v10874_v32, %v10684_v58  ;;  %v10685_v51 = vmax.f32 %v10653_v35, 0.0 }
 0x869   : > { %v11528_v33 = vpack.c.bf16 %v10687_v2, %v10686_v29 }
 0x86a   : > { %v11523_v52 = vpack.c.bf16 %v10685_v51, %v10684_v58  ;;  %v10876_v25 = vadd.f32 %v10875_v26, %v10685_v51  ;;  %v14486_v53 = vpop.f32.mrb[56].mxu0 }
 0x86b   : > { %11560 = vst [vmem:[%s17939_s9 + $0x58] sm:$0xff] %v11528_v33   ;;  %v10658_v1 = vadd.f32 %v14486_v53, %v17932_v40  ;;  %v10466_v60 = vpop.f32.mrb[57].mxu0 }
 0x86c   : > { %11559 = vst [vmem:[%s17939_s9 + $0x50] sm:$0xff] %v11523_v52   ;;  %v10877_v41 = vadd.f32 %v10876_v25, %v10686_v29  ;;  %v10656_v4 = vadd.f32 %v17932_v40, %v10466_v60  ;;  %v14487_v23 = vpop.f32.mrb[58].mxu0 }
 0x86d   : > { %v10659_v46 = vadd.f32 %v14487_v23, %v17932_v40  ;;  %v10469_v9 = vpop.f32.mrb[59].mxu0  ;;  %v10690_v63 = vmax.f32 %v10658_v1, 0.0 }
 0x86e   : > { %v10688_v30 = vmax.f32 %v10656_v4, 0.0  ;;  %v10878_v59 = vadd.f32 %v10877_v41, %v10687_v2  ;;  %v10657_v19 = vadd.f32 %v17932_v40, %v10469_v9 }
 0x86f   : > { %v10691_v13 = vmax.f32 %v10659_v46, 0.0 }
 0x870   : > { %v10879_v37 = vadd.f32 %v10878_v59, %v10688_v30  ;;  %v10689_v15 = vmax.f32 %v10657_v19, 0.0 }
 0x871   : > { %v11538_v18 = vpack.c.bf16 %v10691_v13, %v10690_v63 }
 0x872   : > { %v11533_v14 = vpack.c.bf16 %v10689_v15, %v10688_v30  ;;  %v10880_v22 = vadd.f32 %v10879_v37, %v10689_v15  ;;  %v14490_v42 = vpop.f32.mrb[60].mxu0 }
 0x873   : > { %11562 = vst [vmem:[%s17939_s9 + $0x68] sm:$0xff] %v11538_v18   ;;  %v10662_v54 = vadd.f32 %v14490_v42, %v17932_v40  ;;  %v10482_v28 = vpop.f32.mrb[61].mxu0 }
 0x874   : > { %11561 = vst [vmem:[%s17939_s9 + $0x60] sm:$0xff] %v11533_v14   ;;  %v10881_v31 = vadd.f32 %v10880_v22, %v10690_v63  ;;  %v10660_v39 = vadd.f32 %v17932_v40, %v10482_v28  ;;  %v14491_v57 = vpop.f32.mrb[62].mxu0 }
 0x875   : > { %v10663_v34 = vadd.f32 %v14491_v57, %v17932_v40  ;;  %v10485_v27 = vpop.f32.mrb[63].mxu0  ;;  %v10694_v12 = vmax.f32 %v10662_v54, 0.0 }
 0x876   : > { %v10692_v6 = vmax.f32 %v10660_v39, 0.0  ;;  %v10882_v7 = vadd.f32 %v10881_v31, %v10691_v13  ;;  %v10661_v8 = vadd.f32 %v17932_v40, %v10485_v27 }
 0x877   : > { %v10695_v20 = vmax.f32 %v10663_v34, 0.0 }
 0x878   : > { %v10883_v47 = vadd.f32 %v10882_v7, %v10692_v6  ;;  %v10693_v43 = vmax.f32 %v10661_v8, 0.0 }
 0x879   : > { %v11548_v21 = vpack.c.bf16 %v10695_v20, %v10694_v12 }
 0x87a   : > { %v11543_v56 = vpack.c.bf16 %v10693_v43, %v10692_v6  ;;  %v10884_v0 = vadd.f32 %v10883_v47, %v10693_v43 }
 0x87b   : > { %11564 = vst [vmem:[%s17939_s9 + $0x78] sm:$0xff] %v11548_v21  }
 0x87c   : > { %11563 = vst [vmem:[%s17939_s9 + $0x70] sm:$0xff] %v11543_v56   ;;  %v10885_v17 = vadd.f32 %v10884_v0, %v10694_v12 }
 0x87e   : > { %v10886_v45 = vadd.f32 %v10885_v17, %v10695_v20 }
 0x880   : > { %v10887_v5 = vrot.slane %v10886_v45, 4 }
 0x882   : > { %v10888_v38 = vadd.f32 %v10887_v5, %v10886_v45 }
 0x884   : > { %v10889_v11 = vrot.slane %v10888_v38, 2 }
 0x886   : > { %v10890_v55 = vadd.f32 %v10889_v11, %v10888_v38 }
 0x888   : > { %v10891_v40 = vrot.slane %v10890_v55, 1 }
 0x88a   : > { %v10892_v62 = vadd.f32 %v10891_v40, %v10890_v55 }
 0x88c   : > { %v10893_v16 = vmul.f32 0.00390625, %v10892_v62 }
 0x88e   : > { %14525 = vmatmul.mubr.f32.vlgmr.msra.gmra.mrb[64].mxu1 %v10893_v16 }
 0x88f   : > { %15821 = shalt.err (!%p15818_p13)
}
 0x890   : > { %s15822_s23 = scalar_lea.hbm %s17990_s28, 2048  ;;  %s15826_s9 = scalar_lea.hbm %s18080_s10, 4096 }
 0x891   : > { %p15823_p9 = scmp.ne.s32.totalorder %s17990_s28, %s15822_s23  ;;  %p15827_p4 = scmp.lt.u32.totalorder %s17990_s28, %s18080_s10 }
 0x892   : > { %p15828_p8 = scmp.lt.u32.totalorder %s15826_s9, %s15822_s23  ;;  %p15830_p10 = scmp.lt.u32.totalorder %s15822_s23, %s17990_s28 }
 0x893   : > { %p15824_p0 = pnand %p15823_p9, %p16163_p3 }
 0x894   : > { %p15829_p6 = por %p15828_p8, %p15827_p4 }
 0x895   : > { %p15825_p11 = pneg %p15824_p0 }
 0x896   : > { %p15831_p5 = por %p15830_p10, %p15829_p6 }
 0x898   : > { %p15832_p7 = pnand %p15831_p5, %p15825_p11 }
 0x89a   : > { %15835 = shalt.err (!%p15832_p7)
}
 0x89b   : > { %s15931_s27 = smov 64   ;;  %s15932_s19 = smov 4  }
 0x89c   : > { %15354 = dma.vmem_to_hbm [thread:$0]  (%p16163_p3), %s17992_s13, 2048, %s17990_s28, %s10997_s18, %s15931_s27, %s15931_s27, %s15932_s19  }
 0x89d   : > { %s18167_s22 = sld [smem:[#allocation32_spill]]  ;;  %s11431_s23 = sshll.u32 %s16010_s17, 4 }
 0x89e   : > { %s438_s11 = scalar_lea.vmem [#allocation15], %s16215_s20  ;;  %s18168_s18 = sld [smem:[#allocation33_spill]] }
 0x89f   : > { %s11010_s26 = sshll.u32 %s438_s11, 4  ;;  %s10993_s25 = scalar_lea.sflag [#allocation8], %s16215_s20  ;;  %s18028_s26 = int_to_ptr.vmem [resolvable:$true] %s11010_s26 }
 0x8a0   : > { %s15836_s29 = scalar_lea.vmem %s18028_s26, 16  ;;  %s15933_s17 = smov [#allocation15]  }
 0x8a1   : > { %p15837_p12 = scmp.ne.s32.totalorder %s18028_s26, %s15836_s29  ;;  %s15840_s27 = sshll.u32 %s15933_s17, 4  ;;  %s15841_s27 = int_to_ptr.vmem [resolvable:$false] %s15840_s27 }
 0x8a2   : > { %s15842_s19 = scalar_lea.vmem %s15841_s27, 32  ;;  %p15843_p13 = scmp.lt.s32.totalorder %s18028_s26, %s15841_s27 }
 0x8a3   : > { %v10910_v61 = vld [vmem:[%s18167_s22] sm:$0x1]  ;;  %p15838_p1 = pnand %p15837_p12, %p16163_p3  ;;  %p15844_p9 = scmp.lt.s32.totalorder %s15842_s19, %s15836_s29 }
 0x8a4   : > { %s18026_s9 = scalar_lea.hbm %s18168_s18, %s11431_s23 }
 0x8a5   : > { %p15839_p2 = pneg %p15838_p1  ;;  %p15845_p0 = por %p15844_p9, %p15843_p13 }
 0x8a7   : > { %p15846_p11 = pnand %p15845_p0, %p15839_p2 }
 0x961   : > { %v10977_v24 = vpop.f32.mrb[64].mxu1 }
 0x962   : > { %v10978_v10 = vadd.f32 %v10977_v24, %v10910_v61  ;;  %v14526_v44 = vpop.f32.mrb[65].mxu1 }
 0x964   : > { %v10981_v3 = vand.u32 2147483647, %v10978_v10  ;;  %vm10985_vm7 = vcmp.ge.f32.partialorder %v10978_v10, 0.0 }
 0x966   : > { %v10982_v49 = vsub.f32 0.0, %v10981_v3 }
 0x968   : > { %v10983_v48 = vmul.f32 1.442695, %v10982_v49 }
 0x96a   : > { %15654 = vpow2.f32 %v10983_v48 }
 0x974   : > { %v15655_v50 = vpop.eup %15654 }
 0x975   : > { %v10986_v36 = vadd.f32 1.0, %v15655_v50 }
 0x977   : > { %15656 = vrcp.f32 %v10986_v36 }
 0x981   : > { %v15657_v58 = vpop.eup %15656 }
 0x982   : > { %v10989_v32 = vmul.f32 %v15657_v58, %v15655_v50 }
 0x984   : > { %v10990_v35 = vsel %vm10985_vm7, %v15657_v58, %v10989_v32 }
 0x985   : > { %10991 = vst [vmem:[%s438_s11] sm:$0x1] %v10990_v35 }
 0x986   : > { %15849 = shalt.err (!%p15846_p11)
}
 0x987   : > { %s15850_s20 = scalar_lea.hbm %s18026_s9, 16  ;;  %s15854_s22 = scalar_lea.hbm %s18168_s18, 32 }
 0x988   : > { %p15851_p4 = scmp.ne.s32.totalorder %s18026_s9, %s15850_s20  ;;  %p15855_p10 = scmp.lt.u32.totalorder %s18026_s9, %s18168_s18 }
 0x989   : > { %p15856_p5 = scmp.lt.u32.totalorder %s15854_s22, %s15850_s20  ;;  %p15858_p12 = scmp.lt.u32.totalorder %s15850_s20, %s18026_s9 }
 0x98a   : > { %p15852_p8 = pnand %p15851_p4, %p16163_p3 }
 0x98b   : > { %p15857_p7 = por %p15856_p5, %p15855_p10 }
 0x98c   : > { %p15853_p6 = pneg %p15852_p8 }
 0x98d   : > { %p15859_p1 = por %p15858_p12, %p15857_p7 }
 0x98f   : > { %p15860_p2 = pnand %p15859_p1, %p15853_p6 }
 0x991   : > { %15863 = shalt.err (!%p15860_p2)
}
 0x992   : > { %15353 = dma.vmem_to_hbm [thread:$0]  (%p16163_p3), %s18028_s26, 16, %s18026_s9, %s10993_s25  }
 0x993 PF: > { %s18169_s13 = sld [smem:[#allocation23_spill]]  ;;  %s18170_s28 = sld [smem:[#allocation24_spill]] }
 0x994   : > { %p18172_p9 = scmp.ge.s32.totalorder %s15914_s16, 2 }
 0x999   : > { %s11038_s29 = sand.u32 1, %s18169_s13   ;;  %p18171_p13 = scmp.ne.s32.totalorder %s18170_s28, 0 }
 0x99a   : > { %s11039_s17 = scalar_lea.sflag [#allocation8], %s11038_s29 }
 0x99b   : > { %p15375_p0 = pnand %p18172_p9, %p18171_p13 }
 0x99d   : > { %15893 = dma.done.wait (!%p15375_p0), %s11039_s17, 16  }
 0x99e   : > { %15895 = vsyncadd (!%p15375_p0), %s11039_s17, 4294967280  ;;  %s11047_s27 = scalar_lea.sflag [#allocation17], %s11038_s29 }
 0x99f   : > { %15897 = dma.done.wait (!%p15375_p0), %s11047_s27, 2048  }
 0x9a0   : > { %15899 = vsyncadd (!%p15375_p0), %s11047_s27, 4294965248  ;;  %p29_p3 = scmp.ge.s32.totalorder %s16150_s8, 4   ;;  %s18173_s13 = smov %s15906_s14 }
 0x9a1   : > { %s18174_s14 = smov %s15910_s15  ;;  %s18175_s15 = smov %s16159_s12 }
 0x9a2   : > { %s18176_s16 = smov %s16150_s8  ;;  %31 = sbr.rel (!%p29_p3) target bundleno = 12 (0xc), region = 167 }
 0x9a9   :  { %11052 = vsyncpa [#allocation7], 1 }
 0x9aa   :  { %11054 = vsyncpa [#allocation7 + $0x1], 1 }
 0x9ab   :  { %11055 = vsyncpa [#allocation10], 1 }
 0x9ac   :  { %11056 = vsyncpa [#allocation13], 1 }
 0x9ad   :  { %11057 = vsyncpa [#allocation8], 1 }
 0x9ae   :  { %11059 = vsyncpa [#allocation8 + $0x1], 1 }
 0x9af   :  { %11060 = vsyncpa [#allocation17], 1 }
 0x9b0   :  { %11062 = vsyncpa [#allocation17 + $0x1], 1 }

</bundles_post_ra>
